<compile_context>
chip_gen: v6e
topology: v6e:2x2x1
jax: 0.10.0
libtpu: 0.0.40
codegen_flags: <defaults>
</compile_context>

<pallas_src>
import functools

import jax
import jax.numpy as jnp
from jax.experimental import pallas as pl
from jax.experimental.pallas import tpu as pltpu


def mlp_kernel(x_ref, w1_ref, b1_ref, w2_ref, b2_ref, w3_ref, b3_ref, o_ref,
               *, compute_dtype, precision):
    # x_ref: (C_in, tL) tile; weights: (C_out_i, C_in_i) already in
    # compute_dtype; biases: (C_i, 1) float32 (added on the f32 accumulator).
    x = x_ref[...].astype(compute_dtype)

    h = jnp.dot(w1_ref[...], x,
                preferred_element_type=jnp.float32, precision=precision)
    # Materialize hidden activations in compute_dtype at the ReLU: the
    # (256, tL) / (64, tL) intermediates round-trip VMEM, so this halves the
    # intermediate scratch + store/load bytes (biggest win on v5e's 1 vst slot).
    h = jnp.maximum(h + b1_ref[...], 0.0).astype(compute_dtype)      # relu(conv1)

    h = jnp.dot(w2_ref[...], h,
                preferred_element_type=jnp.float32, precision=precision)
    h = jnp.maximum(h + b2_ref[...], 0.0).astype(compute_dtype)      # relu(conv2)

    h = jnp.dot(w3_ref[...], h,
                preferred_element_type=jnp.float32, precision=precision)
    o_ref[...] = jnp.maximum(h + b3_ref[...], 0.0).astype(o_ref.dtype)  # relu(conv3)


def _round_up(x, m):
    return ((x + m - 1) // m) * m


def _choose_tiling(L, target=8192):
    """Return (tile_l, padded_L).

    tile_l is a multiple of 128, padded_L is a multiple of tile_l, and the
    degenerate 128-wide-tile / full-huge-L fallbacks are avoided.
    """
    target = max(128, (target // 128) * 128)
    L128 = _round_up(L, 128)
    if L128 <= target:
        return L128, L128                      # one lane-dense tile per batch elem
    # Prefer a non-degenerate divisor of the 128-aligned length.
    t = target
    while t >= 1024:
        if L128 % t == 0:
            return t, L128
        t -= 128
    # No convenient divisor: keep the big tile and pad L up to it.
    return target, _round_up(L128, target)


def mlp_pallas(x_ncl, params, *, tile_l=8192, compute_dtype=jnp.bfloat16,
               vmem_limit_bytes=32 * 1024 * 1024):
    """x_ncl: (B, C_in, L) float32.  Returns (B, C_out, L) float32 (NCL)."""
    w1, b1, w2, b2, w3, b3 = params
    B, C_in, L = x_ncl.shape
    H1, H2, C_out = w1.shape[0], w2.shape[0], w3.shape[0]

    tL, L_pad = _choose_tiling(L, tile_l)
    if L_pad != L:
        # Zero padding is safe: extra positions compute relu(bias) garbage that
        # is sliced away below; keeps every tile lane-dense and VMEM bounded.
        x_ncl = jnp.pad(x_ncl, ((0, 0), (0, 0), (0, L_pad - L)))

    # Pre-cast weights on the host for the bf16 path: resident blocks carry no
    # per-grid-step astype and half the weight DMA / double-buffer footprint.
    if jnp.dtype(compute_dtype) != w1.dtype:
        w1, w2, w3 = (w.astype(compute_dtype) for w in (w1, w2, w3))

    precision = (jax.lax.Precision.HIGHEST
                 if jnp.dtype(compute_dtype) == jnp.dtype(jnp.float32)
                 else jax.lax.Precision.DEFAULT)

    kernel = functools.partial(mlp_kernel, compute_dtype=compute_dtype,
                               precision=precision)

    # Both grid axes are independent -> "parallel" (megacore sharding on v7x).
    grid = (B, L_pad // tL)

    out = pl.pallas_call(
        kernel,
        out_shape=jax.ShapeDtypeStruct((B, C_out, L_pad), x_ncl.dtype),
        grid_spec=pltpu.PrefetchScalarGridSpec(
            num_scalar_prefetch=0,
            grid=grid,
            in_specs=[
                # activations: batch dim squeezed, positions in the lane dim
                pl.BlockSpec((None, C_in, tL), lambda b, l: (b, 0, l)),
                # weights/biases: tiny, resident (constant index_map)
                pl.BlockSpec((H1, C_in),  lambda b, l: (0, 0)),   # W1 (256, C_in)
                pl.BlockSpec((H1, 1),     lambda b, l: (0, 0)),   # b1 (256, 1)
                pl.BlockSpec((H2, H1),    lambda b, l: (0, 0)),   # W2 (64, 256)
                pl.BlockSpec((H2, 1),     lambda b, l: (0, 0)),   # b2 (64, 1)
                pl.BlockSpec((C_out, H2), lambda b, l: (0, 0)),   # W3 (C_out, 64)
                pl.BlockSpec((C_out, 1),  lambda b, l: (0, 0)),   # b3 (C_out, 1)
            ],
            out_specs=pl.BlockSpec((None, C_out, tL), lambda b, l: (b, 0, l)),
        ),
        compiler_params=pltpu.CompilerParams(
            dimension_semantics=("parallel", "parallel"),
            # ~9 MiB live at tL=8192 with bf16 intermediates; 32 MiB is safe on
            # v7x's 64 MiB physical VMEM and the v5e/v6e scoped default.
            vmem_limit_bytes=vmem_limit_bytes,
        ),
    )(x_ncl, w1, b1, w2, b2, w3, b3)

    if L_pad != L:
        out = out[:, :, :L]
    return out


def init_params(key, in_num, out_num):
    """Deterministic init mimicking PyTorch Conv1d default U(-1/sqrt(fan_in), +).

    Weights stored (fan_out, fan_in), biases (fan_out, 1) — the PyTorch Conv1d
    weight (out, in, 1) applied per position via W @ x.
    """
    dims = [(in_num, 256), (256, 64), (64, out_num)]
    params = []
    for i, (fan_in, fan_out) in enumerate(dims):
        kw, kb = jax.random.split(jax.random.fold_in(key, i))
        bound = 1.0 / (fan_in ** 0.5)
        w = jax.random.uniform(kw, (fan_out, fan_in), jnp.float32, -bound, bound)
        b = jax.random.uniform(kb, (fan_out, 1), jnp.float32, -bound, bound)
        params += [w, b]
    return tuple(params)


def mlp_reference(x_ncl, params):
    w1, b1, w2, b2, w3, b3 = params
    hi = jax.lax.Precision.HIGHEST
    h = jax.nn.relu(jnp.einsum('oi,bil->bol', w1, x_ncl, precision=hi) + b1)
    h = jax.nn.relu(jnp.einsum('oi,bil->bol', w2, h, precision=hi) + b2)
    h = jax.nn.relu(jnp.einsum('oi,bil->bol', w3, h, precision=hi) + b3)
    return h


if __name__ == "__main__":
    key = jax.random.PRNGKey(0)
    B, in_num, L, out_num = 2, 16, 128, 32   # small shapes; tL adapts to L

    kx, kp = jax.random.split(key)
    x = jax.random.normal(kx, (B, in_num, L), jnp.float32)
    params = init_params(kp, in_num, out_num)

    ref = mlp_reference(x, params)

    # f32 matmul path (Precision.HIGHEST): tight validation against the reference.
    out_f32 = jax.block_until_ready(mlp_pallas(x, params, compute_dtype=jnp.float32))
    assert out_f32.shape == (B, out_num, L)
    assert jnp.allclose(out_f32, ref, atol=1e-5, rtol=1e-5)

    # bf16 matmul path (default, native MXU path; f32 accumulation): looser tol.
    out_bf16 = jax.block_until_ready(mlp_pallas(x, params))
    assert out_bf16.shape == (B, out_num, L)
    assert jnp.allclose(out_bf16, ref, atol=3e-2, rtol=3e-2)

    # Ragged-length path: L not a multiple of 128 -> host pads to 128 multiple,
    # kernel unchanged, output sliced back.
    L2 = 200
    x2 = jax.random.normal(jax.random.fold_in(key, 7), (B, in_num, L2), jnp.float32)
    ref2 = mlp_reference(x2, params)
    out2 = jax.block_until_ready(mlp_pallas(x2, params, compute_dtype=jnp.float32))
    assert out2.shape == (B, out_num, L2)
    assert jnp.allclose(out2, ref2, atol=1e-5, rtol=1e-5)

    print("KERNEL_OK")
</pallas_src>

<mosaic_0001>
module attributes {stable_mosaic.version = 11 : i64} {
  func.func @mlp_kernel(%arg0: i32, %arg1: i32, %arg2: memref<1x16x128xf32, #tpu.memory_space<vmem>>, %arg3: memref<256x16xf32, #tpu.memory_space<vmem>>, %arg4: memref<256x1xf32, #tpu.memory_space<vmem>>, %arg5: memref<64x256xf32, #tpu.memory_space<vmem>>, %arg6: memref<64x1xf32, #tpu.memory_space<vmem>>, %arg7: memref<32x64xf32, #tpu.memory_space<vmem>>, %arg8: memref<32x1xf32, #tpu.memory_space<vmem>>, %arg9: memref<1x32x128xf32, #tpu.memory_space<vmem>>) attributes {dimension_semantics = [#tpu.dimension_semantics<parallel>, #tpu.dimension_semantics<parallel>], iteration_bounds = array<i64: 2, 1>, scalar_prefetch = 0 : i64, scratch_operands = 0 : i64, tpu.core_type = #tpu.core_type<tc>, window_params = [{transform_indices = @transform_0, window_bounds = array<i64: 1, 16, 128>}, {pipeline_mode = #tpu.pipeline_mode<synchronous>, transform_indices = @transform_1, window_bounds = array<i64: 256, 16>}, {pipeline_mode = #tpu.pipeline_mode<synchronous>, transform_indices = @transform_2, window_bounds = array<i64: 256, 1>}, {pipeline_mode = #tpu.pipeline_mode<synchronous>, transform_indices = @transform_3, window_bounds = array<i64: 64, 256>}, {pipeline_mode = #tpu.pipeline_mode<synchronous>, transform_indices = @transform_4, window_bounds = array<i64: 64, 1>}, {pipeline_mode = #tpu.pipeline_mode<synchronous>, transform_indices = @transform_5, window_bounds = array<i64: 32, 64>}, {pipeline_mode = #tpu.pipeline_mode<synchronous>, transform_indices = @transform_6, window_bounds = array<i64: 32, 1>}, {transform_indices = @transform_7, window_bounds = array<i64: 1, 32, 128>}]} {
    %c0 = arith.constant 0 : index
    %c0_0 = arith.constant 0 : index
    %c0_1 = arith.constant 0 : index
    %0 = vector.load %arg2[%c0, %c0_0, %c0_1] : memref<1x16x128xf32, #tpu.memory_space<vmem>>, vector<1x16x128xf32>
    %1 = vector.shape_cast %0 : vector<1x16x128xf32> to vector<16x128xf32>
    %c0_2 = arith.constant 0 : index
    %c0_3 = arith.constant 0 : index
    %2 = vector.load %arg3[%c0_2, %c0_3] : memref<256x16xf32, #tpu.memory_space<vmem>>, vector<256x16xf32>
    %cst = arith.constant dense<0.000000e+00> : vector<256x128xf32>
    %3 = tpu.matmul %2, %1, %cst {dimension_numbers = #tpu.dot_dimension_numbers<[1], [0], [0], [1], [0, 0, 1, 1], [], []>, precision = #tpu.contract_precision<fp32>} : vector<256x16xf32>, vector<16x128xf32>, vector<256x128xf32> -> vector<256x128xf32>
    %c0_4 = arith.constant 0 : index
    %c0_5 = arith.constant 0 : index
    %4 = vector.load %arg4[%c0_4, %c0_5] : memref<256x1xf32, #tpu.memory_space<vmem>>, vector<256x1xf32>
    %5 = vector.broadcast %4 : vector<256x1xf32> to vector<256x128xf32>
    %6 = arith.addf %3, %5 : vector<256x128xf32>
    %cst_6 = arith.constant 0.000000e+00 : f32
    %7 = vector.broadcast %cst_6 : f32 to vector<256x128xf32>
    %8 = arith.maximumf %6, %7 : vector<256x128xf32>
    %c0_7 = arith.constant 0 : index
    %c0_8 = arith.constant 0 : index
    %9 = vector.load %arg5[%c0_7, %c0_8] : memref<64x256xf32, #tpu.memory_space<vmem>>, vector<64x256xf32>
    %cst_9 = arith.constant dense<0.000000e+00> : vector<64x128xf32>
    %10 = tpu.matmul %9, %8, %cst_9 {dimension_numbers = #tpu.dot_dimension_numbers<[1], [0], [0], [1], [0, 0, 1, 1], [], []>, precision = #tpu.contract_precision<fp32>} : vector<64x256xf32>, vector<256x128xf32>, vector<64x128xf32> -> vector<64x128xf32>
    %c0_10 = arith.constant 0 : index
    %c0_11 = arith.constant 0 : index
    %11 = vector.load %arg6[%c0_10, %c0_11] : memref<64x1xf32, #tpu.memory_space<vmem>>, vector<64x1xf32>
    %12 = vector.broadcast %11 : vector<64x1xf32> to vector<64x128xf32>
    %13 = arith.addf %10, %12 : vector<64x128xf32>
    %cst_12 = arith.constant 0.000000e+00 : f32
    %14 = vector.broadcast %cst_12 : f32 to vector<64x128xf32>
    %15 = arith.maximumf %13, %14 : vector<64x128xf32>
    %c0_13 = arith.constant 0 : index
    %c0_14 = arith.constant 0 : index
    %16 = vector.load %arg7[%c0_13, %c0_14] : memref<32x64xf32, #tpu.memory_space<vmem>>, vector<32x64xf32>
    %cst_15 = arith.constant dense<0.000000e+00> : vector<32x128xf32>
    %17 = tpu.matmul %16, %15, %cst_15 {dimension_numbers = #tpu.dot_dimension_numbers<[1], [0], [0], [1], [0, 0, 1, 1], [], []>, precision = #tpu.contract_precision<fp32>} : vector<32x64xf32>, vector<64x128xf32>, vector<32x128xf32> -> vector<32x128xf32>
    %c0_16 = arith.constant 0 : index
    %c0_17 = arith.constant 0 : index
    %18 = vector.load %arg8[%c0_16, %c0_17] : memref<32x1xf32, #tpu.memory_space<vmem>>, vector<32x1xf32>
    %19 = vector.broadcast %18 : vector<32x1xf32> to vector<32x128xf32>
    %20 = arith.addf %17, %19 : vector<32x128xf32>
    %cst_18 = arith.constant 0.000000e+00 : f32
    %21 = vector.broadcast %cst_18 : f32 to vector<32x128xf32>
    %22 = arith.maximumf %20, %21 : vector<32x128xf32>
    %c0_19 = arith.constant 0 : index
    %c0_20 = arith.constant 0 : index
    %c0_21 = arith.constant 0 : index
    %23 = vector.load %arg9[%c0_19, %c0_20, %c0_21] : memref<1x32x128xf32, #tpu.memory_space<vmem>>, vector<1x32x128xf32>
    %24 = vector.shape_cast %23 : vector<1x32x128xf32> to vector<32x128xf32>
    %25 = vector.shape_cast %22 : vector<32x128xf32> to vector<1x32x128xf32>
    tpu.vector_store %arg9[%c0_19, %c0_20, %c0_21], %25 {strides = array<i32>} : memref<1x32x128xf32, #tpu.memory_space<vmem>>, vector<1x32x128xf32>,
    return
  }
  func.func @transform_0(%arg0: i32, %arg1: i32) -> (i32, i32, i32) {
    %c0_i32 = arith.constant 0 : i32
    %c0_i32_0 = arith.constant 0 : i32
    return %arg0, %c0_i32, %arg1 : i32, i32, i32
  }
  func.func @transform_1(%arg0: i32, %arg1: i32) -> (i32, i32) {
    %c0_i32 = arith.constant 0 : i32
    %c0_i32_0 = arith.constant 0 : i32
    %c0_i32_1 = arith.constant 0 : i32
    return %c0_i32, %c0_i32_0 : i32, i32
  }
  func.func @transform_2(%arg0: i32, %arg1: i32) -> (i32, i32) {
    %c0_i32 = arith.constant 0 : i32
    %c0_i32_0 = arith.constant 0 : i32
    %c0_i32_1 = arith.constant 0 : i32
    return %c0_i32, %c0_i32_0 : i32, i32
  }
  func.func @transform_3(%arg0: i32, %arg1: i32) -> (i32, i32) {
    %c0_i32 = arith.constant 0 : i32
    %c0_i32_0 = arith.constant 0 : i32
    %c0_i32_1 = arith.constant 0 : i32
    return %c0_i32, %c0_i32_0 : i32, i32
  }
  func.func @transform_4(%arg0: i32, %arg1: i32) -> (i32, i32) {
    %c0_i32 = arith.constant 0 : i32
    %c0_i32_0 = arith.constant 0 : i32
    %c0_i32_1 = arith.constant 0 : i32
    return %c0_i32, %c0_i32_0 : i32, i32
  }
  func.func @transform_5(%arg0: i32, %arg1: i32) -> (i32, i32) {
    %c0_i32 = arith.constant 0 : i32
    %c0_i32_0 = arith.constant 0 : i32
    %c0_i32_1 = arith.constant 0 : i32
    return %c0_i32, %c0_i32_0 : i32, i32
  }
  func.func @transform_6(%arg0: i32, %arg1: i32) -> (i32, i32) {
    %c0_i32 = arith.constant 0 : i32
    %c0_i32_0 = arith.constant 0 : i32
    %c0_i32_1 = arith.constant 0 : i32
    return %c0_i32, %c0_i32_0 : i32, i32
  }
  func.func @transform_7(%arg0: i32, %arg1: i32) -> (i32, i32, i32) {
    %c0_i32 = arith.constant 0 : i32
    %c0_i32_0 = arith.constant 0 : i32
    return %arg0, %c0_i32, %arg1 : i32, i32, i32
  }
}

</mosaic_0001>

<bundles_post_ra>
// kernel: tpu_custom_call.1
= control target key start
LH: loop header
LB: loop body
LE: loop exit
PB: predicated region body
PF: predicated region fallthrough
CT: control target
= control target key end

     0   :  { %12 = vsyncpa [#allocation3], 0  ;;  %s8297_s0 = inlined_call_operand.vmem [shape: f32[2,16,128], index: 0, kind: input, shape index: {}]   ;;  %s8298_s1 = inlined_call_operand.vmem [shape: f32[256,16], index: 1, kind: input, shape index: {}]   ;;  %s8299_s2 = inlined_call_operand.vmem [shape: f32[256,1], index: 2, kind: input, shape index: {}]   ;;  %s8300_s3 = inlined_call_operand.vmem [shape: f32[64,256], index: 3, kind: input, shape index: {}]   ;;  %s8301_s4 = inlined_call_operand.vmem [shape: f32[64,1], index: 4, kind: input, shape index: {}]   ;;  %s8302_s5 = inlined_call_operand.vmem [shape: f32[32,64], index: 5, kind: input, shape index: {}]   ;;  %s8303_s6 = inlined_call_operand.vmem [shape: f32[32,1], index: 6, kind: input, shape index: {}]   ;;  %s8304_s7 = inlined_call_operand.hbm [shape: f32[2,32,128], index: 7, kind: output, shape index: {}]  }
   0x1   :  { %14 = vsyncpa [#allocation3 + $0x1], 0  ;;  %s5836_s24 = smov 0   ;;  %s5838_s25 = smov 0  }
   0x2   :  { %s5840_s26 = smov 0   ;;  %s5842_s27 = smov 0  }
   0x3   :  { %s5844_s28 = smov 0   ;;  %s5846_s29 = smov 0  }
   0x4 LB: > { %s4583_s30 = sadd.s32 4294967295, %s5790_s29   ;;  %s4584_s8 = sadd.s32 4294967294, %s5790_s29   ;;  %s5790_s29 = sphi %s5846_s29, %s20_s29   ;;  %s5786_s28 = sphi %s5844_s28, %s8906_s28   ;;  %s5782_s27 = sphi %s5842_s27, %s8905_s27   ;;  %s5778_s26 = sphi %s5840_s26, %s8904_s26   ;;  %s5774_s25 = sphi %s5838_s25, %s8903_s25   ;;  %s5770_s24 = sphi %s5836_s24, %s8902_s24  }
   0x5   : > { %s32_s9 = sadd.s32 1, %s5786_s28  ;;  %s195_s10 = sadd.s32 1, %s5778_s26 }
   0x6   : > { %p34_p0 = scmp.ge.s32.totalorder %s32_s9, 2  ;;  %p205_p1 = scmp.ne.s32.totalorder %s5778_s26, %s5774_s25 }
   0x7   : > { %p206_p2 = scmp.eq.s32.totalorder %s4583_s30, 1  ;;  %p211_p3 = scmp.ne.s32.totalorder %s5774_s25, %s5770_s24 }
   0x8   : > { %s8908_s9 = smov (%p34_p0, %s32_s9), 0  ;;  %p212_p5 = scmp.eq.s32.totalorder %s4584_s8, 1 }
   0x9   : > { %p5876_p4 = por %p206_p2, %p205_p1  ;;  %s190_s12 = ssub.s32 %s5786_s28, %s8908_s9 }
   0xa   : > { %p4587_p6 = scmp.ge.s32.totalorder %s5790_s29, 1  ;;  %p193_p7 = scmp.eq.s32.totalorder %s190_s12, 0 }
   0xb   : > { %p5883_p8 = por %p212_p5, %p211_p3  ;;  %p259_p9 = scmp.lt.s32.totalorder %s5790_s29, 3 }
   0xc   : > { %s5889_s14 = scalar_select %p193_p7, %s5778_s26, %s195_s10  }
   0xd   : > { %p260_p10 = pnand %p4587_p6, %p259_p9 }
   0xf   : > { %263 = sbr.rel (%p260_p10) target bundleno = 1075 (0x433), region = 48 }
  0x14   : > { %p294_p11 = scmp.lt.s32.totalorder %s5782_s27, 1  ;;  %v304_v0 = vld [vmem:[%s8298_s1] sm:$0xff]  ;;  %vm528_vm0 = vcmask 130048   ;;  %v305_v1 = vld [vmem:[%s8298_s1 + $0x8] sm:$0xff]  ;;  %v306_v2 = vld [vmem:[%s8298_s1 + $0x10] sm:$0xff]  ;;  %v5792_v9 = vmov 0  }
  0x15   : > { %v530_v3 = vsel %vm528_vm0, %v304_v0, 0  ;;  %v533_v4 = vsel %vm528_vm0, %v305_v1, 0  ;;  %v536_v5 = vsel %vm528_vm0, %v306_v2, 0  ;;  %v307_v6 = vld [vmem:[%s8298_s1 + $0x18] sm:$0xff]  ;;  %v308_v7 = vld [vmem:[%s8298_s1 + $0x20] sm:$0xff]  ;;  %v309_v8 = vld [vmem:[%s8298_s1 + $0x28] sm:$0xff]  ;;  %5713 = vset.pattern.permute.xlu1 %v5792_v9  ;;  %5712 = vset.pattern.permute.xlu0 %v5792_v9 }
  0x16   : > { %s295_s12 = scalar_select %p294_p11, %s5782_s27, 1  ;;  %v5916_v10 = vand.u32 4294901760, %v530_v3  ;;  %v5918_v11 = vand.u32 4294901760, %v533_v4  ;;  %v5920_v12 = vand.u32 4294901760, %v536_v5  ;;  %v539_v13 = vsel %vm528_vm0, %v307_v6, 0  ;;  %v310_v14 = vld [vmem:[%s8298_s1 + $0x30] sm:$0xff] }
  0x17   : > { %v5926_v15 = vand.u32 4294901760, %v539_v13  ;;  %v542_v16 = vsel %vm528_vm0, %v308_v7, 0  ;;  %v545_v17 = vsel %vm528_vm0, %v309_v8, 0  ;;  %v548_v18 = vsel %vm528_vm0, %v310_v14, 0  ;;  %v311_v19 = vld [vmem:[%s8298_s1 + $0x38] sm:$0xff]  ;;  %v366_v20 = vld [vmem:[%s8299_s2 + $0xf0] sm:$0xff] }
  0x18   : > { %8496 = vst [vmem:[#allocation5_spill] sm:$0xff] %v5916_v10  ;;  %8497 = vst [vmem:[#allocation6_spill] sm:$0xff] %v5918_v11  ;;  %s4596_s21 = sshll.u32 %s295_s12, 4  ;;  %v5938_v21 = vsub.f32 %v530_v3, %v5916_v10  ;;  %v5941_v22 = vsub.f32 %v533_v4, %v5918_v11  ;;  %v5944_v23 = vsub.f32 %v536_v5, %v5920_v12  ;;  %v5946_v24 = vand.u32 4294901760, %v542_v16  ;;  %v350_v29 = vld [vmem:[%s8299_s2 + $0x70] sm:$0xff]  ;;  %v312_v48 = vld [vmem:[%s8298_s1 + $0x40] sm:$0xff] }
  0x19   : > { %8498 = vst [vmem:[#allocation7_spill] sm:$0xff] %v5920_v12  ;;  %8499 = vst [vmem:[#allocation8_spill] sm:$0xff] %v5926_v15  ;;  %5266 = vmatprep.mubr.f32.mxu1 %v5916_v10  ;;  %520 = vperm.xlu1 %5713, %v366_v20   ;;  %s301_s30 = scalar_lea.vmem %s8297_s0, %s4596_s21  ;;  %v5953_v25 = vsub.f32 %v539_v13, %v5926_v15  ;;  %v5955_v26 = vand.u32 4294901760, %v545_v17  ;;  %v5957_v27 = vand.u32 4294901760, %v548_v18  ;;  %v551_v28 = vsel %vm528_vm0, %v311_v19, 0  ;;  %v349_v53 = vld [vmem:[%s8299_s2 + $0x68] sm:$0xff] }
  0x1a   : > { %8500 = vst [vmem:[#allocation9_spill] sm:$0xff] %v5946_v24  ;;  %v303_v30 = vld [vmem:[%s301_s30 + $0x8] sm:$0xff]  ;;  %v302_v31 = vld [vmem:[%s301_s30] sm:$0xff]  ;;  %v8320_v32 = vand.u32 4294901760, %v5938_v21  ;;  %v8319_v33 = vand.u32 4294901760, %v5941_v22  ;;  %v8318_v34 = vand.u32 4294901760, %v5944_v23  ;;  %v5967_v35 = vsub.f32 %v542_v16, %v5946_v24 }
  0x1b   : > { %8501 = vst [vmem:[#allocation10_spill] sm:$0xff] %v5955_v26  ;;  %8502 = vst [vmem:[#allocation11_spill] sm:$0xff] %v5957_v27  ;;  %v5969_v36 = vand.u32 4294901760, %v303_v30  ;;  %v5971_v37 = vand.u32 4294901760, %v302_v31  ;;  %v8316_v38 = vand.u32 4294901760, %v5953_v25  ;;  %v5975_v39 = vsub.f32 %v545_v17, %v5955_v26  ;;  %v313_v58 = vld [vmem:[%s8298_s1 + $0x48] sm:$0xff] }
  0x1c   : > { %v695_v40 = vsub.f32 %v5938_v21, %v8320_v32  ;;  %v705_v41 = vsub.f32 %v5941_v22, %v8319_v33  ;;  %v715_v42 = vsub.f32 %v5944_v23, %v8318_v34  ;;  %v8313_v43 = vand.u32 4294901760, %v5967_v35  ;;  %v314_v59 = vld [vmem:[%s8298_s1 + $0x50] sm:$0xff]  ;;  %v367_v0 = vld [vmem:[%s8299_s2 + $0xf8] sm:$0xff]  ;;  %v316_v13 = vld [vmem:[%s8298_s1 + $0x60] sm:$0xff]  ;;  %s291_s17 = sand.u32 1, %s5774_s25   ;;  %s4597_s21 = sshll.u32 %s5782_s27, 9 }
  0x1d   : > { %440 = vperm.xlu1 %5713, %v350_v29   ;;  %5210 = vmatprep.subr.mxu0 %v5969_v36  ;;  %v725_v44 = vsub.f32 %v5953_v25, %v8316_v38  ;;  %v1042_v45 = vsub.f32 %v303_v30, %v5969_v36  ;;  %v5993_v46 = vsub.f32 %v302_v31, %v5971_v37  ;;  %v8312_v47 = vand.u32 4294901760, %v5975_v39  ;;  %v315_v5 = vld [vmem:[%s8298_s1 + $0x58] sm:$0xff]  ;;  %v317_v30 = vld [vmem:[%s8298_s1 + $0x68] sm:$0xff]  ;;  %v348_v31 = vld [vmem:[%s8299_s2 + $0x60] sm:$0xff]  ;;  %s4588_s18 = sshll.u32 %s291_s17, 5  ;;  %s8248_s30 = scalar_lea.hbm %s8304_s7, %s4597_s21 }
  0x1e   : > { %5211 = vmatpush3.msra.mxu0 %v5969_v36  ;;  %v696_v49 = vand.u32 4294901760, %v695_v40  ;;  %v706_v50 = vand.u32 4294901760, %v705_v41  ;;  %v716_v51 = vand.u32 4294901760, %v715_v42  ;;  %v735_v52 = vsub.f32 %v5967_v35, %v8313_v43  ;;  %525 = vperm.xlu0 %5712, %v367_v0   ;;  %v362_v32 = vld [vmem:[%s8299_s2 + $0xd0] sm:$0xff]  ;;  %s293_s19 = scalar_lea.vmem [#allocation2], %s4588_s18  ;;  %s8252_s8 = scalar_lea.sflag [#allocation3], %s291_s17 }
  0x1f   : > { %5212 = vmatprep.subr.mxu0 %v5971_v37  ;;  %v726_v54 = vand.u32 4294901760, %v725_v44  ;;  %v6007_v55 = vand.u32 4294901760, %v1042_v45  ;;  %v6010_v56 = vand.u32 4294901760, %v5993_v46  ;;  %v6015_v57 = vsub.f32 %v5975_v39, %v8312_v47  ;;  %s4505_s20 = sshll.u32 %s293_s19, 4  ;;  %s5793_s10 = smov [#allocation2]   ;;  %s8243_s20 = int_to_ptr.vmem [resolvable:$true] %s4505_s20 }
  0x20   : > { %5213 = vmatpush3.msra.mxu0 %v5971_v37  ;;  %5214 = vmatprep.mubr.f32.mxu0 %v696_v49  ;;  %v736_v60 = vand.u32 4294901760, %v735_v52  ;;  %v6025_v61 = vsub.f32 %v548_v18, %v5957_v27  ;;  %v6027_v62 = vand.u32 4294901760, %v551_v28  ;;  %v554_v63 = vsel %vm528_vm0, %v312_v48, 0  ;;  %v318_v52 = vld [vmem:[%s8298_s1 + $0x70] sm:$0xff]  ;;  %s5714_s27 = scalar_lea.vmem %s8243_s20, 512  ;;  %s5718_s12 = sshll.u32 %s5793_s10, 4  ;;  %s5719_s12 = int_to_ptr.vmem [resolvable:$false] %s5718_s12 }
  0x21   : > { %5215 = vmatmul.mubr.f32.vlgmr.msra.gmra.mxu0 %v706_v50  ;;  %v1044_v1 = vsub.f32 %v1042_v45, %v6007_v55  ;;  %v1051_v2 = vsub.f32 %v5993_v46, %v6010_v56  ;;  %v746_v3 = vand.u32 4294901760, %v6015_v57  ;;  %v6037_v4 = vand.u32 4294901760, %v554_v63  ;;  %435 = vperm.xlu1 %5713, %v349_v53   ;;  %p5715_p12 = scmp.ne.s32.totalorder %s8243_s20, %s5714_s27  ;;  %s5720_s15 = scalar_lea.vmem %s5719_s12, 1024 }
  0x22   : > { %8503 = vst [vmem:[#allocation12_spill] sm:$0xff] %v6027_v62  ;;  %5217 = vmatprep.mubr.f32.mxu0 %v716_v51  ;;  %v8311_v6 = vand.u32 4294901760, %v6025_v61  ;;  %v6044_v7 = vsub.f32 %v551_v28, %v6027_v62  ;;  %v557_v8 = vsel %vm528_vm0, %v313_v58, 0  ;;  %v560_v9 = vsel %vm528_vm0, %v314_v59, 0  ;;  %5314 = vmatprep.subr.mxu0 %v1042_v45  ;;  %p5721_p1 = scmp.lt.s32.totalorder %s8243_s20, %s5719_s12  ;;  %p5722_p2 = scmp.lt.s32.totalorder %s5720_s15, %s5714_s27 }
  0x23   : > { %8504 = vst [vmem:[#allocation13_spill] sm:$0xff] %v6037_v4  ;;  %v1045_v14 = vand.u32 4294901760, %v1044_v1  ;;  %v1052_v16 = vand.u32 4294901760, %v1051_v2  ;;  %v6052_v17 = vsub.f32 %v554_v63, %v6037_v4  ;;  %v6054_v18 = vand.u32 4294901760, %v557_v8  ;;  %5315 = vmatpush3.msra.mxu0 %v1042_v45  ;;  %v351_v45 = vld [vmem:[%s8299_s2 + $0x78] sm:$0xff]  ;;  %p5716_p13 = pnand %p5715_p12, %p5876_p4 }
  0x24   : > { %v755_v19 = vsub.f32 %v6025_v61, %v8311_v6  ;;  %v8310_v20 = vand.u32 4294901760, %v6044_v7  ;;  %v6060_v28 = vand.u32 4294901760, %v560_v9  ;;  %v563_v29 = vsel %vm528_vm0, %v315_v5, 0  ;;  %5316 = vmatprep.subr.mxu0 %v5993_v46  ;;  %v319_v1 = vld [vmem:[%s8298_s1 + $0x78] sm:$0xff]  ;;  %v320_v5 = vld [vmem:[%s8298_s1 + $0x80] sm:$0xff]  ;;  %445 = vperm.xlu0 %5712, %v351_v45   ;;  %p5723_p3 = por %p5722_p2, %p5721_p1 }
  0x25   : > { %8505 = vst [vmem:[#allocation14_spill] sm:$0xff] %v6054_v18  ;;  %5218 = vmatmul.mubr.f32.gmra.mxu0 %v726_v54  ;;  %5262 = vmatprep.subr.mxu1 %v1045_v14  ;;  %v8309_v40 = vand.u32 4294901760, %v6052_v17  ;;  %v6072_v41 = vsub.f32 %v557_v8, %v6054_v18  ;;  %v6074_v42 = vand.u32 4294901760, %v563_v29  ;;  %v566_v44 = vsel %vm528_vm0, %v316_v13, 0  ;;  %v347_v2 = vld [vmem:[%s8299_s2 + $0x58] sm:$0xff]  ;;  %p5717_p0 = pneg %p5716_p13 }
  0x26   : > { %8506 = vst [vmem:[#allocation15_spill] sm:$0xff] %v6060_v28  ;;  %5263 = vmatpush3.msra.mxu1 %v1045_v14  ;;  %5220 = vmatprep.mubr.f32.mxu0 %v736_v60  ;;  %v756_v48 = vand.u32 4294901760, %v755_v19  ;;  %v765_v49 = vsub.f32 %v6044_v7, %v8310_v20  ;;  %v6084_v50 = vsub.f32 %v560_v9, %v6060_v28  ;;  %v6086_v51 = vand.u32 4294901760, %v566_v44 }
  0x27   : > { %8507 = vst [vmem:[#allocation16_spill] sm:$0xff] %v6074_v42  ;;  %5264 = vmatprep.subr.mxu1 %v1052_v16  ;;  %v775_v53 = vsub.f32 %v6052_v17, %v8309_v40  ;;  %v8308_v54 = vand.u32 4294901760, %v6072_v41  ;;  %v6096_v57 = vsub.f32 %v563_v29, %v6074_v42  ;;  %v569_v58 = vsel %vm528_vm0, %v317_v30, 0  ;;  %430 = vperm.xlu1 %5713, %v348_v31   ;;  %v321_v31 = vld [vmem:[%s8298_s1 + $0x88] sm:$0xff]  ;;  %p5724_p5 = pnand %p5723_p3, %p5717_p0 }
  0x28   : > { %8508 = vst [vmem:[#allocation17_spill] sm:$0xff] %v6086_v51  ;;  %5265 = vmatpush3.msra.mxu1 %v1052_v16  ;;  %v766_v59 = vand.u32 4294901760, %v765_v49  ;;  %v8307_v60 = vand.u32 4294901760, %v6084_v50  ;;  %v6101_v63 = vsub.f32 %v566_v44, %v6086_v51  ;;  %v6103_v0 = vand.u32 4294901760, %v569_v58  ;;  %v365_v16 = vld [vmem:[%s8299_s2 + $0xe8] sm:$0xff]  ;;  %5317 = vmatpush3.msra.mxu0 %v5993_v46 }
  0x29   : > { %5221 = vmatmul.mubr.f32.gmra.mxu0 %v746_v3  ;;  %5267 = vmatmul.mubr.f32.vlgmr.msra.gmra.mxu1 %v5918_v11  ;;  %v776_v8 = vand.u32 4294901760, %v775_v53  ;;  %v785_v9 = vsub.f32 %v6072_v41, %v8308_v54  ;;  %v8306_v13 = vand.u32 4294901760, %v6096_v57  ;;  %v572_v14 = vsel %vm528_vm0, %v318_v52, 0  ;;  %v324_v54 = vld [vmem:[%s8298_s1 + $0xa0] sm:$0xff] }
  0x2a   : > { %8509 = vst [vmem:[#allocation18_spill] sm:$0xff] %v6103_v0  ;;  %5223 = vmatprep.mubr.f32.mxu0 %v756_v48  ;;  %5269 = vmatprep.mubr.f32.mxu1 %v5920_v12  ;;  %v795_v3 = vsub.f32 %v6084_v50, %v8307_v60  ;;  %v8305_v19 = vand.u32 4294901760, %v6101_v63  ;;  %v6129_v29 = vsub.f32 %v569_v58, %v6103_v0  ;;  %v6131_v30 = vand.u32 4294901760, %v572_v14  ;;  %v346_v58 = vld [vmem:[%s8299_s2 + $0x50] sm:$0xff]  ;;  %v359_v12 = vld [vmem:[%s8299_s2 + $0xb8] sm:$0xff] }
  0x2b   : > { %v575_v44 = vsel %vm528_vm0, %v319_v1, 0  ;;  %425 = vperm.xlu1 %5713, %v347_v2   ;;  %v578_v45 = vsel %vm528_vm0, %v320_v5, 0  ;;  %5366 = vmatprep.subr.mxu1 %v5969_v36  ;;  %v786_v48 = vand.u32 4294901760, %v785_v9  ;;  %v805_v49 = vsub.f32 %v6096_v57, %v8306_v13  ;;  %v322_v1 = vld [vmem:[%s8298_s1 + $0x90] sm:$0xff]  ;;  %v323_v2 = vld [vmem:[%s8298_s1 + $0x98] sm:$0xff]  ;;  %v364_v13 = vld [vmem:[%s8299_s2 + $0xe0] sm:$0xff] }
  0x2c   : > { %8510 = vst [vmem:[#allocation19_spill] sm:$0xff] %v6131_v30  ;;  %v6145_v52 = vsub.f32 %v6101_v63, %v8305_v19  ;;  %v6148_v53 = vsub.f32 %v572_v14, %v6131_v30  ;;  %5367 = vmatpush3.msra.mxu1 %v5969_v36  ;;  %515 = vperm.xlu0 %5712, %v365_v16   ;;  %v8315_v5 = vand.u32 4294901760, %v6129_v29  ;;  %v6162_v9 = vand.u32 4294901760, %v575_v44 }
  0x2d   : > { %5224 = vmatmul.mubr.f32.gmra.mxu0 %v766_v59  ;;  %5270 = vmatmul.mubr.f32.gmra.mxu1 %v5926_v15  ;;  %v6164_v14 = vand.u32 4294901760, %v578_v45  ;;  %v581_v19 = vsel %vm528_vm0, %v321_v31, 0  ;;  %v796_v60 = vand.u32 4294901760, %v795_v3  ;;  %v587_v20 = vsel %vm528_vm0, %v323_v2, 0 }
  0x2e   : > { %5226 = vmatprep.mubr.f32.mxu0 %v776_v8  ;;  %5272 = vmatprep.mubr.f32.mxu1 %v5946_v24  ;;  %v8314_v59 = vand.u32 4294901760, %v6148_v53  ;;  %v6172_v16 = vand.u32 4294901760, %v581_v19  ;;  %v6178_v40 = vsub.f32 %v575_v44, %v6162_v9  ;;  %v584_v8 = vsel %vm528_vm0, %v322_v1, 0  ;;  %v345_v44 = vld [vmem:[%s8299_s2 + $0x48] sm:$0xff]  ;;  %v360_v24 = vld [vmem:[%s8299_s2 + $0xc0] sm:$0xff] }
  0x2f   : > { %8511 = vst [vmem:[#allocation20_spill] sm:$0xff] %v6164_v14  ;;  %v6181_v31 = vsub.f32 %v578_v45, %v6164_v14  ;;  %420 = vperm.xlu1 %5713, %v346_v58   ;;  %v806_v3 = vand.u32 4294901760, %v805_v49  ;;  %v816_v6 = vand.u32 4294901760, %v6145_v52  ;;  %v6190_v43 = vand.u32 4294901760, %v584_v8  ;;  %v325_v45 = vld [vmem:[%s8298_s1 + $0xa8] sm:$0xff]  ;;  %5368 = vmatprep.subr.mxu1 %v5971_v37  ;;  %v363_v58 = vld [vmem:[%s8299_s2 + $0xd8] sm:$0xff] }
  0x30   : > { %v6188_v47 = vsub.f32 %v581_v19, %v6172_v16  ;;  %510 = vperm.xlu0 %5712, %v364_v13   ;;  %v825_v46 = vsub.f32 %v6129_v29, %v8315_v5  ;;  %v8317_v19 = vand.u32 4294901760, %v6178_v40  ;;  %v6204_v49 = vand.u32 4294901760, %v587_v20  ;;  %5369 = vmatpush3.msra.mxu1 %v5971_v37 }
  0x31   : > { %8512 = vst [vmem:[#allocation21_spill] sm:$0xff] %v6190_v43  ;;  %5227 = vmatmul.mubr.f32.gmra.mxu0 %v786_v48  ;;  %5273 = vmatmul.mubr.f32.gmra.mxu1 %v5955_v26  ;;  %v590_v52 = vsel %vm528_vm0, %v324_v54, 0  ;;  %v835_v13 = vsub.f32 %v6148_v53, %v8314_v59  ;;  %v8323_v48 = vand.u32 4294901760, %v6181_v31  ;;  %v6216_v1 = vsub.f32 %v584_v8, %v6190_v43  ;;  %v326_v54 = vld [vmem:[%s8298_s1 + $0xb0] sm:$0xff]  ;;  %v344_v8 = vld [vmem:[%s8299_s2 + $0x40] sm:$0xff]  ;;  %v333_v26 = vld [vmem:[%s8298_s1 + $0xe8] sm:$0xff] }
  0x32   : > { %5229 = vmatprep.mubr.f32.mxu0 %v796_v60  ;;  %5275 = vmatprep.mubr.f32.mxu1 %v5957_v27  ;;  %v6218_v2 = vand.u32 4294901760, %v590_v52  ;;  %v593_v60 = vsel %vm528_vm0, %v325_v45, 0  ;;  %v845_v59 = vsub.f32 %v6178_v40, %v8317_v19  ;;  %v328_v45 = vld [vmem:[%s8298_s1 + $0xc0] sm:$0xff]  ;;  %v826_v19 = vand.u32 4294901760, %v825_v46  ;;  %v361_v27 = vld [vmem:[%s8299_s2 + $0xc8] sm:$0xff] }
  0x33   : > { %415 = vperm.xlu1 %5713, %v345_v44   ;;  %v6229_v38 = vand.u32 4294901760, %v593_v60  ;;  %v327_v44 = vld [vmem:[%s8298_s1 + $0xb8] sm:$0xff]  ;;  %5418 = vmatprep.subr.mxu0 %v6007_v55  ;;  %v6243_v34 = vsub.f32 %v587_v20, %v6204_v49  ;;  %v596_v33 = vsel %vm528_vm0, %v326_v54, 0  ;;  %v836_v5 = vand.u32 4294901760, %v835_v13  ;;  %v329_v20 = vld [vmem:[%s8298_s1 + $0xc8] sm:$0xff] }
  0x34   : > { %505 = vperm.xlu0 %5712, %v363_v58   ;;  %v6255_v46 = vsub.f32 %v590_v52, %v6218_v2  ;;  %v6260_v54 = vand.u32 4294901760, %v596_v33  ;;  %v602_v13 = vsel %vm528_vm0, %v328_v45, 0  ;;  %5470 = vmatprep.subr.mxu1 %v5969_v36  ;;  %v605_v45 = vsel %vm528_vm0, %v329_v20, 0  ;;  %v331_v20 = vld [vmem:[%s8298_s1 + $0xd8] sm:$0xff] }
  0x35   : > { %5230 = vmatmul.mubr.f32.gmra.mxu0 %v806_v3  ;;  %5276 = vmatmul.mubr.f32.gmra.mxu1 %v6027_v62  ;;  %v855_v3 = vsub.f32 %v6181_v31, %v8323_v48  ;;  %v8513_v48 = vand.u32 4294901760, %v6188_v47  ;;  %v6269_v52 = vsub.f32 %v593_v60, %v6229_v38  ;;  %v6284_v60 = vand.u32 4294901760, %v602_v13 }
  0x36   : > { %5232 = vmatprep.mubr.f32.mxu0 %v816_v6  ;;  %5278 = vmatprep.mubr.f32.mxu1 %v6037_v4  ;;  %v599_v6 = vsel %vm528_vm0, %v327_v44, 0  ;;  %v846_v4 = vand.u32 4294901760, %v845_v59  ;;  %v330_v44 = vld [vmem:[%s8298_s1 + $0xd0] sm:$0xff]  ;;  %vm3803_vm1 = vcmask 523264  }
  0x37   : > { %410 = vperm.xlu1 %5713, %v344_v8   ;;  %v865_v58 = vsub.f32 %v6188_v47, %v8513_v48  ;;  %v6271_v62 = vand.u32 4294901760, %v599_v6  ;;  %v343_v8 = vld [vmem:[%s8299_s2 + $0x38] sm:$0xff]  ;;  %v6282_v48 = vsub.f32 %v596_v33, %v6260_v54  ;;  %v608_v33 = vsel %vm528_vm0, %v330_v44, 0 }
  0x38   : > { %500 = vperm.xlu0 %5712, %v362_v32   ;;  %v856_v32 = vand.u32 4294901760, %v855_v3  ;;  %v342_v3 = vld [vmem:[%s8299_s2 + $0x30] sm:$0xff]  ;;  %v6317_v59 = vsub.f32 %v602_v13, %v6284_v60 }
  0x39   : > { %5233 = vmatmul.mubr.f32.gmra.mxu0 %v826_v19  ;;  %5279 = vmatmul.mubr.f32.gmra.mxu1 %v6054_v18  ;;  %v8514_v19 = vand.u32 4294901760, %v6216_v1  ;;  %v866_v44 = vand.u32 4294901760, %v865_v58 }
  0x3a   : > { %5235 = vmatprep.mubr.f32.mxu0 %v836_v5  ;;  %5281 = vmatprep.mubr.f32.mxu1 %v6060_v28  ;;  %v6301_v5 = vsub.f32 %v599_v6, %v6271_v62  ;;  %v6303_v28 = vand.u32 4294901760, %v605_v45 }
  0x3b   : > { %v875_v18 = vsub.f32 %v6216_v1, %v8514_v19  ;;  %405 = vperm.xlu1 %5713, %v343_v8   ;;  %v332_v8 = vld [vmem:[%s8298_s1 + $0xe0] sm:$0xff]  ;;  %v8515_v19 = vand.u32 4294901760, %v6243_v34 }
  0x3c   : > { %495 = vperm.xlu0 %5712, %v361_v27   ;;  %v614_v13 = vsel %vm528_vm0, %v332_v8, 0  ;;  %v6338_v15 = vsub.f32 %v605_v45, %v6303_v28  ;;  %v335_v45 = vld [vmem:[%s8298_s1 + $0xf8] sm:$0xff] }
  0x3d   : > { %5236 = vmatmul.mubr.f32.gmra.mxu0 %v846_v4  ;;  %5282 = vmatmul.mubr.f32.gmra.mxu1 %v6074_v42  ;;  %v885_v6 = vsub.f32 %v6243_v34, %v8515_v19  ;;  %v876_v27 = vand.u32 4294901760, %v875_v18  ;;  %v8516_v4 = vand.u32 4294901760, %v6255_v46  ;;  %v6326_v42 = vand.u32 4294901760, %v608_v33 }
  0x3e   : > { %5238 = vmatprep.mubr.f32.mxu0 %v856_v32  ;;  %5284 = vmatprep.mubr.f32.mxu1 %v6086_v51  ;;  %v611_v19 = vsel %vm528_vm0, %v331_v20, 0  ;;  %v8517_v32 = vand.u32 4294901760, %v6269_v52  ;;  %v341_v20 = vld [vmem:[%s8299_s2 + $0x28] sm:$0xff] }
  0x3f   : > { %v895_v58 = vsub.f32 %v6255_v46, %v8516_v4  ;;  %400 = vperm.xlu1 %5713, %v342_v3   ;;  %v334_v3 = vld [vmem:[%s8298_s1 + $0xf0] sm:$0xff]  ;;  %v886_v8 = vand.u32 4294901760, %v885_v6  ;;  %v8518_v4 = vand.u32 4294901760, %v6282_v48  ;;  %v6351_v18 = vand.u32 4294901760, %v611_v19 }
  0x40   : > { %v905_v51 = vsub.f32 %v6269_v52, %v8517_v32  ;;  %490 = vperm.xlu0 %5712, %v360_v24   ;;  %v6360_v6 = vand.u32 4294901760, %v614_v13 }
  0x41   : > { %5239 = vmatmul.mubr.f32.gmra.mxu0 %v866_v44  ;;  %5285 = vmatmul.mubr.f32.gmra.mxu1 %v6103_v0  ;;  %v915_v32 = vsub.f32 %v6282_v48, %v8518_v4  ;;  %v896_v24 = vand.u32 4294901760, %v895_v58  ;;  %v6358_v44 = vsub.f32 %v608_v33, %v6326_v42  ;;  %v617_v0 = vsel %vm528_vm0, %v333_v26, 0  ;;  %v340_v33 = vld [vmem:[%s8299_s2 + $0x20] sm:$0xff]  ;;  %v339_v58 = vld [vmem:[%s8299_s2 + $0x18] sm:$0xff] }
  0x42   : > { %5241 = vmatprep.mubr.f32.mxu0 %v876_v27  ;;  %5287 = vmatprep.mubr.f32.mxu1 %v6131_v30  ;;  %v620_v4 = vsel %vm528_vm0, %v334_v3, 0  ;;  %v906_v11 = vand.u32 4294901760, %v905_v51  ;;  %v8519_v27 = vand.u32 4294901760, %v6301_v5  ;;  %v6379_v51 = vsub.f32 %v611_v19, %v6351_v18 }
  0x43   : > { %395 = vperm.xlu1 %5713, %v341_v20   ;;  %v916_v26 = vand.u32 4294901760, %v915_v32  ;;  %v8520_v20 = vand.u32 4294901760, %v6317_v59  ;;  %v6381_v10 = vand.u32 4294901760, %v617_v0  ;;  %v6391_v32 = vand.u32 4294901760, %v620_v4 }
  0x44   : > { %v925_v30 = vsub.f32 %v6301_v5, %v8519_v27  ;;  %485 = vperm.xlu0 %5712, %v359_v12   ;;  %v358_v27 = vld [vmem:[%s8299_s2 + $0xb0] sm:$0xff] }
  0x45   : > { %5242 = vmatmul.mubr.f32.gmra.mxu0 %v886_v8  ;;  %5288 = vmatmul.mubr.f32.gmra.mxu1 %v6162_v9  ;;  %v935_v3 = vsub.f32 %v6317_v59, %v8520_v20  ;;  %v6389_v8 = vsub.f32 %v614_v13, %v6360_v6  ;;  %v623_v20 = vsel %vm528_vm0, %v335_v45, 0  ;;  %v6416_v13 = vsub.f32 %v620_v4, %v6391_v32  ;;  %v356_v4 = vld [vmem:[%s8299_s2 + $0xa0] sm:$0xff] }
  0x46   : > { %5244 = vmatprep.mubr.f32.mxu0 %v896_v24  ;;  %5290 = vmatprep.mubr.f32.mxu1 %v6164_v14  ;;  %v926_v19 = vand.u32 4294901760, %v925_v30  ;;  %v8521_v24 = vand.u32 4294901760, %v6338_v15  ;;  %v6403_v14 = vsub.f32 %v617_v0, %v6381_v10  ;;  %v6405_v45 = vand.u32 4294901760, %v623_v20  ;;  %v357_v30 = vld [vmem:[%s8299_s2 + $0xa8] sm:$0xff]  ;;  %v338_v0 = vld [vmem:[%s8299_s2 + $0x10] sm:$0xff] }
  0x47   : > { %390 = vperm.xlu1 %5713, %v340_v33   ;;  %v8522_v33 = vand.u32 4294901760, %v6358_v44 }
  0x48   : > { %480 = vperm.xlu0 %5712, %v358_v27   ;;  %v945_v12 = vsub.f32 %v6338_v15, %v8521_v24  ;;  %v6427_v24 = vsub.f32 %v623_v20, %v6405_v45  ;;  %v337_v20 = vld [vmem:[%s8299_s2 + $0x8] sm:$0xff] }
  0x49   : > { %5245 = vmatmul.mubr.f32.gmra.mxu0 %v906_v11  ;;  %5291 = vmatmul.mubr.f32.gmra.mxu1 %v6172_v16  ;;  %v936_v11 = vand.u32 4294901760, %v935_v3  ;;  %v955_v27 = vsub.f32 %v6358_v44, %v8522_v33  ;;  %v8523_v3 = vand.u32 4294901760, %v6379_v51  ;;  %v984_v33 = vand.u32 4294901760, %v6403_v14 }
  0x4a   : > { %5247 = vmatprep.mubr.f32.mxu0 %v916_v26  ;;  %5293 = vmatprep.mubr.f32.mxu1 %v6190_v43  ;;  %v946_v26 = vand.u32 4294901760, %v945_v12 }
  0x4b   : > { %385 = vperm.xlu1 %5713, %v339_v58   ;;  %v965_v43 = vsub.f32 %v6379_v51, %v8523_v3  ;;  %v956_v58 = vand.u32 4294901760, %v955_v27  ;;  %v1004_v27 = vand.u32 4294901760, %v6427_v24 }
  0x4c   : > { %475 = vperm.xlu0 %5712, %v357_v30   ;;  %v994_v30 = vand.u32 4294901760, %v6416_v13 }
  0x4d   : > { %5248 = vmatmul.mubr.f32.gmra.mxu0 %v926_v19  ;;  %5294 = vmatmul.mubr.f32.gmra.mxu1 %v6204_v49  ;;  %v8524_v19 = vand.u32 4294901760, %v6389_v8  ;;  %v966_v3 = vand.u32 4294901760, %v965_v43  ;;  %v336_v43 = vld [vmem:[%s8299_s2] sm:$0xff] }
  0x4e   : > { %5250 = vmatprep.mubr.f32.mxu0 %v936_v11  ;;  %5296 = vmatprep.mubr.f32.mxu1 %v6218_v2  ;;  %v985_v11 = vsub.f32 %v6403_v14, %v984_v33 }
  0x4f   : > { %v975_v12 = vsub.f32 %v6389_v8, %v8524_v19  ;;  %380 = vperm.xlu1 %5713, %v338_v0   ;;  %v355_v19 = vld [vmem:[%s8299_s2 + $0x98] sm:$0xff] }
  0x50   : > { %470 = vperm.xlu0 %5712, %v356_v4   ;;  %v986_v4 = vand.u32 4294901760, %v985_v11  ;;  %v353_v11 = vld [vmem:[%s8299_s2 + $0x88] sm:$0xff] }
  0x51   : > { %5251 = vmatmul.mubr.f32.gmra.mxu0 %v946_v26  ;;  %5297 = vmatmul.mubr.f32.gmra.mxu1 %v6229_v38  ;;  %v976_v0 = vand.u32 4294901760, %v975_v12  ;;  %v995_v26 = vsub.f32 %v6416_v13, %v994_v30  ;;  %v354_v12 = vld [vmem:[%s8299_s2 + $0x90] sm:$0xff] }
  0x52   : > { %5253 = vmatprep.mubr.f32.mxu0 %v956_v58  ;;  %5299 = vmatprep.mubr.f32.mxu1 %v6260_v54  ;;  %v1005_v58 = vsub.f32 %v6427_v24, %v1004_v27 }
  0x53   : > { %375 = vperm.xlu1 %5713, %v337_v20   ;;  %v996_v20 = vand.u32 4294901760, %v995_v26  ;;  %v8526_v26 = vand.u32 4294901760, %v5941_v22 }
  0x54   : > { %465 = vperm.xlu0 %5712, %v355_v19   ;;  %v352_v19 = vld [vmem:[%s8299_s2 + $0x80] sm:$0xff] }
  0x55   : > { %5254 = vmatmul.mubr.f32.gmra.mxu0 %v966_v3  ;;  %5300 = vmatmul.mubr.f32.gmra.mxu1 %v6271_v62  ;;  %v1006_v3 = vand.u32 4294901760, %v1005_v58  ;;  %v2466_v58 = vld [vmem:[%s8301_s4 + $0x8] sm:$0xff] }
  0x56   : > { %5256 = vmatprep.mubr.f32.mxu0 %v976_v0  ;;  %5302 = vmatprep.mubr.f32.mxu1 %v6284_v60  ;;  %v8525_v0 = vand.u32 4294901760, %v5938_v21 }
  0x57   : > { %370 = vperm.xlu1 %5713, %v336_v43   ;;  %v2468_v43 = vld [vmem:[%s8301_s4 + $0x18] sm:$0xff] }
  0x58   : > { %460 = vperm.xlu0 %5712, %v354_v12   ;;  %v2465_v12 = vld [vmem:[%s8301_s4] sm:$0xff] }
  0x59   : > { %5257 = vmatmul.mubr.f32.gmra.mxu0 %v986_v4  ;;  %5303 = vmatmul.mubr.f32.gmra.mxu1 %v6303_v28  ;;  %v2467_v4 = vld [vmem:[%s8301_s4 + $0x10] sm:$0xff] }
  0x5a   : > { %5259 = vmatprep.mubr.f32.mxu0 %v996_v20  ;;  %5305 = vmatprep.mubr.f32.mxu1 %v6326_v42  ;;  %v3779_v20 = vld [vmem:[%s8303_s6] sm:$0xff] }
  0x5c   : > { %455 = vperm.xlu0 %5712, %v353_v11   ;;  %v3781_v11 = vld [vmem:[%s8303_s6 + $0x10] sm:$0xff] }
  0x5d   : > { %5260 = vmatmul.mubr.f32.gmra.mxu0 %v1006_v3  ;;  %5306 = vmatmul.mubr.f32.gmra.mxu1 %v6351_v18  ;;  %v3780_v3 = vld [vmem:[%s8303_s6 + $0x8] sm:$0xff] }
  0x5e   : > { %5308 = vmatprep.mubr.f32.mxu1 %v6360_v6  ;;  %5318 = vmatprep.mubr.f32.mxu0 %v5938_v21  ;;  %v8528_v21 = vand.u32 4294901760, %v5953_v25 }
  0x60   : > { %450 = vperm.xlu0 %5712, %v352_v19   ;;  %v3782_v19 = vld [vmem:[%s8303_s6 + $0x18] sm:$0xff] }
  0x61   : > { %5309 = vmatmul.mubr.f32.gmra.mxu1 %v6381_v10  ;;  %5319 = vmatmul.mubr.f32.vlgmr.msra.gmra.mxu0 %v5941_v22  ;;  %v8529_v22 = vand.u32 4294901760, %v5967_v35 }
  0x62   : > { %5311 = vmatprep.mubr.f32.mxu1 %v6391_v32  ;;  %5321 = vmatprep.mubr.f32.mxu0 %v5944_v23 }
  0x63   : > { %5419 = vmatpush3.msra.mxu0 %v6007_v55  ;;  %v8527_v55 = vand.u32 4294901760, %v5944_v23  ;;  %v2471_v23 = vld [vmem:[%s8301_s4 + $0x30] sm:$0xff] }
  0x64   : > { %5420 = vmatprep.subr.mxu0 %v6010_v56  ;;  %2505 = vperm.xlu1 %5713, %v2471_v23  }
  0x65   : > { %5312 = vmatmul.mubr.f32.gmra.mxu1 %v6405_v45  ;;  %5322 = vmatmul.mubr.f32.gmra.mxu0 %v5953_v25  ;;  %v8530_v25 = vand.u32 4294901760, %v5975_v39 }
  0x66   : > { %5324 = vmatprep.mubr.f32.mxu0 %v5967_v35  ;;  %5370 = vmatprep.mubr.f32.mxu1 %v8525_v0  ;;  %v8531_v35 = vand.u32 4294901760, %v6025_v61  ;;  %v8541_v0 = vand.u32 4294901760, %v6181_v31 }
  0x67   : > { %5421 = vmatpush3.msra.mxu0 %v6010_v56  ;;  %v2472_v56 = vld [vmem:[%s8301_s4 + $0x38] sm:$0xff] }
  0x68   : > { %2510 = vperm.xlu0 %5712, %v2472_v56  }
  0x69   : > { %5325 = vmatmul.mubr.f32.gmra.mxu0 %v5975_v39  ;;  %5371 = vmatmul.mubr.f32.vlgmr.msra.gmra.mxu1 %v8526_v26  ;;  %v8532_v39 = vand.u32 4294901760, %v6044_v7  ;;  %v8543_v26 = vand.u32 4294901760, %v6216_v1 }
  0x6a   : > { %5327 = vmatprep.mubr.f32.mxu0 %v6025_v61  ;;  %5373 = vmatprep.mubr.f32.mxu1 %v8527_v55  ;;  %v8533_v61 = vand.u32 4294901760, %v6052_v17 }
  0x6b   : > { %5471 = vmatpush3.msra.mxu1 %v5969_v36  ;;  %v2470_v36 = vld [vmem:[%s8301_s4 + $0x28] sm:$0xff] }
  0x6c   : > { %5472 = vmatprep.subr.mxu1 %v5971_v37  ;;  %2500 = vperm.xlu0 %5712, %v2470_v36   ;;  %v8565_v36 = vld [vmem:[#allocation14_spill] sm:$0xff] }
  0x6d   : > { %5328 = vmatmul.mubr.f32.gmra.mxu0 %v6044_v7  ;;  %5374 = vmatmul.mubr.f32.gmra.mxu1 %v8528_v21  ;;  %v8534_v7 = vand.u32 4294901760, %v6072_v41 }
  0x6e   : > { %5330 = vmatprep.mubr.f32.mxu0 %v6052_v17  ;;  %5376 = vmatprep.mubr.f32.mxu1 %v8529_v22  ;;  %v8535_v17 = vand.u32 4294901760, %v6084_v50  ;;  %v8555_v22 = vld [vmem:[#allocation5_spill] sm:$0xff] }
  0x6f   : > { %5473 = vmatpush3.msra.mxu1 %v5971_v37  ;;  %v2469_v37 = vld [vmem:[%s8301_s4 + $0x20] sm:$0xff] }
  0x70   : > { %2495 = vperm.xlu1 %5713, %v2469_v37   ;;  %2490 = vperm.xlu0 %5712, %v2468_v43   ;;  %v8567_v37 = vld [vmem:[#allocation16_spill] sm:$0xff]  ;;  %v8568_v43 = vld [vmem:[#allocation17_spill] sm:$0xff] }
  0x71   : > { %5331 = vmatmul.mubr.f32.gmra.mxu0 %v6072_v41  ;;  %5377 = vmatmul.mubr.f32.gmra.mxu1 %v8530_v25  ;;  %v8536_v41 = vand.u32 4294901760, %v6096_v57 }
  0x72   : > { %5333 = vmatprep.mubr.f32.mxu0 %v6084_v50  ;;  %5379 = vmatprep.mubr.f32.mxu1 %v8531_v35  ;;  %v8537_v50 = vand.u32 4294901760, %v6101_v63  ;;  %v8566_v35 = vld [vmem:[#allocation15_spill] sm:$0xff] }
  0x74   : > { %2485 = vperm.xlu1 %5713, %v2467_v4   ;;  %2480 = vperm.xlu0 %5712, %v2466_v58   ;;  %v8569_v4 = vld [vmem:[#allocation18_spill] sm:$0xff] }
  0x75   : > { %5334 = vmatmul.mubr.f32.gmra.mxu0 %v6096_v57  ;;  %5380 = vmatmul.mubr.f32.gmra.mxu1 %v8532_v39  ;;  %v8538_v57 = vand.u32 4294901760, %v6129_v29 }
  0x76   : > { %5336 = vmatprep.mubr.f32.mxu0 %v6101_v63  ;;  %5382 = vmatprep.mubr.f32.mxu1 %v8533_v61  ;;  %v8539_v63 = vand.u32 4294901760, %v6148_v53 }
  0x78   : > { %2475 = vperm.xlu1 %5713, %v2465_v12   ;;  %3785 = vperm.xlu0 %5712, %v3779_v20   ;;  %v8572_v12 = vld [vmem:[#allocation20_spill] sm:$0xff]  ;;  %v8573_v20 = vld [vmem:[#allocation21_spill] sm:$0xff] }
  0x79   : > { %5337 = vmatmul.mubr.f32.gmra.mxu0 %v6129_v29  ;;  %5383 = vmatmul.mubr.f32.gmra.mxu1 %v8534_v7  ;;  %v8540_v29 = vand.u32 4294901760, %v6178_v40  ;;  %v8570_v7 = vld [vmem:[#allocation19_spill] sm:$0xff] }
  0x7a   : > { %5339 = vmatprep.mubr.f32.mxu0 %v6148_v53  ;;  %5385 = vmatprep.mubr.f32.mxu1 %v8535_v17  ;;  %v8542_v53 = vand.u32 4294901760, %v6188_v47 }
  0x7c   : > { %3790 = vperm.xlu1 %5713, %v3780_v3   ;;  %3795 = vperm.xlu0 %5712, %v3781_v11  }
  0x7d   : > { %5340 = vmatmul.mubr.f32.gmra.mxu0 %v6178_v40  ;;  %5386 = vmatmul.mubr.f32.gmra.mxu1 %v8536_v41  ;;  %v8544_v40 = vand.u32 4294901760, %v6243_v34 }
  0x7e   : > { %5342 = vmatprep.mubr.f32.mxu0 %v6181_v31  ;;  %5388 = vmatprep.mubr.f32.mxu1 %v8537_v50  ;;  %v8545_v31 = vand.u32 4294901760, %v6255_v46 }
  0x80   : > { %3800 = vperm.xlu1 %5713, %v3782_v19  }
  0x81   : > { %5343 = vmatmul.mubr.f32.gmra.mxu0 %v6188_v47  ;;  %5389 = vmatmul.mubr.f32.gmra.mxu1 %v8538_v57  ;;  %v8546_v47 = vand.u32 4294901760, %v6269_v52 }
  0x82   : > { %5345 = vmatprep.mubr.f32.mxu0 %v6216_v1  ;;  %5391 = vmatprep.mubr.f32.mxu1 %v8539_v63  ;;  %v8547_v1 = vand.u32 4294901760, %v6282_v48 }
  0x85   : > { %5346 = vmatmul.mubr.f32.gmra.mxu0 %v6243_v34  ;;  %5392 = vmatmul.mubr.f32.gmra.mxu1 %v8540_v29  ;;  %v8549_v34 = vand.u32 4294901760, %v6301_v5 }
  0x86   : > { %5348 = vmatprep.mubr.f32.mxu0 %v6255_v46  ;;  %5394 = vmatprep.mubr.f32.mxu1 %v8541_v0  ;;  %v8550_v46 = vand.u32 4294901760, %v6317_v59 }
  0x89   : > { %5349 = vmatmul.mubr.f32.gmra.mxu0 %v6269_v52  ;;  %5395 = vmatmul.mubr.f32.gmra.mxu1 %v8542_v53  ;;  %v8551_v52 = vand.u32 4294901760, %v6338_v15 }
  0x8a   : > { %5351 = vmatprep.mubr.f32.mxu0 %v6282_v48  ;;  %5397 = vmatprep.mubr.f32.mxu1 %v8543_v26  ;;  %v8552_v48 = vand.u32 4294901760, %v6358_v44 }
  0x8d   : > { %5352 = vmatmul.mubr.f32.gmra.mxu0 %v6301_v5  ;;  %5398 = vmatmul.mubr.f32.gmra.mxu1 %v8544_v40  ;;  %v8553_v5 = vand.u32 4294901760, %v6379_v51 }
  0x8e   : > { %5354 = vmatprep.mubr.f32.mxu0 %v6317_v59  ;;  %5400 = vmatprep.mubr.f32.mxu1 %v8545_v31  ;;  %v8554_v59 = vand.u32 4294901760, %v6389_v8 }
  0x91   : > { %5355 = vmatmul.mubr.f32.gmra.mxu0 %v6338_v15  ;;  %5401 = vmatmul.mubr.f32.gmra.mxu1 %v8546_v47  ;;  %v8556_v15 = vld [vmem:[#allocation6_spill] sm:$0xff] }
  0x92   : > { %5357 = vmatprep.mubr.f32.mxu0 %v6358_v44  ;;  %5403 = vmatprep.mubr.f32.mxu1 %v8547_v1  ;;  %v8557_v44 = vld [vmem:[#allocation7_spill] sm:$0xff] }
  0x94   : > { %v6591_v55 = vpop.permute.xlu1 %520 }
  0x95   : > { %8548 = vst [vmem:[#allocation22_spill] sm:$0xff] %v6591_v55  ;;  %5358 = vmatmul.mubr.f32.gmra.mxu0 %v6379_v51  ;;  %5404 = vmatmul.mubr.f32.gmra.mxu1 %v8549_v34  ;;  %v8558_v51 = vld [vmem:[#allocation8_spill] sm:$0xff] }
  0x96   : > { %5360 = vmatprep.mubr.f32.mxu0 %v6389_v8  ;;  %5406 = vmatprep.mubr.f32.mxu1 %v8550_v46  ;;  %v8559_v8 = vld [vmem:[#allocation9_spill] sm:$0xff] }
  0x98   : > { %v6599_v21 = vpop.permute.xlu1 %440 }
  0x99   : > { %5361 = vmatmul.mubr.f32.gmra.mxu0 %v6403_v14  ;;  %5407 = vmatmul.mubr.f32.gmra.mxu1 %v8551_v52  ;;  %v8560_v14 = vld [vmem:[#allocation10_spill] sm:$0xff]  ;;  %v6640_v25 = vpop.permute.xlu0 %525 }
  0x9a   : > { %5363 = vmatprep.mubr.f32.mxu0 %v6416_v13  ;;  %5409 = vmatprep.mubr.f32.mxu1 %v8552_v48  ;;  %v8561_v13 = vld [vmem:[#allocation11_spill] sm:$0xff] }
  0x9c   : > { %v6610_v56 = vpop.permute.xlu1 %435 }
  0x9d   : > { %5364 = vmatmul.mubr.f32.gmra.mxu0 %v6427_v24  ;;  %5410 = vmatmul.mubr.f32.gmra.mxu1 %v8553_v5  ;;  %v8563_v24 = vld [vmem:[#allocation13_spill] sm:$0xff] }
  0x9e   : > { %5412 = vmatprep.mubr.f32.mxu1 %v8554_v59  ;;  %5422 = vmatprep.mubr.f32.mxu0 %v8555_v22 }
  0x9f   : > { %v6652_v61 = vpop.permute.xlu0 %445 }
  0xa1   : > { %5413 = vmatmul.mubr.f32.gmra.mxu1 %v984_v33  ;;  %5423 = vmatmul.mubr.f32.vlgmr.msra.gmra.mxu0 %v8556_v15 }
  0xa2   : > { %5415 = vmatprep.mubr.f32.mxu1 %v994_v30  ;;  %5425 = vmatprep.mubr.f32.mxu0 %v8557_v44  ;;  %v6621_v23 = vpop.permute.xlu1 %430  ;;  %v8562_v30 = vld [vmem:[#allocation12_spill] sm:$0xff] }
  0xa5   : > { %5416 = vmatmul.mubr.f32.gmra.mxu1 %v1004_v27  ;;  %5426 = vmatmul.mubr.f32.gmra.mxu0 %v8558_v51 }
  0xa6   : > { %5428 = vmatprep.mubr.f32.mxu0 %v8559_v8  ;;  %5474 = vmatprep.mubr.f32.mxu1 %v8555_v22  ;;  %v6630_v33 = vpop.permute.xlu1 %425 }
  0xa7   : > { %v6660_v17 = vpop.permute.xlu0 %515 }
  0xa9   : > { %5429 = vmatmul.mubr.f32.gmra.mxu0 %v8560_v14  ;;  %5475 = vmatmul.mubr.f32.vlgmr.msra.gmra.mxu1 %v8556_v15 }
  0xaa   : > { %5431 = vmatprep.mubr.f32.mxu0 %v8561_v13  ;;  %5477 = vmatprep.mubr.f32.mxu1 %v8557_v44  ;;  %v6638_v27 = vpop.permute.xlu1 %420 }
  0xab   : > { %8564 = vst [vmem:[#allocation5_spill] sm:$0xff] %v6638_v27  ;;  %v6672_v50 = vpop.permute.xlu0 %510 }
  0xad   : > { %5432 = vmatmul.mubr.f32.gmra.mxu0 %v8562_v30  ;;  %5478 = vmatmul.mubr.f32.gmra.mxu1 %v8558_v51 }
  0xae   : > { %5434 = vmatprep.mubr.f32.mxu0 %v8563_v24  ;;  %5480 = vmatprep.mubr.f32.mxu1 %v8559_v8  ;;  %v6648_v39 = vpop.permute.xlu1 %415 }
  0xaf   : > { %v6680_v57 = vpop.permute.xlu0 %505 }
  0xb1   : > { %5435 = vmatmul.mubr.f32.gmra.mxu0 %v8565_v36  ;;  %5481 = vmatmul.mubr.f32.gmra.mxu1 %v8560_v14 }
  0xb2   : > { %5437 = vmatprep.mubr.f32.mxu0 %v8566_v35  ;;  %5483 = vmatprep.mubr.f32.mxu1 %v8561_v13  ;;  %v6658_v58 = vpop.permute.xlu1 %410 }
  0xb3   : > { %8571 = vst [vmem:[#allocation6_spill] sm:$0xff] %v6658_v58  ;;  %v6690_v11 = vpop.permute.xlu0 %500 }
  0xb5   : > { %5438 = vmatmul.mubr.f32.gmra.mxu0 %v8567_v37  ;;  %5484 = vmatmul.mubr.f32.gmra.mxu1 %v8562_v30 }
  0xb6   : > { %5440 = vmatprep.mubr.f32.mxu0 %v8568_v43  ;;  %5486 = vmatprep.mubr.f32.mxu1 %v8563_v24  ;;  %v6668_v41 = vpop.permute.xlu1 %405 }
  0xb7   : > { %v6698_v63 = vpop.permute.xlu0 %495 }
  0xb9   : > { %5441 = vmatmul.mubr.f32.gmra.mxu0 %v8569_v4  ;;  %5487 = vmatmul.mubr.f32.gmra.mxu1 %v8565_v36 }
  0xba   : > { %5443 = vmatprep.mubr.f32.mxu0 %v8570_v7  ;;  %5489 = vmatprep.mubr.f32.mxu1 %v8566_v35  ;;  %v6678_v3 = vpop.permute.xlu1 %400 }
  0xbb   : > { %8574 = vst [vmem:[#allocation7_spill] sm:$0xff] %v6678_v3 }
  0xbd   : > { %5444 = vmatmul.mubr.f32.gmra.mxu0 %v6162_v9  ;;  %5490 = vmatmul.mubr.f32.gmra.mxu1 %v8567_v37 }
  0xbe   : > { %5446 = vmatprep.mubr.f32.mxu0 %v8572_v12  ;;  %5492 = vmatprep.mubr.f32.mxu1 %v8568_v43 }
  0xc1   : > { %5447 = vmatmul.mubr.f32.gmra.mxu0 %v6172_v16  ;;  %5493 = vmatmul.mubr.f32.gmra.mxu1 %v8569_v4 }
  0xc2   : > { %5449 = vmatprep.mubr.f32.mxu0 %v8573_v20  ;;  %5495 = vmatprep.mubr.f32.mxu1 %v8570_v7 }
  0xc5   : > { %5450 = vmatmul.mubr.f32.gmra.mxu0 %v6204_v49  ;;  %5496 = vmatmul.mubr.f32.gmra.mxu1 %v6162_v9  ;;  %v396_v9 = vpop.permute.xlu1 %395 }
  0xc6   : > { %5452 = vmatprep.mubr.f32.mxu0 %v6218_v2  ;;  %5498 = vmatprep.mubr.f32.mxu1 %v8572_v12 }
  0xc9   : > { %5453 = vmatmul.mubr.f32.gmra.mxu0 %v6229_v38  ;;  %5499 = vmatmul.mubr.f32.gmra.mxu1 %v6172_v16  ;;  %v6696_v16 = vpop.permute.xlu1 %390 }
  0xca   : > { %5455 = vmatprep.mubr.f32.mxu0 %v6260_v54  ;;  %5501 = vmatprep.mubr.f32.mxu1 %v8573_v20 }
  0xcd   : > { %5456 = vmatmul.mubr.f32.gmra.mxu0 %v6271_v62  ;;  %5502 = vmatmul.mubr.f32.gmra.mxu1 %v6204_v49  ;;  %v6708_v49 = vpop.permute.xlu0 %490 }
  0xce   : > { %5458 = vmatprep.mubr.f32.mxu0 %v6284_v60  ;;  %5504 = vmatprep.mubr.f32.mxu1 %v6218_v2 }
  0xd1   : > { %5459 = vmatmul.mubr.f32.gmra.mxu0 %v6303_v28  ;;  %5505 = vmatmul.mubr.f32.gmra.mxu1 %v6229_v38  ;;  %v386_v38 = vpop.permute.xlu1 %385  ;;  %v6715_v2 = vpop.permute.xlu0 %485 }
  0xd2   : > { %5461 = vmatprep.mubr.f32.mxu0 %v6326_v42  ;;  %5507 = vmatprep.mubr.f32.mxu1 %v6260_v54 }
  0xd5   : > { %5462 = vmatmul.mubr.f32.gmra.mxu0 %v6351_v18  ;;  %5508 = vmatmul.mubr.f32.gmra.mxu1 %v6271_v62  ;;  %v6713_v62 = vpop.permute.xlu1 %380  ;;  %v6722_v29 = vpop.permute.xlu0 %480 }
  0xd6   : > { %5464 = vmatprep.mubr.f32.mxu0 %v6360_v6  ;;  %5510 = vmatprep.mubr.f32.mxu1 %v6284_v60 }
  0xd9   : > { %5465 = vmatmul.mubr.f32.gmra.mxu0 %v6381_v10  ;;  %5511 = vmatmul.mubr.f32.gmra.mxu1 %v6303_v28 }
  0xda   : > { %5467 = vmatprep.mubr.f32.mxu0 %v6391_v32  ;;  %5513 = vmatprep.mubr.f32.mxu1 %v6326_v42  ;;  %v376_v42 = vpop.permute.xlu1 %375 }
  0xdd   : > { %5468 = vmatmul.mubr.f32.gmra.mxu0 %v6405_v45  ;;  %5514 = vmatmul.mubr.f32.gmra.mxu1 %v6351_v18 }
  0xde   : > { %5516 = vmatprep.mubr.f32.mxu1 %v6360_v6 }
  0xe1   : > { %v5216_v54 = vpop.f32.mrf.mxu0  ;;  %5517 = vmatmul.mubr.f32.gmra.mxu1 %v6381_v10 }
  0xe2   : > { %5519 = vmatprep.mubr.f32.mxu1 %v6391_v32  ;;  %v709_v19 = vadd.f32 %v5216_v54, %v376_v42  ;;  %v476_v32 = vpop.permute.xlu0 %475 }
  0xe3   : > { %v6719_v28 = vpop.f32.mrf.mxu0 }
  0xe5   : > { %v5219_v60 = vpop.f32.mrf.mxu0  ;;  %5520 = vmatmul.mubr.f32.gmra.mxu1 %v6405_v45 }
  0xe6   : > { %v729_v53 = vadd.f32 %v5219_v60, %v386_v38  ;;  %v6741_v22 = vpop.permute.xlu0 %470 }
  0xe7   : > { %v6724_v18 = vpop.f32.mrf.mxu0 }
  0xe9   : > { %v5222_v6 = vpop.f32.mrf.mxu0  ;;  %v5268_v0 = vpop.f32.mrf.mxu1 }
  0xea   : > { %v6726_v26 = vadd.f32 %v5268_v0, %v709_v19  ;;  %v749_v1 = vadd.f32 %v5222_v6, %v396_v9  ;;  %v466_v36 = vpop.permute.xlu0 %465 }
  0xeb   : > { %v6728_v40 = vpop.f32.mrf.mxu0  ;;  %v6730_v10 = vpop.f32.mrf.mxu1 }
  0xed   : > { %v5225_v31 = vpop.f32.mrf.mxu0  ;;  %v5271_v47 = vpop.f32.mrf.mxu1 }
  0xee   : > { %v6732_v34 = vadd.f32 %v5271_v47, %v729_v53  ;;  %v769_v5 = vadd.f32 %v5225_v31, %v6668_v41  ;;  %v6764_v38 = vpop.permute.xlu0 %460 }
  0xef   : > { %v6734_v45 = vpop.f32.mrf.mxu0  ;;  %v6736_v46 = vpop.f32.mrf.mxu1 }
  0xf0   : > { %8575 = vst [vmem:[#allocation8_spill] sm:$0xff] %v6734_v45 }
  0xf1   : > { %v5228_v52 = vpop.f32.mrf.mxu0  ;;  %v5274_v48 = vpop.f32.mrf.mxu1 }
  0xf2   : > { %v6739_v59 = vadd.f32 %v5274_v48, %v749_v1  ;;  %v789_v14 = vadd.f32 %v5228_v52, %v6648_v39  ;;  %v456_v31 = vpop.permute.xlu0 %455 }
  0xf3   : > { %v6743_v15 = vpop.f32.mrf.mxu0  ;;  %v6745_v44 = vpop.f32.mrf.mxu1 }
  0xf4   : > { %8576 = vst [vmem:[#allocation9_spill] sm:$0xff] %v6743_v15  ;;  %8577 = vst [vmem:[#allocation10_spill] sm:$0xff] %v6745_v44 }
  0xf5   : > { %v5231_v51 = vpop.f32.mrf.mxu0  ;;  %v5277_v8 = vpop.f32.mrf.mxu1 }
  0xf6   : > { %v6748_v13 = vadd.f32 %v5277_v8, %v769_v5  ;;  %v809_v43 = vadd.f32 %v5231_v51, %v6630_v33 }
  0xf7   : > { %v6750_v30 = vpop.f32.mrf.mxu0  ;;  %v6752_v24 = vpop.f32.mrf.mxu1 }
  0xf8   : > { %8578 = vst [vmem:[#allocation11_spill] sm:$0xff] %v6750_v30  ;;  %8579 = vst [vmem:[#allocation12_spill] sm:$0xff] %v6752_v24 }
  0xf9   : > { %v5234_v35 = vpop.f32.mrf.mxu0  ;;  %v5280_v37 = vpop.f32.mrf.mxu1 }
  0xfa   : > { %v6755_v4 = vadd.f32 %v5280_v37, %v789_v14  ;;  %v829_v39 = vadd.f32 %v5234_v35, %v6610_v56 }
  0xfb   : > { %v6757_v7 = vpop.f32.mrf.mxu0  ;;  %v6759_v12 = vpop.f32.mrf.mxu1 }
  0xfc   : > { %8580 = vst [vmem:[#allocation13_spill] sm:$0xff] %v6759_v12 }
  0xfd   : > { %v5237_v41 = vpop.f32.mrf.mxu0  ;;  %v5283_v20 = vpop.f32.mrf.mxu1 }
  0xfe   : > { %v6762_v9 = vadd.f32 %v5283_v20, %v809_v43  ;;  %v849_v19 = vadd.f32 %v5237_v41, %v6652_v61 }
  0xff   : > { %v6766_v54 = vpop.f32.mrf.mxu0  ;;  %v6768_v42 = vpop.f32.mrf.mxu1 }
 0x100   : > { %8581 = vst [vmem:[#allocation14_spill] sm:$0xff] %v6768_v42 }
 0x101   : > { %v5240_v60 = vpop.f32.mrf.mxu0  ;;  %v5286_v33 = vpop.f32.mrf.mxu1 }
 0x102   : > { %v6771_v6 = vadd.f32 %v5286_v33, %v829_v39  ;;  %v869_v1 = vadd.f32 %v5240_v60, %v456_v31 }
 0x103   : > { %v6773_v0 = vpop.f32.mrf.mxu0  ;;  %v6775_v53 = vpop.f32.mrf.mxu1 }
 0x105   : > { %v5243_v56 = vpop.f32.mrf.mxu0  ;;  %v5289_v47 = vpop.f32.mrf.mxu1 }
 0x106   : > { %v6777_v52 = vadd.f32 %v5289_v47, %v849_v19  ;;  %v889_v14 = vadd.f32 %v5243_v56, %v466_v36 }
 0x107   : > { %v6779_v48 = vpop.f32.mrf.mxu0  ;;  %v6781_v5 = vpop.f32.mrf.mxu1 }
 0x109   : > { %v5246_v51 = vpop.f32.mrf.mxu0  ;;  %v5292_v8 = vpop.f32.mrf.mxu1 }
 0x10a   : > { %v6783_v61 = vadd.f32 %v5292_v8, %v869_v1  ;;  %v909_v20 = vadd.f32 %v5246_v51, %v476_v32 }
 0x10b   : > { %v6785_v35 = vpop.f32.mrf.mxu0  ;;  %v6787_v37 = vpop.f32.mrf.mxu1 }
 0x10d   : > { %v5249_v43 = vpop.f32.mrf.mxu0  ;;  %v5295_v41 = vpop.f32.mrf.mxu1 }
 0x10e   : > { %v6789_v39 = vadd.f32 %v5295_v41, %v889_v14  ;;  %v929_v47 = vadd.f32 %v5249_v43, %v6715_v2 }
 0x10f   : > { %v6791_v60 = vpop.f32.mrf.mxu0  ;;  %v6793_v33 = vpop.f32.mrf.mxu1 }
 0x111   : > { %v5252_v19 = vpop.f32.mrf.mxu0  ;;  %v5298_v31 = vpop.f32.mrf.mxu1 }
 0x112   : > { %v6796_v36 = vadd.f32 %v5298_v31, %v909_v20  ;;  %v949_v32 = vadd.f32 %v5252_v19, %v6698_v63 }
 0x113   : > { %v6798_v56 = vpop.f32.mrf.mxu0  ;;  %v6800_v1 = vpop.f32.mrf.mxu1 }
 0x115   : > { %v5255_v8 = vpop.f32.mrf.mxu0  ;;  %v5301_v55 = vpop.f32.mrf.mxu1 }
 0x116   : > { %v6803_v51 = vadd.f32 %v5301_v55, %v929_v47  ;;  %v969_v2 = vadd.f32 %v5255_v8, %v6680_v57 }
 0x117   : > { %v6805_v14 = vpop.f32.mrf.mxu0  ;;  %v6807_v41 = vpop.f32.mrf.mxu1 }
 0x119   : > { %v5258_v42 = vpop.f32.mrf.mxu0  ;;  %v5304_v12 = vpop.f32.mrf.mxu1 }
 0x11a   : > { %v6810_v43 = vadd.f32 %v5304_v12, %v949_v32  ;;  %v989_v63 = vadd.f32 %v5258_v42, %v6660_v17 }
 0x11b   : > { %v6812_v20 = vpop.f32.mrf.mxu0  ;;  %v6814_v31 = vpop.f32.mrf.mxu1 }
 0x11d   : > { %v5261_v30 = vpop.f32.mrf.mxu0  ;;  %v5307_v27 = vpop.f32.mrf.mxu1 }
 0x11e   : > { %v6817_v55 = vadd.f32 %v5307_v27, %v969_v2  ;;  %v1009_v57 = vadd.f32 %v5261_v30, %v6640_v25 }
 0x11f   : > { %v6819_v19 = vpop.f32.mrf.mxu0  ;;  %v6821_v47 = vpop.f32.mrf.mxu1 }
 0x120   : > { %8582 = vst [vmem:[#allocation15_spill] sm:$0xff] %v6819_v19 }
 0x121   : > { %v5310_v15 = vpop.f32.mrf.mxu1  ;;  %v5320_v58 = vpop.f32.mrf.mxu0 }
 0x122   : > { %v6824_v12 = vadd.f32 %v5310_v15, %v989_v63  ;;  %v1359_v8 = vadd.f32 %v5320_v58, %v6726_v26 }
 0x123   : > { %v6827_v32 = vpop.f32.mrf.mxu1  ;;  %v6829_v24 = vpop.f32.mrf.mxu0 }
 0x125   : > { %v5313_v45 = vpop.f32.mrf.mxu1  ;;  %v5323_v17 = vpop.f32.mrf.mxu0 }
 0x126   : > { %v6831_v27 = vadd.f32 %v5313_v45, %v1009_v57  ;;  %v1373_v42 = vadd.f32 %v5323_v17, %v6732_v34 }
 0x127   : > { %v6834_v2 = vpop.f32.mrf.mxu1  ;;  %v6836_v19 = vpop.f32.mrf.mxu0 }
 0x128   : > { %8583 = vst [vmem:[#allocation16_spill] sm:$0xff] %v6831_v27  ;;  %8584 = vst [vmem:[#allocation17_spill] sm:$0xff] %v6834_v2 }
 0x129   : > { %8585 = vst [vmem:[#allocation18_spill] sm:$0xff] %v6836_v19  ;;  %v5326_v3 = vpop.f32.mrf.mxu0  ;;  %v5372_v25 = vpop.f32.mrf.mxu1 }
 0x12a   : > { %v1387_v15 = vadd.f32 %v5326_v3, %v6739_v59  ;;  %v6839_v30 = vadd.f32 %v5372_v25, %v1359_v8 }
 0x12b   : > { %v6841_v58 = vpop.f32.mrf.mxu0  ;;  %v6843_v26 = vpop.f32.mrf.mxu1 }
 0x12c   : > { %8586 = vst [vmem:[#allocation19_spill] sm:$0xff] %v6841_v58 }
 0x12d   : > { %v5329_v63 = vpop.f32.mrf.mxu0  ;;  %v5375_v44 = vpop.f32.mrf.mxu1 }
 0x12e   : > { %v1401_v45 = vadd.f32 %v5329_v63, %v6748_v13  ;;  %v6846_v57 = vadd.f32 %v5375_v44, %v1373_v42 }
 0x12f   : > { %v6848_v34 = vpop.f32.mrf.mxu0  ;;  %v6850_v17 = vpop.f32.mrf.mxu1 }
 0x130   : > { %8587 = vst [vmem:[#allocation20_spill] sm:$0xff] %v6848_v34  ;;  %8588 = vst [vmem:[#allocation21_spill] sm:$0xff] %v6850_v17 }
 0x131   : > { %v5332_v27 = vpop.f32.mrf.mxu0  ;;  %v5378_v2 = vpop.f32.mrf.mxu1 }
 0x132   : > { %v1415_v3 = vadd.f32 %v5332_v27, %v6755_v4  ;;  %v6853_v59 = vadd.f32 %v5378_v2, %v1387_v15 }
 0x133   : > { %v6855_v8 = vpop.f32.mrf.mxu0  ;;  %v6857_v25 = vpop.f32.mrf.mxu1 }
 0x134   : > { %8589 = vst [vmem:[#allocation23_spill] sm:$0xff] %v6855_v8  ;;  %8590 = vst [vmem:[#allocation24_spill] sm:$0xff] %v6857_v25 }
 0x135   : > { %v5335_v58 = vpop.f32.mrf.mxu0  ;;  %v5381_v19 = vpop.f32.mrf.mxu1 }
 0x136   : > { %v1429_v13 = vadd.f32 %v5335_v58, %v6762_v9  ;;  %v6860_v44 = vadd.f32 %v5381_v19, %v1401_v45  ;;  %v819_v9 = vadd.f32 %v6757_v7, %v6621_v23 }
 0x137   : > { %v6862_v42 = vpop.f32.mrf.mxu0  ;;  %v6864_v63 = vpop.f32.mrf.mxu1 }
 0x138   : > { %8591 = vst [vmem:[#allocation25_spill] sm:$0xff] %v6862_v42  ;;  %8592 = vst [vmem:[#allocation26_spill] sm:$0xff] %v6864_v63  ;;  %v1162_v63 = vadd.f32 %v6775_v53, %v819_v9 }
 0x139   : > { %v5338_v34 = vpop.f32.mrf.mxu0  ;;  %v5384_v17 = vpop.f32.mrf.mxu1 }
 0x13a   : > { %v1443_v4 = vadd.f32 %v5338_v34, %v6771_v6  ;;  %v6867_v27 = vadd.f32 %v5384_v17, %v1415_v3  ;;  %v839_v6 = vadd.f32 %v6766_v54, %v6599_v21  ;;  %v2450_v3 = vld [vmem:[%s8300_s3 + $0x8] sm:$0xff] }
 0x13b   : > { %v1435_v2 = vpop.f32.mrf.mxu0  ;;  %v6869_v15 = vpop.f32.mrf.mxu1 }
 0x13c   : > { %8593 = vst [vmem:[#allocation27_spill] sm:$0xff] %v6867_v27  ;;  %v451_v27 = vpop.permute.xlu0 %450  ;;  %v1436_v23 = vadd.f32 %v1435_v2, %v1162_v63  ;;  %v1174_v53 = vadd.f32 %v6781_v5, %v839_v6 }
 0x13d   : > { %v5341_v8 = vpop.f32.mrf.mxu0  ;;  %v5387_v25 = vpop.f32.mrf.mxu1  ;;  %v859_v54 = vadd.f32 %v6773_v0, %v451_v27  ;;  %v879_v0 = vadd.f32 %v6779_v48, %v6764_v38  ;;  %v899_v38 = vadd.f32 %v6785_v35, %v6741_v22 }
 0x13e   : > { %v1457_v19 = vadd.f32 %v5341_v8, %v6777_v52  ;;  %v6874_v58 = vadd.f32 %v5387_v25, %v1429_v13  ;;  %v6887_v8 = vand.u32 4294901760, %v2450_v3 }
 0x13f   : > { %v1449_v45 = vpop.f32.mrf.mxu0  ;;  %v6876_v42 = vpop.f32.mrf.mxu1  ;;  %v1186_v6 = vadd.f32 %v6787_v37, %v859_v54  ;;  %v1198_v37 = vadd.f32 %v6793_v33, %v879_v0 }
 0x140   : > { %8595 = vst [vmem:[#allocation29_spill] sm:$0xff] %v6887_v8  ;;  %v6893_v21 = vsub.f32 %v2450_v3, %v6887_v8  ;;  %2955 = vmatprep.mubr.f32.mxu1 %v6887_v8  ;;  %v8626_v8 = vld [vmem:[#allocation13_spill] sm:$0xff] }
 0x141   : > { %v5344_v34 = vpop.f32.mrf.mxu0  ;;  %v5390_v17 = vpop.f32.mrf.mxu1 }
 0x142   : > { %v1471_v7 = vadd.f32 %v5344_v34, %v6783_v61  ;;  %v6885_v52 = vadd.f32 %v5390_v17, %v1443_v4  ;;  %8596 = vst [vmem:[#allocation30_spill] sm:$0xff] %v6893_v21  ;;  %v1450_v61 = vadd.f32 %v1449_v45, %v1174_v53  ;;  %v8356_v17 = vand.u32 4294901760, %v6893_v21 }
 0x143   : > { %v1463_v25 = vpop.f32.mrf.mxu0  ;;  %v1739_v13 = vpop.f32.mrf.mxu1 }
 0x144   : > { %8594 = vst [vmem:[#allocation28_spill] sm:$0xff] %v6885_v52  ;;  %v6890_v9 = vadd.f32 %v1739_v13, %v1436_v23  ;;  %v2612_v3 = vsub.f32 %v6893_v21, %v8356_v17 }
 0x145   : > { %v5347_v63 = vpop.f32.mrf.mxu0  ;;  %v5393_v2 = vpop.f32.mrf.mxu1 }
 0x146   : > { %v1485_v4 = vadd.f32 %v5347_v63, %v6789_v39  ;;  %v6898_v34 = vadd.f32 %v5393_v2, %v1457_v19  ;;  %v1464_v39 = vadd.f32 %v1463_v25, %v1186_v6  ;;  %v2613_v53 = vand.u32 4294901760, %v2612_v3 }
 0x147   : > { %v1477_v52 = vpop.f32.mrf.mxu0  ;;  %v1755_v5 = vpop.f32.mrf.mxu1  ;;  %v1210_v3 = vadd.f32 %v6800_v1, %v899_v38 }
 0x148   : > { %v6902_v23 = vadd.f32 %v1755_v5, %v1450_v61  ;;  %2614 = vmatprep.mubr.f32.mxu0 %v2613_v53  ;;  %v1478_v48 = vadd.f32 %v1477_v52, %v1198_v37  ;;  %v939_v37 = vadd.f32 %v6798_v56, %v6708_v49 }
 0x149   : > { %v5350_v27 = vpop.f32.mrf.mxu0  ;;  %v5396_v45 = vpop.f32.mrf.mxu1 }
 0x14a   : > { %v1499_v19 = vadd.f32 %v5350_v27, %v6796_v36  ;;  %v6910_v13 = vadd.f32 %v5396_v45, %v1471_v7  ;;  %v919_v45 = vadd.f32 %v6791_v60, %v6722_v29 }
 0x14b   : > { %v1491_v63 = vpop.f32.mrf.mxu0  ;;  %v1771_v2 = vpop.f32.mrf.mxu1 }
 0x14c   : > { %v6913_v54 = vadd.f32 %v1771_v2, %v1464_v39  ;;  %v1492_v39 = vadd.f32 %v1491_v63, %v1210_v3  ;;  %v1222_v52 = vadd.f32 %v6807_v41, %v919_v45  ;;  %v979_v45 = vadd.f32 %v6812_v20, %v6672_v50 }
 0x14d   : > { %v5353_v61 = vpop.f32.mrf.mxu0  ;;  %v5399_v5 = vpop.f32.mrf.mxu1 }
 0x14e   : > { %v1513_v25 = vadd.f32 %v5353_v61, %v6803_v51  ;;  %v6918_v6 = vadd.f32 %v5399_v5, %v1485_v4 }
 0x14f   : > { %v1505_v36 = vpop.f32.mrf.mxu0  ;;  %v1787_v7 = vpop.f32.mrf.mxu1 }
 0x150   : > { %v6921_v27 = vadd.f32 %v1787_v7, %v1478_v48  ;;  %v1506_v61 = vadd.f32 %v1505_v36, %v1222_v52  ;;  %v959_v48 = vadd.f32 %v6805_v14, %v6690_v11 }
 0x151   : > { %v5356_v33 = vpop.f32.mrf.mxu0  ;;  %v5402_v0 = vpop.f32.mrf.mxu1 }
 0x152   : > { %v1527_v53 = vadd.f32 %v5356_v33, %v6810_v43  ;;  %v6926_v22 = vadd.f32 %v5402_v0, %v1499_v19  ;;  %v1234_v19 = vadd.f32 %v6814_v31, %v939_v37  ;;  %v371_v0 = vpop.permute.xlu1 %370 }
 0x153   : > { %v1519_v35 = vpop.f32.mrf.mxu0  ;;  %v1803_v51 = vpop.f32.mrf.mxu1  ;;  %v699_v52 = vadd.f32 %v6719_v28, %v371_v0  ;;  %v719_v28 = vadd.f32 %v6724_v18, %v6713_v62  ;;  %v8609_v0 = vld [vmem:[#allocation10_spill] sm:$0xff] }
 0x154   : > { %8597 = vst [vmem:[#allocation31_spill] sm:$0xff] %v6926_v22  ;;  %v6929_v4 = vadd.f32 %v1803_v51, %v1492_v39  ;;  %v1520_v7 = vadd.f32 %v1519_v35, %v1234_v19 }
 0x155   : > { %v5359_v2 = vpop.f32.mrf.mxu0  ;;  %v5405_v1 = vpop.f32.mrf.mxu1 }
 0x156   : > { %8598 = vst [vmem:[#allocation32_spill] sm:$0xff] %v6929_v4  ;;  %v1541_v5 = vadd.f32 %v5359_v2, %v6817_v55  ;;  %v6934_v29 = vadd.f32 %v5405_v1, %v1513_v25  ;;  %v1246_v25 = vadd.f32 %v6821_v47, %v959_v48  ;;  %v1102_v48 = vadd.f32 %v6736_v46, %v719_v28 }
 0x157   : > { %v1533_v60 = vpop.f32.mrf.mxu0  ;;  %v1819_v43 = vpop.f32.mrf.mxu1 }
 0x158   : > { %8599 = vst [vmem:[#allocation33_spill] sm:$0xff] %v6934_v29  ;;  %v6937_v63 = vadd.f32 %v1819_v43, %v1506_v61  ;;  %v1534_v39 = vadd.f32 %v1533_v60, %v1246_v25  ;;  %v1090_v61 = vadd.f32 %v6730_v10, %v699_v52  ;;  %v8630_v29 = vld [vmem:[#allocation14_spill] sm:$0xff] }
 0x159   : > { %v5362_v38 = vpop.f32.mrf.mxu0  ;;  %v5408_v41 = vpop.f32.mrf.mxu1 }
 0x15a   : > { %8600 = vst [vmem:[#allocation34_spill] sm:$0xff] %v6937_v63  ;;  %v1555_v3 = vadd.f32 %v5362_v38, %v6824_v12  ;;  %v6942_v49 = vadd.f32 %v5408_v41, %v1527_v53  ;;  %v1258_v53 = vadd.f32 %v6827_v32, %v979_v45  ;;  %v1352_v43 = vadd.f32 %v6829_v24, %v1090_v61  ;;  %v8610_v45 = vld [vmem:[#allocation21_spill] sm:$0xff] }
 0x15b   : > { %v1547_v56 = vpop.f32.mrf.mxu0  ;;  %v1835_v55 = vpop.f32.mrf.mxu1  ;;  %v739_v24 = vadd.f32 %v6728_v40, %v6696_v16  ;;  %v8613_v16 = vld [vmem:[#allocation19_spill] sm:$0xff] }
 0x15c   : > { %8601 = vst [vmem:[#allocation35_spill] sm:$0xff] %v6942_v49  ;;  %v6945_v36 = vadd.f32 %v1835_v55, %v1520_v7  ;;  %v1548_v2 = vadd.f32 %v1547_v56, %v1258_v53  ;;  %v8611_v53 = vld [vmem:[#allocation7_spill] sm:$0xff] }
 0x15d   : > { %v6947_v33 = vpop.f32.mrf.mxu0  ;;  %v5411_v31 = vpop.f32.mrf.mxu1 }
 0x15e   : > { %8602 = vst [vmem:[#allocation36_spill] sm:$0xff] %v6945_v36  ;;  %v6951_v11 = vadd.f32 %v5411_v31, %v1541_v5  ;;  %v8631_v36 = vld [vmem:[#allocation23_spill] sm:$0xff] }
 0x15f   : > { %v6953_v14 = vpop.f32.mrf.mxu0  ;;  %v1851_v12 = vpop.f32.mrf.mxu1 }
 0x160   : > { %v6956_v35 = vadd.f32 %v1851_v12, %v1534_v39 }
 0x161   : > { %v5414_v47 = vpop.f32.mrf.mxu1  ;;  %v5424_v51 = vpop.f32.mrf.mxu0 }
 0x162   : > { %8603 = vst [vmem:[#allocation37_spill] sm:$0xff] %v6956_v35  ;;  %v6959_v1 = vadd.f32 %v5414_v47, %v1555_v3  ;;  %v1975_v37 = vadd.f32 %v5424_v51, %v6839_v30  ;;  %v1644_v30 = vadd.f32 %v6843_v26, %v1352_v43  ;;  %v1114_v26 = vadd.f32 %v8609_v0, %v739_v24  ;;  %v8612_v47 = vld [vmem:[#allocation8_spill] sm:$0xff] }
 0x163   : > { %v1867_v50 = vpop.f32.mrf.mxu1  ;;  %v1968_v20 = vpop.f32.mrf.mxu0 }
 0x164   : > { %8604 = vst [vmem:[#allocation38_spill] sm:$0xff] %v6959_v1  ;;  %v6963_v5 = vadd.f32 %v1867_v50, %v1548_v2  ;;  %v1969_v3 = vadd.f32 %v1968_v20, %v1644_v30  ;;  %v1380_v40 = vadd.f32 %v8613_v16, %v1114_v26  ;;  %v8614_v20 = vld [vmem:[#allocation12_spill] sm:$0xff] }
 0x165   : > { %v6965_v60 = vpop.f32.mrf.mxu1  ;;  %v5427_v32 = vpop.f32.mrf.mxu0 }
 0x166   : > { %8605 = vst [vmem:[#allocation39_spill] sm:$0xff] %v6963_v5  ;;  %v1987_v19 = vadd.f32 %v5427_v32, %v6846_v57  ;;  %v8607_v57 = vld [vmem:[#allocation18_spill] sm:$0xff]  ;;  %v8615_v32 = vld [vmem:[#allocation24_spill] sm:$0xff] }
 0x167   : > { %v6971_v38 = vpop.f32.mrf.mxu1  ;;  %v1980_v41 = vpop.f32.mrf.mxu0  ;;  %v1366_v25 = vadd.f32 %v8607_v57, %v1102_v48  ;;  %v1676_v43 = vadd.f32 %v8615_v32, %v1380_v40  ;;  %v8618_v57 = vld [vmem:[#allocation26_spill] sm:$0xff]  ;;  %v2449_v40 = vld [vmem:[%s8300_s3] sm:$0xff] }
 0x169   : > { %v5430_v10 = vpop.f32.mrf.mxu0  ;;  %v5476_v7 = vpop.f32.mrf.mxu1  ;;  %v1660_v46 = vadd.f32 %v8610_v45, %v1366_v25 }
 0x16a   : > { %v1999_v56 = vadd.f32 %v5430_v10, %v6853_v59  ;;  %v6976_v55 = vadd.f32 %v5476_v7, %v1975_v37  ;;  %v759_v59 = vadd.f32 %v8612_v47, %v8611_v53  ;;  %v8617_v10 = vld [vmem:[#allocation20_spill] sm:$0xff] }
 0x16b   : > { %v1992_v62 = vpop.f32.mrf.mxu0  ;;  %v2227_v18 = vpop.f32.mrf.mxu1  ;;  %v1981_v2 = vadd.f32 %v1980_v41, %v1660_v46 }
 0x16c   : > { %8606 = vst [vmem:[#allocation40_spill] sm:$0xff] %v6976_v55  ;;  %v6981_v31 = vadd.f32 %v2227_v18, %v1969_v3  ;;  %v1126_v61 = vadd.f32 %v8614_v20, %v759_v59  ;;  %v1993_v3 = vadd.f32 %v1992_v62, %v1676_v43 }
 0x16d   : > { %v5433_v39 = vpop.f32.mrf.mxu0  ;;  %v5479_v12 = vpop.f32.mrf.mxu1 }
 0x16e   : > { %8608 = vst [vmem:[#allocation18_spill] sm:$0xff] %v6981_v31  ;;  %v2011_v51 = vadd.f32 %v5433_v39, %v6860_v44  ;;  %v6988_v52 = vadd.f32 %v5479_v12, %v1987_v19  ;;  %v1394_v7 = vadd.f32 %v8617_v10, %v1126_v61  ;;  %v2452_v61 = vld [vmem:[%s8300_s3 + $0x18] sm:$0xff] }
 0x16f   : > { %v2004_v37 = vpop.f32.mrf.mxu0  ;;  %v2239_v50 = vpop.f32.mrf.mxu1  ;;  %v7024_v10 = vand.u32 4294901760, %v2452_v61 }
 0x170   : > { %v6993_v28 = vadd.f32 %v2239_v50, %v1981_v2  ;;  %v1692_v25 = vadd.f32 %v8618_v57, %v1394_v7  ;;  %v8622_v7 = vld [vmem:[#allocation6_spill] sm:$0xff] }
 0x171   : > { %v5436_v30 = vpop.f32.mrf.mxu0  ;;  %v5482_v48 = vpop.f32.mrf.mxu1  ;;  %8621 = vst [vmem:[#allocation8_spill] sm:$0xff] %v7024_v10 }
 0x172   : > { %8616 = vst [vmem:[#allocation10_spill] sm:$0xff] %v6993_v28  ;;  %v6996_v24 = vadd.f32 %v5482_v48, %v1999_v56  ;;  %v2005_v26 = vadd.f32 %v2004_v37, %v1692_v25 }
 0x173   : > { %v2016_v44 = vpop.f32.mrf.mxu0  ;;  %v2251_v19 = vpop.f32.mrf.mxu1 }
 0x174   : > { %v6999_v41 = vadd.f32 %v2251_v19, %v1993_v3  ;;  %v8623_v3 = vld [vmem:[#allocation9_spill] sm:$0xff] }
 0x175   : > { %v5439_v18 = vpop.f32.mrf.mxu0  ;;  %v5485_v0 = vpop.f32.mrf.mxu1  ;;  %v779_v19 = vadd.f32 %v8623_v3, %v8622_v7  ;;  %v7044_v7 = vsub.f32 %v2452_v61, %v7024_v10 }
 0x176   : > { %v7001_v45 = vadd.f32 %v5485_v0, %v2011_v51  ;;  %v7012_v51 = vand.u32 4294901760, %v2449_v40  ;;  %v2451_v0 = vld [vmem:[%s8300_s3 + $0x10] sm:$0xff]  ;;  %v2035_v5 = vadd.f32 %v5439_v18, %v6874_v58  ;;  %v8641_v18 = vld [vmem:[#allocation22_spill] sm:$0xff] }
 0x177   : > { %v2028_v46 = vpop.f32.mrf.mxu0  ;;  %v2263_v39 = vpop.f32.mrf.mxu1  ;;  %v1138_v21 = vadd.f32 %v8626_v8, %v779_v19  ;;  %8628 = vst [vmem:[#allocation12_spill] sm:$0xff] %v7044_v7  ;;  %v7046_v3 = vand.u32 4294901760, %v2451_v0  ;;  %v8634_v8 = vld [vmem:[#allocation25_spill] sm:$0xff] }
 0x178   : > { %v7003_v12 = vadd.f32 %v2263_v39, %v2005_v26  ;;  %8619 = vst [vmem:[#allocation21_spill] sm:$0xff] %v7012_v51  ;;  %v7022_v48 = vsub.f32 %v2449_v40, %v7012_v51  ;;  %v8624_v26 = vld [vmem:[#allocation5_spill] sm:$0xff]  ;;  %v8625_v39 = vld [vmem:[#allocation11_spill] sm:$0xff] }
 0x179   : > { %v5442_v53 = vpop.f32.mrf.mxu0  ;;  %v5488_v47 = vpop.f32.mrf.mxu1  ;;  %v799_v17 = vadd.f32 %v8625_v39, %v8624_v26  ;;  %8629 = vst [vmem:[#allocation24_spill] sm:$0xff] %v7046_v3  ;;  %v1408_v49 = vadd.f32 %v8631_v36, %v1138_v21  ;;  %v2453_v21 = vld [vmem:[%s8300_s3 + $0x20] sm:$0xff] }
 0x17a   : > { %8620 = vst [vmem:[#allocation7_spill] sm:$0xff] %v7022_v48  ;;  %v7087_v58 = vand.u32 4294901760, %v2453_v21 }
 0x17b   : > { %v2040_v62 = vpop.f32.mrf.mxu0  ;;  %v2275_v56 = vpop.f32.mrf.mxu1  ;;  %v1150_v4 = vadd.f32 %v8630_v29, %v799_v17  ;;  %v1708_v39 = vadd.f32 %v6869_v15, %v1408_v49  ;;  %v2454_v17 = vld [vmem:[%s8300_s3 + $0x28] sm:$0xff]  ;;  %v8637_v29 = vld [vmem:[#allocation27_spill] sm:$0xff]  ;;  %v7075_v49 = vsub.f32 %v2451_v0, %v7046_v3  ;;  %v8646_v0 = vld [vmem:[#allocation17_spill] sm:$0xff] }
 0x17c   : > { %v2023_v36 = vadd.f32 %v5436_v30, %v8637_v29  ;;  %8645 = vst [vmem:[#allocation14_spill] sm:$0xff] %v7087_v58 }
 0x17d   : > { %v7005_v59 = vpop.f32.mrf.mxu0  ;;  %v5491_v16 = vpop.f32.mrf.mxu1  ;;  %v1422_v19 = vadd.f32 %v8634_v8, %v1150_v4  ;;  %v8638_v4 = vand.u32 4294901760, %v7022_v48  ;;  %8640 = vst [vmem:[#allocation11_spill] sm:$0xff] %v7075_v49  ;;  %v8642_v8 = vld [vmem:[#allocation15_spill] sm:$0xff]  ;;  %v2017_v29 = vadd.f32 %v2016_v44, %v1708_v39 }
 0x17e   : > { %v999_v10 = vadd.f32 %v8642_v8, %v8641_v18  ;;  %v7115_v8 = vsub.f32 %v2453_v21, %v7087_v58 }
 0x17f   : > { %v7010_v2 = vpop.f32.mrf.mxu0  ;;  %v2287_v37 = vpop.f32.mrf.mxu1  ;;  %v7071_v15 = vsub.f32 %v7022_v48, %v8638_v4  ;;  %v2282_v4 = vadd.f32 %v5488_v47, %v2023_v36  ;;  %v7085_v48 = vand.u32 4294901760, %v2454_v17 }
 0x180   : > { %v1270_v3 = vadd.f32 %v8646_v0, %v999_v10  ;;  %8651 = vst [vmem:[#allocation27_spill] sm:$0xff] %v7115_v8 }
 0x181   : > { %v7014_v50 = vpop.f32.mrf.mxu0  ;;  %v5494_v20 = vpop.f32.mrf.mxu1  ;;  %8639 = vst [vmem:[#allocation5_spill] sm:$0xff] %v7071_v15  ;;  %8644 = vst [vmem:[#allocation13_spill] sm:$0xff] %v7085_v48  ;;  %v7112_v36 = vsub.f32 %v2454_v17, %v7085_v48  ;;  %v2421_v17 = vmax.f32 %v6999_v41, 0.0  ;;  %v8661_v48 = vmax.f32 %v6981_v31, 0.0  ;;  %v8667_v31 = vmax.f32 %v6993_v28, 0.0 }
 0x183   : > { %v7019_v32 = vpop.f32.mrf.mxu0  ;;  %v2299_v43 = vpop.f32.mrf.mxu1  ;;  %8650 = vst [vmem:[#allocation25_spill] sm:$0xff] %v7112_v36  ;;  %v7172_v15 = vand.u32 4294901760, %v8661_v48 }
 0x185   : > { %v7028_v57 = vpop.f32.mrf.mxu0  ;;  %v7030_v25 = vpop.f32.mrf.mxu1  ;;  %8662 = vst [vmem:[#allocation45_spill] sm:$0xff] %v7172_v15  ;;  %v7192_v15 = vand.u32 4294901760, %v8667_v31 }
 0x187   : > { %v7038_v40 = vpop.f32.mrf.mxu0  ;;  %v7040_v51 = vpop.f32.mrf.mxu1  ;;  %8668 = vst [vmem:[#allocation50_spill] sm:$0xff] %v7192_v15 }
 0x188   : > { %8627 = vst [vmem:[#allocation19_spill] sm:$0xff] %v7038_v40 }
 0x189   : > { %v7050_v22 = vpop.f32.mrf.mxu0  ;;  %v7052_v26 = vpop.f32.mrf.mxu1 }
 0x18a   : > { %8632 = vst [vmem:[#allocation20_spill] sm:$0xff] %v7050_v22  ;;  %8633 = vst [vmem:[#allocation26_spill] sm:$0xff] %v7052_v26  ;;  %v8643_v26 = vld [vmem:[#allocation28_spill] sm:$0xff]  ;;  %v2294_v22 = vadd.f32 %v5491_v16, %v2035_v5  ;;  %v8647_v16 = vand.u32 4294901760, %v7044_v7 }
 0x18b   : > { %v7057_v63 = vpop.f32.mrf.mxu0  ;;  %v7059_v61 = vpop.f32.mrf.mxu1 }
 0x18c   : > { %8635 = vst [vmem:[#allocation6_spill] sm:$0xff] %v7057_v63  ;;  %8636 = vst [vmem:[#allocation9_spill] sm:$0xff] %v7059_v61  ;;  %v1724_v61 = vadd.f32 %v6876_v42, %v1422_v19  ;;  %v2047_v63 = vadd.f32 %v5442_v53, %v8643_v26  ;;  %v7094_v53 = vadd.f32 %v2275_v56, %v2017_v29  ;;  %v2424_v26 = vmax.f32 %v7001_v45, 0.0  ;;  %v8649_v56 = vld [vmem:[#allocation16_spill] sm:$0xff] }
 0x18d   : > { %v7081_v35 = vpop.f32.mrf.mxu0  ;;  %v7083_v30 = vpop.f32.mrf.mxu1  ;;  %v7100_v44 = vsub.f32 %v7044_v7, %v8647_v16  ;;  %v1569_v39 = vadd.f32 %v6947_v33, %v8649_v56  ;;  %v1562_v45 = vadd.f32 %v6953_v14, %v1270_v3  ;;  %v2422_v33 = vmax.f32 %v6996_v24, 0.0 }
 0x18e   : > { %v2029_v1 = vadd.f32 %v2028_v46, %v1724_v61  ;;  %v2306_v40 = vadd.f32 %v5494_v20, %v2047_v63  ;;  %v2041_v46 = vadd.f32 %v2040_v62, %v6890_v9  ;;  %v2428_v63 = vmax.f32 %v2294_v22, 0.0 }
 0x18f   : > { %v7090_v18 = vpop.f32.mrf.mxu0  ;;  %v7092_v42 = vpop.f32.mrf.mxu1  ;;  %8648 = vst [vmem:[#allocation23_spill] sm:$0xff] %v7100_v44  ;;  %v2426_v61 = vmax.f32 %v2282_v4, 0.0  ;;  %v2420_v9 = vmax.f32 %v6988_v52, 0.0  ;;  %v7124_v29 = vadd.f32 %v6965_v60, %v1569_v39  ;;  %v2425_v21 = vmax.f32 %v7094_v53, 0.0 }
 0x190   : > { %v2288_v20 = vadd.f32 %v2287_v37, %v2029_v1  ;;  %v2430_v22 = vmax.f32 %v2306_v40, 0.0  ;;  %v2300_v1 = vadd.f32 %v2299_v43, %v2041_v46  ;;  %v8377_v4 = vmax.f32 %v6976_v55, 0.0 }
 0x191   : > { %v7105_v10 = vpop.f32.mrf.mxu0  ;;  %v7107_v19 = vpop.f32.mrf.mxu1  ;;  %v7130_v14 = vand.u32 4294901760, %v2424_v26  ;;  %v7132_v52 = vand.u32 4294901760, %v2428_v63  ;;  %v7137_v0 = vadd.f32 %v6971_v38, %v1562_v45  ;;  %v2423_v24 = vmax.f32 %v7003_v12, 0.0 }
 0x192   : > { %v2427_v43 = vmax.f32 %v2288_v20, 0.0  ;;  %v7141_v41 = vand.u32 4294901760, %v2426_v61  ;;  %v7143_v53 = vand.u32 4294901760, %v2420_v9  ;;  %v7146_v46 = vand.u32 4294901760, %v2430_v22 }
 0x193   : > { %v7119_v62 = vpop.f32.mrf.mxu0  ;;  %v7121_v37 = vpop.f32.mrf.mxu1  ;;  %8652 = vst [vmem:[#allocation22_spill] sm:$0xff] %v7130_v14  ;;  %v2429_v56 = vmax.f32 %v2300_v1, 0.0  ;;  %v7150_v5 = vand.u32 4294901760, %v2422_v33  ;;  %v7152_v38 = vand.u32 4294901760, %v2421_v17  ;;  %v7154_v45 = vand.u32 4294901760, %v2425_v21 }
 0x194   : > { %8653 = vst [vmem:[#allocation15_spill] sm:$0xff] %v7141_v41  ;;  %8654 = vst [vmem:[#allocation28_spill] sm:$0xff] %v7143_v53  ;;  %v2059_v12 = vadd.f32 %v7005_v59, %v6898_v34  ;;  %v7160_v47 = vand.u32 4294901760, %v8377_v4  ;;  %v7163_v16 = vsub.f32 %v2424_v26, %v7130_v14  ;;  %v7166_v1 = vsub.f32 %v2428_v63, %v7132_v52 }
 0x195   : > { %v5463_v40 = vpop.f32.mrf.mxu0  ;;  %v7134_v3 = vpop.f32.mrf.mxu1  ;;  %8655 = vst [vmem:[#allocation17_spill] sm:$0xff] %v7146_v46  ;;  %8656 = vst [vmem:[#allocation16_spill] sm:$0xff] %v7150_v5  ;;  %v7168_v60 = vand.u32 4294901760, %v2427_v43  ;;  %v7174_v8 = vand.u32 4294901760, %v2423_v24  ;;  %v7177_v34 = vsub.f32 %v2426_v61, %v7141_v41  ;;  %v7181_v26 = vsub.f32 %v2420_v9, %v7143_v53 }
 0x196   : > { %8657 = vst [vmem:[#allocation41_spill] sm:$0xff] %v7152_v38  ;;  %8658 = vst [vmem:[#allocation42_spill] sm:$0xff] %v7154_v45  ;;  %v2318_v59 = vadd.f32 %v7030_v25, %v2059_v12  ;;  %v2053_v63 = vadd.f32 %v7010_v2, %v6902_v23  ;;  %v7186_v4 = vsub.f32 %v2430_v22, %v7146_v46  ;;  %v7188_v49 = vand.u32 4294901760, %v2429_v56  ;;  %v8671_v23 = vld [vmem:[#allocation38_spill] sm:$0xff] }
 0x197   : > { %v2124_v20 = vpop.f32.mrf.mxu0  ;;  %v7148_v39 = vpop.f32.mrf.mxu1  ;;  %8659 = vst [vmem:[#allocation43_spill] sm:$0xff] %v7160_v47  ;;  %8660 = vst [vmem:[#allocation44_spill] sm:$0xff] %v7166_v1  ;;  %v7195_v61 = vsub.f32 %v2422_v33, %v7150_v5  ;;  %v7198_v25 = vsub.f32 %v2421_v17, %v7152_v38  ;;  %v7201_v9 = vsub.f32 %v2425_v21, %v7154_v45  ;;  %v8674_v47 = vld [vmem:[#allocation37_spill] sm:$0xff] }
 0x198   : > { %8663 = vst [vmem:[#allocation46_spill] sm:$0xff] %v7174_v8  ;;  %8664 = vst [vmem:[#allocation47_spill] sm:$0xff] %v7177_v34  ;;  %v7206_v22 = vsub.f32 %v2427_v43, %v7168_v60  ;;  %v2312_v12 = vadd.f32 %v7040_v51, %v2053_v63  ;;  %v7210_v36 = vsub.f32 %v2423_v24, %v7174_v8  ;;  %v2432_v21 = vmax.f32 %v2318_v59, 0.0 }
 0x199   : > { %v5466_v7 = vpop.f32.mrf.mxu0  ;;  %v5512_v58 = vpop.f32.mrf.mxu1  ;;  %8665 = vst [vmem:[#allocation48_spill] sm:$0xff] %v7181_v26  ;;  %8666 = vst [vmem:[#allocation49_spill] sm:$0xff] %v7186_v4  ;;  %v7215_v17 = vadd.f32 %v7014_v50, %v6910_v13  ;;  %v7220_v2 = vadd.f32 %v7019_v32, %v6913_v54  ;;  %v7223_v43 = vsub.f32 %v2429_v56, %v7188_v49  ;;  %v8670_v50 = vld [vmem:[#allocation19_spill] sm:$0xff]  ;;  %v8672_v54 = vand.u32 4294901760, %v7166_v1 }
 0x19a   : > { %8669 = vst [vmem:[#allocation51_spill] sm:$0xff] %v7198_v25  ;;  %v2131_v51 = vadd.f32 %v5463_v40, %v6951_v11  ;;  %v2083_v13 = vadd.f32 %v7028_v57, %v6918_v6  ;;  %v7231_v59 = vadd.f32 %v8670_v50, %v6921_v27  ;;  %v2143_v53 = vadd.f32 %v5466_v7, %v8671_v23  ;;  %v8675_v57 = vld [vmem:[#allocation39_spill] sm:$0xff] }
 0x19b   : > { %v2136_v48 = vpop.f32.mrf.mxu0  ;;  %v2371_v44 = vpop.f32.mrf.mxu1  ;;  %v7237_v32 = vsub.f32 %v7166_v1, %v8672_v54  ;;  %v2431_v40 = vmax.f32 %v2312_v12, 0.0  ;;  %v7240_v33 = vand.u32 4294901760, %v2432_v21  ;;  %v2125_v6 = vadd.f32 %v2124_v20, %v8674_v47  ;;  %v8677_v54 = vld [vmem:[#allocation31_spill] sm:$0xff]  ;;  %v8678_v1 = vld [vmem:[#allocation20_spill] sm:$0xff] }
 0x19c   : > { %v2137_v38 = vadd.f32 %v2136_v48, %v8675_v57  ;;  %v8676_v50 = vand.u32 4294901760, %v7186_v4  ;;  %v2095_v11 = vadd.f32 %v8678_v1, %v8677_v54  ;;  %v8679_v12 = vld [vmem:[#allocation35_spill] sm:$0xff]  ;;  %v8680_v57 = vld [vmem:[#allocation36_spill] sm:$0xff] }
 0x19d   : > { %v5515_v31 = vpop.f32.mrf.mxu1  ;;  %v5469_v24 = vpop.f32.mrf.mxu0  ;;  %8673 = vst [vmem:[#allocation19_spill] sm:$0xff] %v7240_v33  ;;  %v7263_v15 = vsub.f32 %v2432_v21, %v7240_v33 }
 0x19e   : > { %v2390_v56 = vadd.f32 %v5515_v31, %v2131_v51  ;;  %v7247_v7 = vsub.f32 %v7186_v4, %v8676_v50  ;;  %v2119_v31 = vadd.f32 %v7105_v10, %v8679_v12  ;;  %v2155_v47 = vadd.f32 %v5469_v24, %v7124_v29  ;;  %v8681_v29 = vld [vmem:[#allocation32_spill] sm:$0xff]  ;;  %v8682_v24 = vld [vmem:[#allocation6_spill] sm:$0xff] }
 0x19f   : > { %v2383_v63 = vpop.f32.mrf.mxu1  ;;  %v2148_v51 = vpop.f32.mrf.mxu0  ;;  %v2113_v50 = vadd.f32 %v7119_v62, %v8680_v57  ;;  %v8397_v57 = vand.u32 4294901760, %v7263_v15 }
 0x1a0   : > { %v2384_v20 = vadd.f32 %v2383_v63, %v2125_v6  ;;  %v2378_v4 = vadd.f32 %v5512_v58, %v2119_v31  ;;  %v2444_v23 = vmax.f32 %v2390_v56, 0.0  ;;  %v2149_v1 = vadd.f32 %v2148_v51, %v7137_v0 }
 0x1a1   : > { %v5518_v55 = vpop.f32.mrf.mxu1  ;;  %v2372_v6 = vadd.f32 %v2371_v44, %v2113_v50 }
 0x1a2   : > { %v2402_v27 = vadd.f32 %v5518_v55, %v2143_v53  ;;  %v7255_v53 = vand.u32 4294901760, %v2431_v40  ;;  %v2443_v58 = vmax.f32 %v2384_v20, 0.0 }
 0x1a3   : > { %v2395_v26 = vpop.f32.mrf.mxu1 }
 0x1a4   : > { %v2446_v48 = vmax.f32 %v2402_v27, 0.0  ;;  %v2396_v55 = vadd.f32 %v2395_v26, %v2137_v38  ;;  %v2089_v38 = vadd.f32 %v8682_v24, %v8681_v29  ;;  %v8683_v26 = vld [vmem:[#allocation33_spill] sm:$0xff]  ;;  %v7272_v31 = vsub.f32 %v2431_v40, %v7255_v53 }
 0x1a5   : > { %v5521_v28 = vpop.f32.mrf.mxu1  ;;  %v2107_v63 = vadd.f32 %v7081_v35, %v8683_v26  ;;  %v7288_v40 = vadd.f32 %v7083_v30, %v2083_v13  ;;  %v7306_v30 = vadd.f32 %v7107_v19, %v2095_v11  ;;  %v2734_v19 = vsub.f32 %v7263_v15, %v8397_v57 }
 0x1a6   : > { %v7260_v54 = vand.u32 4294901760, %v2446_v48  ;;  %v2445_v10 = vmax.f32 %v2396_v55, 0.0  ;;  %v2414_v12 = vadd.f32 %v5521_v28, %v2155_v47  ;;  %v8684_v28 = vld [vmem:[#allocation34_spill] sm:$0xff]  ;;  %v2442_v47 = vmax.f32 %v2378_v4, 0.0 }
 0x1a7   : > { %v2407_v62 = vpop.f32.mrf.mxu1  ;;  %v2101_v21 = vadd.f32 %v7090_v18, %v8684_v28  ;;  %v7277_v51 = vadd.f32 %v7134_v3, %v2107_v63  ;;  %v7279_v55 = vand.u32 4294901760, %v2444_v23  ;;  %v2441_v18 = vmax.f32 %v2372_v6, 0.0 }
 0x1a8   : > { %v7269_v56 = vand.u32 4294901760, %v2445_v10  ;;  %v2448_v27 = vmax.f32 %v2414_v12, 0.0  ;;  %v2408_v0 = vadd.f32 %v2407_v62, %v2149_v1  ;;  %v7282_v35 = vsub.f32 %v2446_v48, %v7260_v54 }
 0x1a9   : > { %v7291_v50 = vadd.f32 %v7148_v39, %v2101_v21  ;;  %v7293_v3 = vand.u32 4294901760, %v2443_v58  ;;  %v8396_v12 = vand.u32 4294901760, %v7272_v31  ;;  %v2440_v39 = vmax.f32 %v7277_v51, 0.0 }
 0x1aa   : > { %v7284_v44 = vand.u32 4294901760, %v2448_v27  ;;  %v2447_v20 = vmax.f32 %v2408_v0, 0.0  ;;  %v7296_v4 = vsub.f32 %v2445_v10, %v7269_v56  ;;  %v7309_v13 = vand.u32 4294901760, %v2442_v47 }
 0x1ab   : > { %v7313_v10 = vsub.f32 %v2444_v23, %v7279_v55  ;;  %v8398_v26 = vand.u32 4294901760, %v7282_v35  ;;  %v7325_v11 = vadd.f32 %v7121_v37, %v2089_v38  ;;  %v2439_v63 = vmax.f32 %v7291_v50, 0.0 }
 0x1ac   : > { %v7299_v48 = vsub.f32 %v2448_v27, %v7284_v44  ;;  %v7301_v1 = vand.u32 4294901760, %v2447_v20  ;;  %4802 = vmatprep.subr.mxu0 %v7284_v44  ;;  %8685 = vst [vmem:[#allocation38_spill] sm:$0xff] %v7309_v13  ;;  %v7328_v23 = vand.u32 4294901760, %v2441_v18  ;;  %v7332_v6 = vsub.f32 %v2443_v58, %v7293_v3 }
 0x1ad   : > { %4803 = vmatpush3.msra.mxu0 %v7240_v33  ;;  %v8401_v37 = vand.u32 4294901760, %v7296_v4  ;;  %v2741_v38 = vsub.f32 %v7272_v31, %v8396_v12  ;;  %v2438_v0 = vmax.f32 %v7306_v30, 0.0  ;;  %v7344_v28 = vand.u32 4294901760, %v2440_v39 }
 0x1ae   : > { %v7316_v29 = vsub.f32 %v2447_v20, %v7301_v1  ;;  %4804 = vmatprep.subr.mxu0 %v7301_v1  ;;  %v8400_v24 = vand.u32 4294901760, %v7299_v48  ;;  %8686 = vst [vmem:[#allocation37_spill] sm:$0xff] %v7328_v23  ;;  %v7347_v58 = vsub.f32 %v2442_v47, %v7309_v13  ;;  %v2860_v20 = vsub.f32 %v7282_v35, %v8398_v26 }
 0x1af   : > { %4805 = vmatpush3.msra.mxu0 %v7255_v53  ;;  %8687 = vst [vmem:[#allocation39_spill] sm:$0xff] %v7344_v28  ;;  %v8402_v50 = vand.u32 4294901760, %v7313_v10  ;;  %v7360_v30 = vadd.f32 %v7092_v42, %v7231_v59  ;;  %v2437_v47 = vmax.f32 %v7325_v11, 0.0  ;;  %v7363_v12 = vand.u32 4294901760, %v2439_v63 }
 0x1b0   : > { %4806 = vmatprep.subr.mxu0 %v7260_v54  ;;  %v2846_v62 = vsub.f32 %v7299_v48, %v8400_v24  ;;  %v8399_v27 = vand.u32 4294901760, %v7316_v29  ;;  %v7367_v57 = vsub.f32 %v2441_v18, %v7328_v23  ;;  %v8689_v59 = vand.u32 4294901760, %v7223_v43 }
 0x1b1   : > { %4807 = vmatpush3.msra.mxu0 %v7146_v46  ;;  %8688 = vst [vmem:[#allocation31_spill] sm:$0xff] %v7363_v12  ;;  %v2436_v24 = vmax.f32 %v7288_v40, 0.0  ;;  %v2742_v18 = vand.u32 4294901760, %v2741_v38  ;;  %v8691_v40 = vld [vmem:[#allocation26_spill] sm:$0xff]  ;;  %v7394_v38 = vand.u32 4294901760, %v2437_v47 }
 0x1b2   : > { %4808 = vmatprep.subr.mxu0 %v7269_v56  ;;  %v2847_v21 = vand.u32 4294901760, %v2846_v62  ;;  %v2853_v51 = vsub.f32 %v7316_v29, %v8399_v27  ;;  %v2735_v62 = vand.u32 4294901760, %v2734_v19  ;;  %v2867_v27 = vsub.f32 %v7296_v4, %v8401_v37 }
 0x1b3   : > { %4809 = vmatpush3.msra.mxu0 %v7188_v49  ;;  %v2755_v11 = vsub.f32 %v7223_v43, %v8689_v59  ;;  %v7378_v19 = vand.u32 4294901760, %v2438_v0  ;;  %v2874_v37 = vsub.f32 %v7313_v10, %v8402_v50  ;;  %v7391_v42 = vadd.f32 %v8691_v40, %v7215_v17  ;;  %8692 = vst [vmem:[#allocation35_spill] sm:$0xff] %v7394_v38 }
 0x1b4   : > { %4810 = vmatprep.subr.mxu0 %v7279_v55  ;;  %4858 = vmatprep.subr.mxu1 %v2847_v21  ;;  %v2854_v26 = vand.u32 4294901760, %v2853_v51  ;;  %v7382_v21 = vsub.f32 %v2440_v39, %v7344_v28  ;;  %v2861_v51 = vand.u32 4294901760, %v2860_v20  ;;  %v2749_v39 = vand.u32 4294901760, %v7247_v7 }
 0x1b5   : > { %8690 = vst [vmem:[#allocation20_spill] sm:$0xff] %v7378_v19  ;;  %4811 = vmatpush3.msra.mxu0 %v7132_v52  ;;  %4859 = vmatpush3.msra.mxu1 %v2735_v62  ;;  %v2435_v62 = vmax.f32 %v7360_v30, 0.0  ;;  %v2868_v20 = vand.u32 4294901760, %v2867_v27  ;;  %v8693_v50 = vand.u32 4294901760, %v7332_v6  ;;  %v8694_v40 = vand.u32 4294901760, %v7206_v22 }
 0x1b6   : > { %4812 = vmatprep.subr.mxu0 %v7293_v3  ;;  %4860 = vmatprep.subr.mxu1 %v2854_v26  ;;  %v7399_v26 = vsub.f32 %v2439_v63, %v7363_v12  ;;  %v7413_v63 = vand.u32 4294901760, %v2436_v24  ;;  %v2756_v27 = vand.u32 4294901760, %v2755_v11  ;;  %v8697_v30 = vand.u32 4294901760, %v7347_v58 }
 0x1b7   : > { %4813 = vmatpush3.msra.mxu0 %v7168_v60  ;;  %4861 = vmatpush3.msra.mxu1 %v2742_v18  ;;  %v2881_v17 = vsub.f32 %v7332_v6, %v8693_v50  ;;  %v2769_v59 = vsub.f32 %v7206_v22, %v8694_v40  ;;  %v8695_v18 = vld [vmem:[#allocation9_spill] sm:$0xff]  ;;  %v2875_v50 = vand.u32 4294901760, %v2874_v37  ;;  %v7428_v11 = vand.u32 4294901760, %v2435_v62 }
 0x1b8   : > { %4814 = vmatprep.subr.mxu0 %v7309_v13  ;;  %4862 = vmatprep.subr.mxu1 %v2861_v51  ;;  %v7411_v7 = vadd.f32 %v8695_v18, %v7220_v2  ;;  %8696 = vst [vmem:[#allocation36_spill] sm:$0xff] %v7413_v63  ;;  %v7417_v51 = vsub.f32 %v2438_v0, %v7378_v19  ;;  %v8698_v18 = vand.u32 4294901760, %v7177_v34  ;;  %v2763_v0 = vand.u32 4294901760, %v7237_v32 }
 0x1b9   : > { %4815 = vmatpush3.msra.mxu0 %v7141_v41  ;;  %4863 = vmatpush3.msra.mxu1 %v2749_v39  ;;  %v2888_v40 = vsub.f32 %v7347_v58, %v8697_v30  ;;  %v2434_v39 = vmax.f32 %v7391_v42, 0.0  ;;  %8699 = vst [vmem:[#allocation32_spill] sm:$0xff] %v7428_v11  ;;  %v7433_v37 = vsub.f32 %v2437_v47, %v7394_v38  ;;  %v8701_v30 = vand.u32 4294901760, %v7367_v57 }
 0x1ba   : > { %4816 = vmatprep.subr.mxu0 %v7328_v23  ;;  %4864 = vmatprep.subr.mxu1 %v2868_v20  ;;  %v2776_v13 = vsub.f32 %v7177_v34, %v8698_v18  ;;  %v2882_v20 = vand.u32 4294901760, %v2881_v17  ;;  %v2433_v32 = vmax.f32 %v7411_v7, 0.0  ;;  %v2770_v47 = vand.u32 4294901760, %v2769_v59 }
 0x1bb   : > { %4817 = vmatpush3.msra.mxu0 %v7154_v45  ;;  %4865 = vmatpush3.msra.mxu1 %v2756_v27  ;;  %8700 = vst [vmem:[#allocation6_spill] sm:$0xff] %v7433_v37  ;;  %v2895_v18 = vsub.f32 %v7367_v57, %v8701_v30  ;;  %v8702_v45 = vand.u32 4294901760, %v7201_v9  ;;  %v7447_v17 = vsub.f32 %v2436_v24, %v7413_v63  ;;  %v8703_v30 = vand.u32 4294901760, %v7382_v21 }
 0x1bc   : > { %4818 = vmatprep.subr.mxu0 %v7344_v28  ;;  %4866 = vmatprep.subr.mxu1 %v2875_v50  ;;  %v2889_v50 = vand.u32 4294901760, %v2888_v40  ;;  %v8704_v7 = vand.u32 4294901760, %v7163_v16  ;;  %v7458_v59 = vand.u32 4294901760, %v2434_v39  ;;  %v2777_v24 = vand.u32 4294901760, %v2776_v13 }
 0x1bd   : > { %v2783_v27 = vsub.f32 %v7201_v9, %v8702_v45  ;;  %4819 = vmatpush3.msra.mxu0 %v7130_v14  ;;  %4867 = vmatpush3.msra.mxu1 %v2763_v0  ;;  %v2902_v2 = vsub.f32 %v7382_v21, %v8703_v30  ;;  %v7462_v40 = vsub.f32 %v2435_v62, %v7428_v11  ;;  %v8707_v30 = vand.u32 4294901760, %v7399_v26  ;;  %v8714_v14 = vld [vmem:[#allocation48_spill] sm:$0xff] }
 0x1be   : > { %4820 = vmatprep.subr.mxu0 %v7363_v12  ;;  %4868 = vmatprep.subr.mxu1 %v2882_v20  ;;  %v2790_v0 = vsub.f32 %v7163_v16, %v8704_v7  ;;  %8705 = vst [vmem:[#allocation33_spill] sm:$0xff] %v7458_v59  ;;  %v2896_v20 = vand.u32 4294901760, %v2895_v18  ;;  %v8708_v12 = vand.u32 4294901760, %v7210_v36  ;;  %v7473_v13 = vand.u32 4294901760, %v2433_v32  ;;  %v8711_v18 = vld [vmem:[#allocation10_spill] sm:$0xff] }
 0x1bf   : > { %4821 = vmatpush3.msra.mxu0 %v7174_v8  ;;  %4869 = vmatpush3.msra.mxu1 %v2770_v47  ;;  %8706 = vst [vmem:[#allocation34_spill] sm:$0xff] %v7462_v40  ;;  %v2909_v45 = vsub.f32 %v7399_v26, %v8707_v30  ;;  %v2784_v62 = vand.u32 4294901760, %v2783_v27  ;;  %v2903_v30 = vand.u32 4294901760, %v2902_v2  ;;  %v8713_v7 = vand.u32 4294901760, %v7417_v51  ;;  %v2456_v2 = vld [vmem:[%s8300_s3 + $0x38] sm:$0xff] }
 0x1c0   : > { %4822 = vmatprep.subr.mxu0 %v7378_v19  ;;  %4870 = vmatprep.subr.mxu1 %v2889_v50  ;;  %v2797_v47 = vsub.f32 %v7210_v36, %v8708_v12  ;;  %8709 = vst [vmem:[#allocation26_spill] sm:$0xff] %v7473_v13  ;;  %v8710_v50 = vld [vmem:[#allocation50_spill] sm:$0xff]  ;;  %v8712_v19 = vmax.f32 %v8711_v18, 0.0  ;;  %v7491_v18 = vsub.f32 %v2434_v39, %v7458_v59  ;;  %v8720_v39 = vand.u32 4294901760, %v7433_v37 }
 0x1c1   : > { %4823 = vmatpush3.msra.mxu0 %v7150_v5  ;;  %4871 = vmatpush3.msra.mxu1 %v2777_v24  ;;  %v2916_v42 = vsub.f32 %v7417_v51, %v8713_v7  ;;  %v8715_v24 = vand.u32 4294901760, %v7195_v61  ;;  %v8717_v7 = vld [vmem:[#allocation43_spill] sm:$0xff]  ;;  %v7511_v23 = vsub.f32 %v2433_v32, %v7473_v13 }
 0x1c2   : > { %v7479_v8 = vsub.f32 %v8712_v19, %v8710_v50  ;;  %4824 = vmatprep.subr.mxu0 %v7394_v38  ;;  %4872 = vmatprep.subr.mxu1 %v2896_v20  ;;  %v8716_v19 = vld [vmem:[#allocation41_spill] sm:$0xff]  ;;  %v2791_v20 = vand.u32 4294901760, %v2790_v0  ;;  %v8718_v38 = vld [vmem:[#allocation40_spill] sm:$0xff]  ;;  %v2923_v28 = vsub.f32 %v7433_v37, %v8720_v39  ;;  %v8721_v0 = vand.u32 4294901760, %v7198_v25 }
 0x1c3   : > { %v2804_v27 = vsub.f32 %v7195_v61, %v8715_v24  ;;  %4825 = vmatpush3.msra.mxu0 %v8716_v19  ;;  %4873 = vmatpush3.msra.mxu1 %v2784_v62  ;;  %v8719_v12 = vmax.f32 %v8718_v38, 0.0  ;;  %v2910_v24 = vand.u32 4294901760, %v2909_v45  ;;  %8722 = vst [vmem:[#allocation9_spill] sm:$0xff] %v7511_v23  ;;  %v8723_v38 = vld [vmem:[#allocation28_spill] sm:$0xff]  ;;  %v2455_v45 = vld [vmem:[%s8300_s3 + $0x30] sm:$0xff]  ;;  %v2917_v62 = vand.u32 4294901760, %v2916_v42 }
 0x1c4   : > { %4826 = vmatprep.subr.mxu0 %v7413_v63  ;;  %4874 = vmatprep.subr.mxu1 %v2903_v30  ;;  %v2811_v19 = vsub.f32 %v7198_v25, %v8721_v0  ;;  %v8724_v63 = vld [vmem:[#allocation25_spill] sm:$0xff]  ;;  %v8725_v0 = vand.u32 4294901760, %v7447_v17  ;;  %v7523_v25 = vand.u32 4294901760, %v2456_v2  ;;  %v8731_v37 = vand.u32 4294901760, %v8714_v14 }
 0x1c5   : > { %v7500_v5 = vsub.f32 %v8719_v12, %v8717_v7  ;;  %4827 = vmatpush3.msra.mxu0 %v8723_v38  ;;  %4875 = vmatpush3.msra.mxu1 %v2791_v20  ;;  %v2798_v12 = vand.u32 4294901760, %v2797_v47  ;;  %v8727_v20 = vld [vmem:[#allocation45_spill] sm:$0xff]  ;;  %v8728_v47 = vld [vmem:[#allocation18_spill] sm:$0xff] }
 0x1c6   : > { %4828 = vmatprep.subr.mxu0 %v7428_v11  ;;  %4876 = vmatprep.subr.mxu1 %v2910_v24  ;;  %v2930_v32 = vsub.f32 %v7447_v17, %v8725_v0  ;;  %8726 = vst [vmem:[#allocation10_spill] sm:$0xff] %v7523_v25  ;;  %v8729_v38 = vmax.f32 %v8728_v47, 0.0  ;;  %v2818_v41 = vsub.f32 %v8714_v14, %v8731_v37  ;;  %v2805_v24 = vand.u32 4294901760, %v2804_v27 }
 0x1c7   : > { %4829 = vmatpush3.msra.mxu0 %v8710_v50  ;;  %4877 = vmatpush3.msra.mxu1 %v2798_v12  ;;  %v2924_v0 = vand.u32 4294901760, %v2923_v28  ;;  %v8732_v47 = vand.u32 4294901760, %v7462_v40  ;;  %v7540_v11 = vand.u32 4294901760, %v2455_v45  ;;  %v2812_v37 = vand.u32 4294901760, %v2811_v19  ;;  %v8734_v12 = vld [vmem:[#allocation23_spill] sm:$0xff]  ;;  %v2458_v28 = vld [vmem:[%s8300_s3 + $0x48] sm:$0xff] }
 0x1c8   : > { %v7528_v30 = vsub.f32 %v8729_v38, %v8727_v20  ;;  %4830 = vmatprep.subr.mxu0 %v7458_v59  ;;  %4878 = vmatprep.subr.mxu1 %v2917_v62  ;;  %v2628_v27 = vand.u32 4294901760, %v8734_v12  ;;  %v8735_v50 = vld [vmem:[#allocation11_spill] sm:$0xff]  ;;  %v8737_v62 = vand.u32 4294901760, %v7479_v8  ;;  %v2931_v19 = vand.u32 4294901760, %v2930_v32  ;;  %v2457_v32 = vld [vmem:[%s8300_s3 + $0x40] sm:$0xff] }
 0x1c9   : > { %v2937_v38 = vsub.f32 %v7462_v40, %v8732_v47  ;;  %8733 = vst [vmem:[#allocation40_spill] sm:$0xff] %v7540_v11  ;;  %4831 = vmatpush3.msra.mxu0 %v8717_v7  ;;  %4879 = vmatpush3.msra.mxu1 %v2805_v24  ;;  %v8736_v42 = vand.u32 4294901760, %v8735_v50  ;;  %v8738_v24 = vld [vmem:[#allocation27_spill] sm:$0xff]  ;;  %v7557_v7 = vsub.f32 %v2456_v2, %v7523_v25  ;;  %v2819_v59 = vand.u32 4294901760, %v2818_v41  ;;  %v8743_v12 = vld [vmem:[#allocation5_spill] sm:$0xff] }
 0x1ca   : > { %8730 = vst [vmem:[#allocation48_spill] sm:$0xff] %v7528_v30  ;;  %v2825_v47 = vsub.f32 %v7479_v8, %v8737_v62  ;;  %4832 = vmatprep.subr.mxu0 %v7473_v13  ;;  %4880 = vmatprep.subr.mxu1 %v2924_v0  ;;  %v8741_v62 = vand.u32 4294901760, %v8724_v63  ;;  %v8742_v2 = vand.u32 4294901760, %v7500_v5 }
 0x1cb   : > { %v2633_v39 = vsub.f32 %v8735_v50, %v8736_v42  ;;  %8739 = vst [vmem:[#allocation18_spill] sm:$0xff] %v7557_v7  ;;  %4833 = vmatpush3.msra.mxu0 %v8727_v20  ;;  %4881 = vmatpush3.msra.mxu1 %v2812_v37  ;;  %v8740_v50 = vand.u32 4294901760, %v7491_v18  ;;  %v8744_v20 = vand.u32 4294901760, %v8743_v12  ;;  %v2938_v41 = vand.u32 4294901760, %v2937_v38 }
 0x1cc   : > { %v2642_v0 = vsub.f32 %v8724_v63, %v8741_v62  ;;  %v2832_v42 = vsub.f32 %v7500_v5, %v8742_v2  ;;  %4882 = vmatprep.subr.mxu1 %v2931_v19  ;;  %v7576_v37 = vsub.f32 %v2455_v45, %v7540_v11  ;;  %4914 = vmatprep.subr.mxu0 %v7299_v48  ;;  %v8747_v63 = vand.u32 4294901760, %v7511_v23 }
 0x1cd   : > { %v2944_v40 = vsub.f32 %v7491_v18, %v8740_v50  ;;  %2620 = vmatmul.mubr.f32.vlgmr.msra.gmra.mxu0 %v8744_v20  ;;  %v7578_v50 = vand.u32 4294901760, %v2458_v28  ;;  %4883 = vmatpush3.msra.mxu1 %v2819_v59  ;;  %v2634_v62 = vand.u32 4294901760, %v2633_v39  ;;  %v2826_v12 = vand.u32 4294901760, %v2825_v47  ;;  %v2460_v39 = vld [vmem:[%s8300_s3 + $0x58] sm:$0xff] }
 0x1ce   : > { %8745 = vst [vmem:[#allocation23_spill] sm:$0xff] %v7576_v37  ;;  %v2951_v13 = vsub.f32 %v7511_v23, %v8747_v63  ;;  %4915 = vmatpush3.msra.mxu0 %v7263_v15  ;;  %4884 = vmatprep.subr.mxu1 %v2938_v41  ;;  %v8748_v20 = vand.u32 4294901760, %v8738_v24  ;;  %v7589_v19 = vand.u32 4294901760, %v2457_v32  ;;  %v8750_v2 = vand.u32 4294901760, %v7528_v30 }
 0x1cf   : > { %8746 = vst [vmem:[#allocation27_spill] sm:$0xff] %v7578_v50  ;;  %4916 = vmatprep.subr.mxu0 %v7316_v29  ;;  %2629 = vmatprep.mubr.f32.mxu0 %v2628_v27  ;;  %v2945_v63 = vand.u32 4294901760, %v2944_v40  ;;  %v2833_v47 = vand.u32 4294901760, %v2832_v42  ;;  %v2643_v41 = vand.u32 4294901760, %v2642_v0  ;;  %v7601_v45 = vsub.f32 %v2458_v28, %v7578_v50  ;;  %v2459_v40 = vld [vmem:[%s8300_s3 + $0x50] sm:$0xff] }
 0x1d0   : > { %v2648_v38 = vsub.f32 %v8738_v24, %v8748_v20  ;;  %8749 = vst [vmem:[#allocation5_spill] sm:$0xff] %v7589_v19  ;;  %v2839_v59 = vsub.f32 %v7528_v30, %v8750_v2  ;;  %4885 = vmatpush3.msra.mxu1 %v2826_v12  ;;  %4917 = vmatpush3.msra.mxu0 %v7272_v31  ;;  %v8444_v20 = vand.u32 4294901760, %v7576_v37  ;;  %v2952_v2 = vand.u32 4294901760, %v2951_v13 }
 0x1d1   : > { %8751 = vst [vmem:[#allocation52_spill] sm:$0xff] %v7601_v45  ;;  %2635 = vmatmul.mubr.f32.gmra.mxu0 %v2634_v62  ;;  %4886 = vmatprep.subr.mxu1 %v2945_v63  ;;  %v8752_v12 = vand.u32 4294901760, %v7557_v7  ;;  %v7611_v0 = vsub.f32 %v2457_v32, %v7589_v19  ;;  %v7613_v28 = vand.u32 4294901760, %v2460_v39  ;;  %v8755_v62 = vld [vmem:[#allocation49_spill] sm:$0xff]  ;;  %v8450_v63 = vand.u32 4294901760, %v7601_v45  ;;  %v2462_v32 = vld [vmem:[%s8300_s3 + $0x68] sm:$0xff] }
 0x1d2   : > { %4918 = vmatprep.subr.mxu0 %v7282_v35  ;;  %4887 = vmatpush3.msra.mxu1 %v2833_v47  ;;  %v2649_v27 = vand.u32 4294901760, %v2648_v38  ;;  %v2840_v13 = vand.u32 4294901760, %v2839_v59  ;;  %v2663_v38 = vsub.f32 %v7576_v37, %v8444_v20  ;;  %v7621_v47 = vand.u32 4294901760, %v2459_v40  ;;  %v8757_v59 = vld [vmem:[#allocation21_spill] sm:$0xff]  ;;  %v8758_v20 = vld [vmem:[#allocation44_spill] sm:$0xff] }
 0x1d3   : > { %v2657_v42 = vsub.f32 %v7557_v7, %v8752_v12  ;;  %8753 = vst [vmem:[#allocation53_spill] sm:$0xff] %v7611_v0  ;;  %8754 = vst [vmem:[#allocation54_spill] sm:$0xff] %v7613_v28  ;;  %4919 = vmatpush3.msra.mxu0 %v8755_v62  ;;  %4888 = vmatprep.subr.mxu1 %v2952_v2  ;;  %v7630_v12 = vsub.f32 %v2460_v39, %v7613_v28  ;;  %v8761_v37 = vand.u32 4294901760, %v7611_v0  ;;  %v2463_v7 = vld [vmem:[%s8300_s3 + $0x70] sm:$0xff] }
 0x1d4   : > { %4920 = vmatprep.subr.mxu0 %v7296_v4  ;;  %2644 = vmatprep.mubr.f32.mxu0 %v2643_v41  ;;  %8756 = vst [vmem:[#allocation49_spill] sm:$0xff] %v7621_v47  ;;  %v7643_v39 = vsub.f32 %v2459_v40, %v7621_v47  ;;  %v7645_v41 = vand.u32 4294901760, %v2462_v32  ;;  %v2464_v40 = vld [vmem:[%s8300_s3 + $0x78] sm:$0xff] }
 0x1d5   : > { %4889 = vmatpush3.msra.mxu1 %v2840_v13  ;;  %4921 = vmatpush3.msra.mxu0 %v7223_v43  ;;  %v2658_v2 = vand.u32 4294901760, %v2657_v42  ;;  %v2461_v13 = vld [vmem:[%s8300_s3 + $0x60] sm:$0xff]  ;;  %v2672_v42 = vsub.f32 %v7601_v45, %v8450_v63 }
 0x1d6   : > { %2650 = vmatmul.mubr.f32.gmra.mxu0 %v2649_v27  ;;  %2957 = vmatmul.mubr.f32.vlgmr.msra.gmra.mxu1 %v8757_v59  ;;  %v2664_v27 = vand.u32 4294901760, %v2663_v38  ;;  %8759 = vst [vmem:[#allocation44_spill] sm:$0xff] %v7645_v41  ;;  %v8760_v59 = vld [vmem:[#allocation8_spill] sm:$0xff]  ;;  %v2678_v38 = vsub.f32 %v7611_v0, %v8761_v37  ;;  %v7664_v37 = vsub.f32 %v2462_v32, %v7645_v41  ;;  %v8768_v0 = vld [vmem:[#allocation13_spill] sm:$0xff]  ;;  %v8769_v45 = vand.u32 4294901760, %v7643_v39 }
 0x1d7   : > { %4922 = vmatprep.subr.mxu0 %v7313_v10  ;;  %4970 = vmatprep.subr.mxu1 %v7284_v44  ;;  %v2673_v63 = vand.u32 4294901760, %v2672_v42  ;;  %v8765_v42 = vand.u32 4294901760, %v7630_v12 }
 0x1d8   : > { %4923 = vmatpush3.msra.mxu0 %v8758_v20  ;;  %4971 = vmatpush3.msra.mxu1 %v7240_v33  ;;  %v7654_v33 = vand.u32 4294901760, %v2461_v13  ;;  %8764 = vst [vmem:[#allocation56_spill] sm:$0xff] %v7664_v37 }
 0x1d9   : > { %4924 = vmatprep.subr.mxu0 %v7332_v6  ;;  %4972 = vmatprep.subr.mxu1 %v7301_v1 }
 0x1da   : > { %2659 = vmatprep.mubr.f32.mxu0 %v2658_v2  ;;  %2962 = vmatprep.mubr.f32.mxu1 %v8760_v59  ;;  %8762 = vst [vmem:[#allocation55_spill] sm:$0xff] %v7654_v33  ;;  %v8763_v2 = vld [vmem:[#allocation24_spill] sm:$0xff]  ;;  %v2687_v59 = vsub.f32 %v7630_v12, %v8765_v42  ;;  %v7677_v32 = vsub.f32 %v2461_v13, %v7654_v33  ;;  %v8771_v13 = vld [vmem:[#allocation14_spill] sm:$0xff] }
 0x1db   : > { %4925 = vmatpush3.msra.mxu0 %v7206_v22  ;;  %4973 = vmatpush3.msra.mxu1 %v7255_v53 }
 0x1dc   : > { %2665 = vmatmul.mubr.f32.gmra.mxu0 %v2664_v27  ;;  %2964 = vmatmul.mubr.f32.gmra.mxu1 %v8763_v2  ;;  %v2679_v27 = vand.u32 4294901760, %v2678_v38  ;;  %8766 = vst [vmem:[#allocation57_spill] sm:$0xff] %v7677_v32  ;;  %v7679_v2 = vand.u32 4294901760, %v2464_v40  ;;  %v2693_v38 = vsub.f32 %v7643_v39, %v8769_v45  ;;  %v2688_v42 = vand.u32 4294901760, %v2687_v59 }
 0x1dd   : > { %4926 = vmatprep.subr.mxu0 %v7347_v58  ;;  %4974 = vmatprep.subr.mxu1 %v7260_v54 }
 0x1de   : > { %4927 = vmatpush3.msra.mxu0 %v7177_v34  ;;  %4975 = vmatpush3.msra.mxu1 %v7146_v46  ;;  %8767 = vst [vmem:[#allocation58_spill] sm:$0xff] %v7679_v2  ;;  %v8457_v46 = vand.u32 4294901760, %v7664_v37  ;;  %v7688_v34 = vand.u32 4294901760, %v2463_v7  ;;  %v2694_v45 = vand.u32 4294901760, %v2693_v38 }
 0x1df   : > { %4928 = vmatprep.subr.mxu0 %v7367_v57  ;;  %4976 = vmatprep.subr.mxu1 %v7269_v56 }
 0x1e0   : > { %2674 = vmatprep.mubr.f32.mxu0 %v2673_v63  ;;  %2969 = vmatprep.mubr.f32.mxu1 %v8768_v0  ;;  %8770 = vst [vmem:[#allocation59_spill] sm:$0xff] %v7688_v34  ;;  %v8460_v63 = vand.u32 4294901760, %v7677_v32  ;;  %v7695_v0 = vsub.f32 %v2464_v40, %v7679_v2  ;;  %v7705_v59 = vsub.f32 %v2463_v7, %v7688_v34 }
 0x1e1   : > { %4929 = vmatpush3.msra.mxu0 %v7201_v9  ;;  %4977 = vmatpush3.msra.mxu1 %v7188_v49 }
 0x1e2   : > { %2680 = vmatmul.mubr.f32.gmra.mxu0 %v2679_v27  ;;  %2971 = vmatmul.mubr.f32.gmra.mxu1 %v8771_v13  ;;  %8772 = vst [vmem:[#allocation60_spill] sm:$0xff] %v7695_v0  ;;  %v2702_v27 = vsub.f32 %v7664_v37, %v8457_v46  ;;  %v2708_v40 = vsub.f32 %v7677_v32, %v8460_v63  ;;  %v8467_v38 = vand.u32 4294901760, %v7695_v0  ;;  %v8472_v46 = vand.u32 4294901760, %v7705_v59  ;;  %v8775_v32 = vld [vmem:[#allocation6_spill] sm:$0xff] }
 0x1e3   : > { %4930 = vmatprep.subr.mxu0 %v7382_v21  ;;  %4978 = vmatprep.subr.mxu1 %v7279_v55  ;;  %v8778_v37 = vld [vmem:[#allocation42_spill] sm:$0xff] }
 0x1e4   : > { %4931 = vmatpush3.msra.mxu0 %v7163_v16  ;;  %4979 = vmatpush3.msra.mxu1 %v7132_v52  ;;  %v2703_v7 = vand.u32 4294901760, %v2702_v27  ;;  %v2709_v63 = vand.u32 4294901760, %v2708_v40  ;;  %v2717_v13 = vsub.f32 %v7695_v0, %v8467_v38  ;;  %v2723_v27 = vsub.f32 %v7705_v59, %v8472_v46  ;;  %v8779_v38 = vld [vmem:[#allocation39_spill] sm:$0xff]  ;;  %v8781_v0 = vld [vmem:[#allocation34_spill] sm:$0xff] }
 0x1e5   : > { %4932 = vmatprep.subr.mxu0 %v7399_v26  ;;  %4980 = vmatprep.subr.mxu1 %v7293_v3  ;;  %v8782_v46 = vld [vmem:[#allocation31_spill] sm:$0xff] }
 0x1e6   : > { %2689 = vmatprep.mubr.f32.mxu0 %v2688_v42  ;;  %2976 = vmatprep.mubr.f32.mxu1 %v7523_v25  ;;  %v8773_v42 = vld [vmem:[#allocation38_spill] sm:$0xff]  ;;  %v8774_v25 = vld [vmem:[#allocation15_spill] sm:$0xff]  ;;  %v2718_v40 = vand.u32 4294901760, %v2717_v13  ;;  %v8784_v13 = vld [vmem:[#allocation20_spill] sm:$0xff] }
 0x1e7   : > { %4933 = vmatpush3.msra.mxu0 %v7210_v36  ;;  %4981 = vmatpush3.msra.mxu1 %v7168_v60 }
 0x1e8   : > { %2695 = vmatmul.mubr.f32.gmra.mxu0 %v2694_v45  ;;  %2978 = vmatmul.mubr.f32.gmra.mxu1 %v7540_v11  ;;  %v8776_v45 = vld [vmem:[#allocation37_spill] sm:$0xff]  ;;  %v8777_v11 = vld [vmem:[#allocation51_spill] sm:$0xff] }
 0x1e9   : > { %4934 = vmatprep.subr.mxu0 %v7417_v51  ;;  %4982 = vmatprep.subr.mxu1 %v8773_v42 }
 0x1ea   : > { %4935 = vmatpush3.msra.mxu0 %v7195_v61  ;;  %4983 = vmatpush3.msra.mxu1 %v8774_v25 }
 0x1eb   : > { %4936 = vmatprep.subr.mxu0 %v8775_v32  ;;  %4984 = vmatprep.subr.mxu1 %v8776_v45 }
 0x1ec   : > { %2704 = vmatprep.mubr.f32.mxu0 %v2703_v7  ;;  %2983 = vmatprep.mubr.f32.mxu1 %v7578_v50  ;;  %v8780_v7 = vld [vmem:[#allocation22_spill] sm:$0xff]  ;;  %v2724_v50 = vand.u32 4294901760, %v2723_v27  ;;  %v8785_v27 = vld [vmem:[#allocation16_spill] sm:$0xff] }
 0x1ed   : > { %4937 = vmatpush3.msra.mxu0 %v8777_v11  ;;  %4985 = vmatpush3.msra.mxu1 %v8778_v37 }
 0x1ee   : > { %2710 = vmatmul.mubr.f32.gmra.mxu0 %v2709_v63  ;;  %2985 = vmatmul.mubr.f32.gmra.mxu1 %v7589_v19  ;;  %v8783_v63 = vld [vmem:[#allocation46_spill] sm:$0xff]  ;;  %v8790_v19 = vld [vmem:[#allocation36_spill] sm:$0xff] }
 0x1ef   : > { %4938 = vmatprep.subr.mxu0 %v7447_v17  ;;  %4986 = vmatprep.subr.mxu1 %v8779_v38 }
 0x1f0   : > { %4939 = vmatpush3.msra.mxu0 %v8714_v14  ;;  %4987 = vmatpush3.msra.mxu1 %v8780_v7 }
 0x1f1   : > { %4940 = vmatprep.subr.mxu0 %v8781_v0  ;;  %4988 = vmatprep.subr.mxu1 %v8782_v46 }
 0x1f2   : > { %2719 = vmatprep.mubr.f32.mxu0 %v2718_v40  ;;  %2990 = vmatprep.mubr.f32.mxu1 %v7613_v28  ;;  %v8786_v40 = vld [vmem:[#allocation35_spill] sm:$0xff]  ;;  %v8787_v28 = vld [vmem:[#allocation30_spill] sm:$0xff] }
 0x1f3   : > { %4941 = vmatpush3.msra.mxu0 %v7479_v8  ;;  %4989 = vmatpush3.msra.mxu1 %v8783_v63 }
 0x1f4   : > { %2725 = vmatmul.mubr.f32.gmra.mxu0 %v2724_v50  ;;  %2992 = vmatmul.mubr.f32.gmra.mxu1 %v7621_v47  ;;  %v8788_v50 = vld [vmem:[#allocation41_spill] sm:$0xff]  ;;  %v8789_v47 = vld [vmem:[#allocation7_spill] sm:$0xff] }
 0x1f5   : > { %4942 = vmatprep.subr.mxu0 %v7491_v18  ;;  %4990 = vmatprep.subr.mxu1 %v8784_v13 }
 0x1f6   : > { %4943 = vmatpush3.msra.mxu0 %v7500_v5  ;;  %4991 = vmatpush3.msra.mxu1 %v8785_v27  ;;  %v8791_v27 = vand.u32 4294901760, %v7299_v48  ;;  %v8799_v48 = vld [vmem:[#allocation11_spill] sm:$0xff] }
 0x1f7   : > { %4944 = vmatprep.subr.mxu0 %v7511_v23  ;;  %4992 = vmatprep.subr.mxu1 %v8786_v40  ;;  %v8792_v23 = vld [vmem:[#allocation28_spill] sm:$0xff]  ;;  %v8793_v40 = vand.u32 4294901760, %v7263_v15  ;;  %v8800_v15 = vld [vmem:[#allocation33_spill] sm:$0xff] }
 0x1f8   : > { %2997 = vmatprep.mubr.f32.mxu1 %v7645_v41  ;;  %4945 = vmatpush3.msra.mxu0 %v7528_v30  ;;  %v8794_v41 = vld [vmem:[#allocation32_spill] sm:$0xff]  ;;  %v8795_v30 = vand.u32 4294901760, %v7316_v29  ;;  %v8802_v29 = vld [vmem:[#allocation43_spill] sm:$0xff] }
 0x1f9   : > { %3141 = vmatprep.mubr.f32.mxu0 %v8787_v28  ;;  %4993 = vmatpush3.msra.mxu1 %v8788_v50  ;;  %v8797_v50 = vld [vmem:[#allocation50_spill] sm:$0xff] }
 0x1fa   : > { %2999 = vmatmul.mubr.f32.gmra.mxu1 %v7654_v33  ;;  %3144 = vmatmul.mubr.f32.vlgmr.msra.gmra.mxu0 %v8789_v47  ;;  %v8796_v33 = vld [vmem:[#allocation12_spill] sm:$0xff] }
 0x1fb   : > { %4994 = vmatprep.subr.mxu1 %v8790_v19  ;;  %5026 = vmatprep.subr.mxu0 %v8791_v27  ;;  %v8798_v19 = vand.u32 4294901760, %v7272_v31  ;;  %v8801_v27 = vand.u32 4294901760, %v7282_v35  ;;  %v8806_v31 = vld [vmem:[#allocation25_spill] sm:$0xff]  ;;  %v8809_v35 = vand.u32 4294901760, %v7223_v43  ;;  %v8815_v43 = vld [vmem:[#allocation18_spill] sm:$0xff] }
 0x1fc   : > { %4995 = vmatpush3.msra.mxu1 %v8792_v23  ;;  %5027 = vmatpush3.msra.mxu0 %v8793_v40  ;;  %v8804_v40 = vld [vmem:[#allocation26_spill] sm:$0xff] }
 0x1fd   : > { %4996 = vmatprep.subr.mxu1 %v8794_v41  ;;  %5028 = vmatprep.subr.mxu0 %v8795_v30  ;;  %v8803_v30 = vand.u32 4294901760, %v8755_v62  ;;  %v8810_v62 = vand.u32 4294901760, %v8789_v47 }
 0x1fe   : > { %3004 = vmatprep.mubr.f32.mxu1 %v7679_v2  ;;  %3150 = vmatprep.mubr.f32.mxu0 %v8796_v33  ;;  %v8805_v2 = vand.u32 4294901760, %v7296_v4  ;;  %v8812_v4 = vand.u32 4294901760, %v8758_v20  ;;  %v8819_v20 = vand.u32 4294901760, %v8799_v48 }
 0x1ff   : > { %4997 = vmatpush3.msra.mxu1 %v8797_v50  ;;  %5029 = vmatpush3.msra.mxu0 %v8798_v19  ;;  %v8807_v19 = vld [vmem:[#allocation45_spill] sm:$0xff] }
 0x200   : > { %3006 = vmatmul.mubr.f32.gmra.mxu1 %v7688_v34  ;;  %3153 = vmatmul.mubr.f32.gmra.mxu0 %v8799_v48  ;;  %v8808_v34 = vand.u32 4294901760, %v8787_v28  ;;  %v8816_v28 = vand.u32 4294901760, %v8796_v33  ;;  %v8823_v33 = vld [vmem:[#allocation17_spill] sm:$0xff]  ;;  %v8826_v48 = vand.u32 4294901760, %v8806_v31 }
 0x201   : > { %4998 = vmatprep.subr.mxu1 %v8800_v15  ;;  %5030 = vmatprep.subr.mxu0 %v8801_v27  ;;  %v8811_v27 = vand.u32 4294901760, %v7313_v10  ;;  %v8817_v10 = vand.u32 4294901760, %v7206_v22  ;;  %v8824_v22 = vand.u32 4294901760, %v7367_v57  ;;  %v8830_v57 = vand.u32 4294901760, %v7382_v21 }
 0x202   : > { %4999 = vmatpush3.msra.mxu1 %v8802_v29  ;;  %5031 = vmatpush3.msra.mxu0 %v8803_v30  ;;  %v8829_v30 = vand.u32 4294901760, %v8738_v24  ;;  %v8834_v21 = vand.u32 4294901760, %v7210_v36  ;;  %v8838_v36 = vand.u32 4294901760, %v8775_v32  ;;  %v8848_v32 = vand.u32 4294901760, %v7630_v12 }
 0x203   : > { %5000 = vmatprep.subr.mxu1 %v8804_v40  ;;  %5032 = vmatprep.subr.mxu0 %v8805_v2  ;;  %v8813_v2 = vld [vmem:[#allocation19_spill] sm:$0xff] }
 0x204   : > { %3159 = vmatprep.mubr.f32.mxu0 %v8806_v31  ;;  %5001 = vmatpush3.msra.mxu1 %v8807_v19  ;;  %v8864_v31 = vld [vmem:[#allocation36_spill] sm:$0xff] }
 0x205   : > { %3311 = vmatprep.mubr.f32.mxu1 %v8808_v34  ;;  %5033 = vmatpush3.msra.mxu0 %v8809_v35  ;;  %v8814_v34 = vand.u32 4294901760, %v7332_v6  ;;  %v8820_v6 = vand.u32 4294901760, %v7347_v58  ;;  %v8827_v58 = vand.u32 4294901760, %v7201_v9  ;;  %v8832_v9 = vand.u32 4294901760, %v7399_v26 }
 0x206   : > { %3162 = vmatmul.mubr.f32.gmra.mxu0 %v8738_v24  ;;  %3315 = vmatmul.mubr.f32.vlgmr.msra.gmra.mxu1 %v8810_v62  ;;  %v8841_v26 = vand.u32 4294901760, %v8777_v11  ;;  %v8845_v24 = vand.u32 4294901760, %v8714_v14  ;;  %v8846_v11 = vand.u32 4294901760, %v8781_v0  ;;  %v8850_v14 = vand.u32 4294901760, %v7643_v39  ;;  %v8866_v62 = vld [vmem:[#allocation8_spill] sm:$0xff] }
 0x207   : > { %5034 = vmatprep.subr.mxu0 %v8811_v27  ;;  %5082 = vmatprep.subr.mxu1 %v7284_v44  ;;  %v8818_v44 = vld [vmem:[#allocation23_spill] sm:$0xff]  ;;  %v8851_v0 = vand.u32 4294901760, %v7491_v18  ;;  %v8860_v18 = vld [vmem:[#allocation29_spill] sm:$0xff]  ;;  %v8867_v27 = vld [vmem:[#allocation24_spill] sm:$0xff] }
 0x208   : > { %5035 = vmatpush3.msra.mxu0 %v8812_v4  ;;  %5083 = vmatpush3.msra.mxu1 %v8813_v2  ;;  %v8868_v4 = vand.u32 4294901760, %v7705_v59  ;;  %v8869_v2 = vld [vmem:[#allocation13_spill] sm:$0xff] }
 0x209   : > { %5036 = vmatprep.subr.mxu0 %v8814_v34  ;;  %5084 = vmatprep.subr.mxu1 %v7301_v1  ;;  %v8821_v1 = vld [vmem:[#allocation47_spill] sm:$0xff] }
 0x20a   : > { %3168 = vmatprep.mubr.f32.mxu0 %v8815_v43  ;;  %3322 = vmatprep.mubr.f32.mxu1 %v8816_v28  ;;  %v8822_v47 = vand.u32 4294901760, %v8821_v1  ;;  %v8878_v34 = vld [vmem:[#allocation55_spill] sm:$0xff] }
 0x20b   : > { %5037 = vmatpush3.msra.mxu0 %v8817_v10  ;;  %5085 = vmatpush3.msra.mxu1 %v7255_v53  ;;  %v8825_v53 = vld [vmem:[#allocation52_spill] sm:$0xff]  ;;  %v8880_v28 = vld [vmem:[#allocation59_spill] sm:$0xff]  ;;  %v7940_v10 = vpop.permute.xlu1 %2505 }
 0x20c   : > { %3171 = vmatmul.mubr.f32.gmra.mxu0 %v8818_v44  ;;  %3326 = vmatmul.mubr.f32.gmra.mxu1 %v8819_v20 }
 0x20d   : > { %5038 = vmatprep.subr.mxu0 %v8820_v6  ;;  %5086 = vmatprep.subr.mxu1 %v7260_v54  ;;  %v8828_v54 = vld [vmem:[#allocation53_spill] sm:$0xff] }
 0x20e   : > { %5039 = vmatpush3.msra.mxu0 %v8822_v47  ;;  %5087 = vmatpush3.msra.mxu1 %v8823_v33 }
 0x20f   : > { %5040 = vmatprep.subr.mxu0 %v8824_v22  ;;  %5088 = vmatprep.subr.mxu1 %v7269_v56  ;;  %v8831_v56 = vand.u32 4294901760, %v7163_v16  ;;  %v8835_v16 = vand.u32 4294901760, %v8818_v44  ;;  %v7942_v44 = vpop.permute.xlu0 %2510  ;;  %v2496_v20 = vpop.permute.xlu1 %2495 }
 0x210   : > { %3177 = vmatprep.mubr.f32.mxu0 %v8825_v53  ;;  %3333 = vmatprep.mubr.f32.mxu1 %v8826_v48 }
 0x211   : > { %5041 = vmatpush3.msra.mxu0 %v8827_v58  ;;  %5089 = vmatpush3.msra.mxu1 %v7188_v49  ;;  %v8833_v49 = vand.u32 4294901760, %v8815_v43  ;;  %v8879_v43 = vld [vmem:[#allocation58_spill] sm:$0xff] }
 0x212   : > { %3180 = vmatmul.mubr.f32.gmra.mxu0 %v8828_v54  ;;  %3337 = vmatmul.mubr.f32.gmra.mxu1 %v8829_v30 }
 0x213   : > { %5042 = vmatprep.subr.mxu0 %v8830_v57  ;;  %5090 = vmatprep.subr.mxu1 %v7279_v55  ;;  %v8837_v55 = vand.u32 4294901760, %v7195_v61  ;;  %v8843_v61 = vand.u32 4294901760, %v8828_v54  ;;  %v2501_v33 = vpop.permute.xlu0 %2500  ;;  %v2486_v22 = vpop.permute.xlu1 %2485 }
 0x214   : > { %5043 = vmatpush3.msra.mxu0 %v8831_v56  ;;  %5091 = vmatpush3.msra.mxu1 %v7132_v52  ;;  %v8836_v52 = vand.u32 4294901760, %v7417_v51  ;;  %v8842_v51 = vld [vmem:[#allocation57_spill] sm:$0xff] }
 0x215   : > { %5044 = vmatprep.subr.mxu0 %v8832_v9  ;;  %5092 = vmatprep.subr.mxu1 %v7293_v3  ;;  %v8840_v3 = vand.u32 4294901760, %v8825_v53 }
 0x216   : > { %3186 = vmatprep.mubr.f32.mxu0 %v7630_v12  ;;  %3344 = vmatprep.mubr.f32.mxu1 %v8833_v49  ;;  %v8853_v12 = vld [vmem:[#allocation16_spill] sm:$0xff] }
 0x217   : > { %5045 = vmatpush3.msra.mxu0 %v8834_v21  ;;  %5093 = vmatpush3.msra.mxu1 %v7168_v60  ;;  %v8839_v60 = vld [vmem:[#allocation56_spill] sm:$0xff]  ;;  %v2491_v57 = vpop.permute.xlu0 %2490  ;;  %v2476_v56 = vpop.permute.xlu1 %2475 }
 0x218   : > { %3189 = vmatmul.mubr.f32.gmra.mxu0 %v7643_v39  ;;  %3348 = vmatmul.mubr.f32.gmra.mxu1 %v8835_v16  ;;  %v8858_v39 = vld [vmem:[#allocation48_spill] sm:$0xff] }
 0x219   : > { %5046 = vmatprep.subr.mxu0 %v8836_v52  ;;  %5094 = vmatprep.subr.mxu1 %v8773_v42  ;;  %v8856_v42 = vld [vmem:[#allocation35_spill] sm:$0xff] }
 0x21a   : > { %5047 = vmatpush3.msra.mxu0 %v8837_v55  ;;  %5095 = vmatpush3.msra.mxu1 %v8774_v25  ;;  %v8844_v25 = vand.u32 4294901760, %v7447_v17  ;;  %v8849_v17 = vand.u32 4294901760, %v7479_v8 }
 0x21b   : > { %5048 = vmatprep.subr.mxu0 %v8838_v36  ;;  %5096 = vmatprep.subr.mxu1 %v8776_v45  ;;  %v8857_v45 = vand.u32 4294901760, %v8839_v60 }
 0x21c   : > { %3195 = vmatprep.mubr.f32.mxu0 %v8839_v60  ;;  %3355 = vmatprep.mubr.f32.mxu1 %v8840_v3  ;;  %v2481_v3 = vpop.permute.xlu0 %2480 }
 0x21d   : > { %5049 = vmatpush3.msra.mxu0 %v8841_v26  ;;  %5097 = vmatpush3.msra.mxu1 %v8778_v37  ;;  %v8847_v37 = vld [vmem:[#allocation60_spill] sm:$0xff]  ;;  %v3775_v26 = vld [vmem:[%s8302_s5] sm:$0xff] }
 0x21e   : > { %3198 = vmatmul.mubr.f32.gmra.mxu0 %v8842_v51  ;;  %3359 = vmatmul.mubr.f32.gmra.mxu1 %v8843_v61  ;;  %v8865_v35 = vand.u32 4294901760, %v8847_v37 }
 0x21f   : > { %5050 = vmatprep.subr.mxu0 %v8844_v25  ;;  %5098 = vmatprep.subr.mxu1 %v8779_v38  ;;  %v8854_v38 = vld [vmem:[#allocation9_spill] sm:$0xff]  ;;  %v3805_v25 = vsel %vm3803_vm1, %v3775_v26, 0 }
 0x220   : > { %5051 = vmatpush3.msra.mxu0 %v8845_v24  ;;  %5099 = vmatpush3.msra.mxu1 %v8780_v7  ;;  %v8855_v8 = vand.u32 4294901760, %v8854_v38  ;;  %v8859_v7 = vand.u32 4294901760, %v8858_v39 }
 0x221   : > { %5052 = vmatprep.subr.mxu0 %v8846_v11  ;;  %5100 = vmatprep.subr.mxu1 %v8782_v46  ;;  %v8852_v46 = vand.u32 4294901760, %v7500_v5  ;;  %v8862_v5 = vand.u32 4294901760, %v8842_v51 }
 0x222   : > { %3204 = vmatprep.mubr.f32.mxu0 %v8847_v37  ;;  %3366 = vmatprep.mubr.f32.mxu1 %v8848_v32  ;;  %v7948_v32 = vand.u32 4294901760, %v3805_v25 }
 0x223   : > { %5053 = vmatpush3.msra.mxu0 %v8849_v17  ;;  %5101 = vmatpush3.msra.mxu1 %v8783_v63  ;;  %v8861_v63 = vld [vmem:[#allocation41_spill] sm:$0xff] }
 0x224   : > { %3207 = vmatmul.mubr.f32.gmra.mxu0 %v7705_v59  ;;  %3370 = vmatmul.mubr.f32.gmra.mxu1 %v8850_v14  ;;  %v8872_v59 = vld [vmem:[#allocation40_spill] sm:$0xff]  ;;  %8881 = vst [vmem:[#allocation38_spill] sm:$0xff] %v7948_v32  ;;  %v7951_v14 = vsub.f32 %v3805_v25, %v7948_v32 }
 0x225   : > { %5054 = vmatprep.subr.mxu0 %v8851_v0  ;;  %5102 = vmatprep.subr.mxu1 %v8784_v13  ;;  %v8863_v13 = vld [vmem:[#allocation21_spill] sm:$0xff] }
 0x226   : > { %5055 = vmatpush3.msra.mxu0 %v8852_v46  ;;  %5103 = vmatpush3.msra.mxu1 %v8853_v12  ;;  %8882 = vst [vmem:[#allocation15_spill] sm:$0xff] %v7951_v14  ;;  %v8489_v12 = vand.u32 4294901760, %v7951_v14 }
 0x227   : > { %5056 = vmatprep.subr.mxu0 %v8855_v8  ;;  %5104 = vmatprep.subr.mxu1 %v8856_v42 }
 0x228   : > { %3377 = vmatprep.mubr.f32.mxu1 %v8857_v45  ;;  %5057 = vmatpush3.msra.mxu0 %v8859_v7  ;;  %v3892_v7 = vsub.f32 %v7951_v14, %v8489_v12 }
 0x229   : > { %3558 = vmatprep.mubr.f32.mxu0 %v8860_v18  ;;  %5105 = vmatpush3.msra.mxu1 %v8861_v63 }
 0x22a   : > { %3381 = vmatmul.mubr.f32.gmra.mxu1 %v8862_v5  ;;  %3560 = vmatmul.mubr.f32.vlgmr.msra.gmra.mxu0 %v8863_v13  ;;  %v3893_v63 = vand.u32 4294901760, %v3892_v7 }
 0x22b   : > { %5106 = vmatprep.subr.mxu1 %v8864_v31  ;;  %3388 = vmatprep.mubr.f32.mxu1 %v8865_v35 }
 0x22c   : > { %5107 = vmatpush3.msra.mxu1 %v8792_v23  ;;  %3565 = vmatprep.mubr.f32.mxu0 %v8866_v62  ;;  %v8870_v23 = vld [vmem:[#allocation14_spill] sm:$0xff] }
 0x22d   : > { %5108 = vmatprep.subr.mxu1 %v8794_v41  ;;  %v8871_v41 = vld [vmem:[#allocation10_spill] sm:$0xff] }
 0x22e   : > { %5109 = vmatpush3.msra.mxu1 %v8797_v50  ;;  %3567 = vmatmul.mubr.f32.gmra.mxu0 %v8867_v27  ;;  %v8873_v50 = vld [vmem:[#allocation27_spill] sm:$0xff] }
 0x22f   : > { %3392 = vmatmul.mubr.f32.gmra.mxu1 %v8868_v4  ;;  %5110 = vmatprep.subr.mxu1 %v8800_v15  ;;  %v8874_v15 = vld [vmem:[#allocation5_spill] sm:$0xff] }
 0x230   : > { %5111 = vmatpush3.msra.mxu1 %v8802_v29  ;;  %3572 = vmatprep.mubr.f32.mxu0 %v8869_v2  ;;  %v8875_v29 = vld [vmem:[#allocation54_spill] sm:$0xff] }
 0x231   : > { %5112 = vmatprep.subr.mxu1 %v8804_v40  ;;  %3711 = vmatprep.mubr.f32.mxu1 %v8860_v18  ;;  %v8876_v40 = vld [vmem:[#allocation49_spill] sm:$0xff] }
 0x232   : > { %5113 = vmatpush3.msra.mxu1 %v8807_v19  ;;  %3574 = vmatmul.mubr.f32.gmra.mxu0 %v8870_v23  ;;  %v8877_v19 = vld [vmem:[#allocation44_spill] sm:$0xff] }
 0x233   : > { %3713 = vmatmul.mubr.f32.vlgmr.msra.gmra.mxu1 %v8863_v13  ;;  %3579 = vmatprep.mubr.f32.mxu0 %v8871_v41 }
 0x234   : > { %3718 = vmatprep.mubr.f32.mxu1 %v8866_v62 }
 0x236   : > { %3581 = vmatmul.mubr.f32.gmra.mxu0 %v8872_v59 }
 0x237   : > { %3720 = vmatmul.mubr.f32.gmra.mxu1 %v8867_v27  ;;  %3586 = vmatprep.mubr.f32.mxu0 %v8873_v50 }
 0x238   : > { %3725 = vmatprep.mubr.f32.mxu1 %v8869_v2 }
 0x23a   : > { %3588 = vmatmul.mubr.f32.gmra.mxu0 %v8874_v15 }
 0x23b   : > { %3727 = vmatmul.mubr.f32.gmra.mxu1 %v8870_v23  ;;  %3593 = vmatprep.mubr.f32.mxu0 %v8875_v29 }
 0x23c   : > { %3732 = vmatprep.mubr.f32.mxu1 %v8871_v41 }
 0x23e   : > { %3595 = vmatmul.mubr.f32.gmra.mxu0 %v8876_v40 }
 0x23f   : > { %3734 = vmatmul.mubr.f32.gmra.mxu1 %v8872_v59  ;;  %3600 = vmatprep.mubr.f32.mxu0 %v8877_v19 }
 0x240   : > { %3739 = vmatprep.mubr.f32.mxu1 %v8873_v50 }
 0x242   : > { %3602 = vmatmul.mubr.f32.gmra.mxu0 %v8878_v34 }
 0x243   : > { %3741 = vmatmul.mubr.f32.gmra.mxu1 %v8874_v15  ;;  %3607 = vmatprep.mubr.f32.mxu0 %v8879_v43 }
 0x244   : > { %3746 = vmatprep.mubr.f32.mxu1 %v8875_v29 }
 0x246   : > { %3609 = vmatmul.mubr.f32.gmra.mxu0 %v8880_v28 }
 0x247   : > { %3748 = vmatmul.mubr.f32.gmra.mxu1 %v8876_v40  ;;  %5538 = vmatprep.mubr.f32.mxu0 %v3893_v63 }
 0x248   : > { %3753 = vmatprep.mubr.f32.mxu1 %v8877_v19 }
 0x24b   : > { %3755 = vmatmul.mubr.f32.gmra.mxu1 %v8878_v34 }
 0x24c   : > { %3760 = vmatprep.mubr.f32.mxu1 %v8879_v43 }
 0x24f   : > { %3762 = vmatmul.mubr.f32.gmra.mxu1 %v8880_v28 }
 0x250   : > { %5560 = vmatprep.mubr.f32.mxu1 %v7948_v32 }
 0x28d   : > { %v4834_v6 = vpop.f32.mrf.mxu0 }
 0x28f   : > { %v4835_v1 = vpop.f32.mrf.mxu0 }
 0x290   : > { %v4836_v47 = vadd.f32 %v4835_v1, %v4834_v6 }
 0x291   : > { %v4837_v53 = vpop.f32.mrf.mxu0 }
 0x292   : > { %v2622_v21 = vadd.f32 %v4836_v47, %v2476_v56 }
 0x293   : > { %v4838_v48 = vpop.f32.mrf.mxu0 }
 0x294   : > { %v4839_v58 = vadd.f32 %v4838_v48, %v4837_v53 }
 0x296   : > { %v4840_v54 = vpop.f32.mrf.mxu0  ;;  %v4890_v30 = vpop.f32.mrf.mxu1  ;;  %v2637_v24 = vadd.f32 %v4839_v58, %v2481_v3 }
 0x298   : > { %v4841_v9 = vpop.f32.mrf.mxu0  ;;  %v4891_v49 = vpop.f32.mrf.mxu1 }
 0x299   : > { %v4842_v16 = vadd.f32 %v4841_v9, %v4840_v54  ;;  %v4892_v52 = vadd.f32 %v4891_v49, %v4890_v30 }
 0x29b   : > { %v2959_v55 = vadd.f32 %v4892_v52, %v2622_v21  ;;  %v2652_v42 = vadd.f32 %v4842_v16, %v2486_v22 }
 0x29c   : > { %v4843_v36 = vpop.f32.mrf.mxu0  ;;  %v4893_v60 = vpop.f32.mrf.mxu1 }
 0x29e   : > { %v4844_v51 = vpop.f32.mrf.mxu0  ;;  %v4894_v61 = vpop.f32.mrf.mxu1 }
 0x29f   : > { %v4845_v11 = vadd.f32 %v4844_v51, %v4843_v36  ;;  %v4895_v37 = vadd.f32 %v4894_v61, %v4893_v60 }
 0x2a1   : > { %v2966_v17 = vadd.f32 %v4895_v37, %v2637_v24  ;;  %v2667_v62 = vadd.f32 %v4845_v11, %v2491_v57 }
 0x2a2   : > { %v4846_v0 = vpop.f32.mrf.mxu0  ;;  %v4896_v46 = vpop.f32.mrf.mxu1 }
 0x2a4   : > { %v4847_v38 = vpop.f32.mrf.mxu0  ;;  %v4897_v8 = vpop.f32.mrf.mxu1 }
 0x2a5   : > { %v4848_v45 = vadd.f32 %v4847_v38, %v4846_v0  ;;  %v4898_v39 = vadd.f32 %v4897_v8, %v4896_v46 }
 0x2a7   : > { %v7958_v18 = vadd.f32 %v4898_v39, %v2652_v42  ;;  %v2682_v15 = vadd.f32 %v4848_v45, %v2496_v20 }
 0x2a8   : > { %v4849_v5 = vpop.f32.mrf.mxu0  ;;  %v4899_v13 = vpop.f32.mrf.mxu1 }
 0x2aa   : > { %v4850_v31 = vpop.f32.mrf.mxu0  ;;  %v4900_v35 = vpop.f32.mrf.mxu1 }
 0x2ab   : > { %v4851_v27 = vadd.f32 %v4850_v31, %v4849_v5  ;;  %v4901_v4 = vadd.f32 %v4900_v35, %v4899_v13 }
 0x2ad   : > { %v7960_v2 = vadd.f32 %v4901_v4, %v2667_v62  ;;  %v2697_v6 = vadd.f32 %v4851_v27, %v2501_v33 }
 0x2ae   : > { %v4852_v23 = vpop.f32.mrf.mxu0  ;;  %v4902_v41 = vpop.f32.mrf.mxu1 }
 0x2b0   : > { %v4853_v59 = vpop.f32.mrf.mxu0  ;;  %v4903_v50 = vpop.f32.mrf.mxu1 }
 0x2b1   : > { %v4904_v29 = vadd.f32 %v4903_v50, %v4902_v41  ;;  %v4854_v47 = vadd.f32 %v4853_v59, %v4852_v23 }
 0x2b3   : > { %v7962_v40 = vadd.f32 %v4904_v29, %v2682_v15  ;;  %v2712_v20 = vadd.f32 %v4854_v47, %v7940_v10 }
 0x2b4   : > { %v7964_v19 = vpop.f32.mrf.mxu0  ;;  %v4905_v34 = vpop.f32.mrf.mxu1 }
 0x2b6   : > { %v7966_v43 = vpop.f32.mrf.mxu0  ;;  %v4906_v28 = vpop.f32.mrf.mxu1 }
 0x2b7   : > { %v4907_v1 = vadd.f32 %v4906_v28, %v4905_v34 }
 0x2b9   : > { %v7968_v22 = vadd.f32 %v4907_v1, %v2697_v6 }
 0x2ba   : > { %v4908_v53 = vpop.f32.mrf.mxu1  ;;  %v4946_v48 = vpop.f32.mrf.mxu0 }
 0x2bc   : > { %v4909_v58 = vpop.f32.mrf.mxu1  ;;  %v4947_v54 = vpop.f32.mrf.mxu0 }
 0x2bd   : > { %v4910_v30 = vadd.f32 %v4909_v58, %v4908_v53  ;;  %v4948_v57 = vadd.f32 %v4947_v54, %v4946_v48 }
 0x2bf   : > { %v7971_v56 = vadd.f32 %v4910_v30, %v2712_v20  ;;  %v3146_v9 = vadd.f32 %v4948_v57, %v2959_v55 }
 0x2c0   : > { %v4911_v49 = vpop.f32.mrf.mxu1  ;;  %v4949_v21 = vpop.f32.mrf.mxu0 }
 0x2c2   : > { %v4912_v16 = vpop.f32.mrf.mxu1  ;;  %v4950_v52 = vpop.f32.mrf.mxu0 }
 0x2c3   : > { %v4951_v33 = vadd.f32 %v4950_v52, %v4949_v21 }
 0x2c5   : > { %v3155_v36 = vadd.f32 %v4951_v33, %v2966_v17 }
 0x2c6   : > { %v7973_v60 = vpop.f32.mrf.mxu0  ;;  %v5002_v3 = vpop.f32.mrf.mxu1 }
 0x2c8   : > { %v7975_v26 = vpop.f32.mrf.mxu0  ;;  %v5003_v51 = vpop.f32.mrf.mxu1 }
 0x2c9   : > { %v5004_v61 = vadd.f32 %v5003_v51, %v5002_v3 }
 0x2cb   : > { %v7977_v25 = vadd.f32 %v5004_v61, %v3146_v9  ;;  %v4913_v61 = vadd.f32 %v4912_v16, %v4911_v49 }
 0x2cc   : > { %v4955_v10 = vpop.f32.mrf.mxu0  ;;  %v5005_v24 = vpop.f32.mrf.mxu1 }
 0x2cd   : > { %8883 = vst [vmem:[#allocation6_spill] sm:$0xff] %v7977_v25 }
 0x2ce   : > { %v4956_v11 = vpop.f32.mrf.mxu0  ;;  %v5006_v37 = vpop.f32.mrf.mxu1 }
 0x2cf   : > { %v5007_v55 = vadd.f32 %v5006_v37, %v5005_v24  ;;  %v4957_v14 = vadd.f32 %v4956_v11, %v4955_v10 }
 0x2d1   : > { %v7979_v0 = vadd.f32 %v5007_v55, %v3155_v36  ;;  %v4857_v36 = vadd.f32 %v7966_v43, %v7964_v19  ;;  %v4954_v19 = vadd.f32 %v7975_v26, %v7973_v60 }
 0x2d2   : > { %v4958_v46 = vpop.f32.mrf.mxu0  ;;  %v5008_v38 = vpop.f32.mrf.mxu1 }
 0x2d3   : > { %8884 = vst [vmem:[#allocation37_spill] sm:$0xff] %v7979_v0  ;;  %v2727_v32 = vadd.f32 %v4857_v36, %v7942_v44  ;;  %v3173_v44 = vadd.f32 %v4957_v14, %v7960_v2 }
 0x2d4   : > { %v4959_v8 = vpop.f32.mrf.mxu0  ;;  %v5009_v17 = vpop.f32.mrf.mxu1 }
 0x2d5   : > { %v4960_v55 = vadd.f32 %v4959_v8, %v4958_v46  ;;  %v5010_v10 = vadd.f32 %v5009_v17, %v5008_v38 }
 0x2d7   : > { %v3182_v43 = vadd.f32 %v4960_v55, %v7962_v40  ;;  %v3164_v40 = vadd.f32 %v4954_v19, %v7958_v18  ;;  %v3776_v18 = vld [vmem:[%s8302_s5 + $0x8] sm:$0xff] }
 0x2d8   : > { %v4961_v42 = vpop.f32.mrf.mxu0  ;;  %v5011_v45 = vpop.f32.mrf.mxu1 }
 0x2da   : > { %v4962_v39 = vpop.f32.mrf.mxu0  ;;  %v5012_v7 = vpop.f32.mrf.mxu1 }
 0x2db   : > { %v4963_v24 = vadd.f32 %v4962_v39, %v4961_v42  ;;  %v5013_v49 = vadd.f32 %v5012_v7, %v5011_v45 }
 0x2dd   : > { %v3350_v45 = vadd.f32 %v5013_v49, %v3173_v44 }
 0x2de   : > { %v4964_v63 = vpop.f32.mrf.mxu0  ;;  %v5014_v5 = vpop.f32.mrf.mxu1 }
 0x2e0   : > { %v4965_v13 = vpop.f32.mrf.mxu0  ;;  %v5015_v31 = vpop.f32.mrf.mxu1 }
 0x2e1   : > { %v5016_v0 = vadd.f32 %v5015_v31, %v5014_v5 }
 0x2e4   : > { %v4967_v35 = vpop.f32.mrf.mxu0  ;;  %v5017_v62 = vpop.f32.mrf.mxu1 }
 0x2e6   : > { %v4968_v27 = vpop.f32.mrf.mxu0  ;;  %v5018_v4 = vpop.f32.mrf.mxu1 }
 0x2e7   : > { %v5019_v25 = vadd.f32 %v5018_v4, %v5017_v62 }
 0x2ea   : > { %v5020_v23 = vpop.f32.mrf.mxu1  ;;  %v7981_v41 = vpop.f32.mrf.mxu0 }
 0x2eb   : > { %8885 = vst [vmem:[#allocation51_spill] sm:$0xff] %v7981_v41 }
 0x2ec   : > { %v5021_v59 = vpop.f32.mrf.mxu1  ;;  %v7983_v50 = vpop.f32.mrf.mxu0 }
 0x2ed   : > { %8886 = vst [vmem:[#allocation42_spill] sm:$0xff] %v7983_v50  ;;  %v3191_v50 = vadd.f32 %v4963_v24, %v7968_v22  ;;  %v5022_v16 = vadd.f32 %v5021_v59, %v5020_v23 }
 0x2ee   : > { %v7985_v15 = vpop.f32.mrf.mxu0 }
 0x2ef   : > { %v5023_v29 = vpop.f32.mrf.mxu1  ;;  %v3372_v11 = vadd.f32 %v5019_v25, %v3191_v50 }
 0x2f0   : > { %v7987_v34 = vpop.f32.mrf.mxu0 }
 0x2f1   : > { %v5024_v28 = vpop.f32.mrf.mxu1 }
 0x2f2   : > { %v5064_v6 = vpop.f32.mrf.mxu0  ;;  %v5025_v2 = vadd.f32 %v5024_v28, %v5023_v29 }
 0x2f3   : > { %v7989_v1 = vpop.f32.mrf.mxu1 }
 0x2f4   : > { %8887 = vst [vmem:[#allocation39_spill] sm:$0xff] %v7989_v1  ;;  %v5065_v47 = vpop.f32.mrf.mxu0  ;;  %v4966_v1 = vadd.f32 %v4965_v13, %v4964_v63  ;;  %v4969_v63 = vadd.f32 %v4968_v27, %v4967_v35 }
 0x2f5   : > { %v7991_v53 = vpop.f32.mrf.mxu1  ;;  %v5066_v62 = vadd.f32 %v5065_v47, %v5064_v6  ;;  %v5063_v6 = vadd.f32 %v7987_v34, %v7985_v15  ;;  %v3777_v34 = vld [vmem:[%s8302_s5 + $0x10] sm:$0xff] }
 0x2f6   : > { %8888 = vst [vmem:[#allocation22_spill] sm:$0xff] %v7991_v53  ;;  %v5067_v48 = vpop.f32.mrf.mxu0  ;;  %v3200_v39 = vadd.f32 %v4966_v1, %v7971_v56  ;;  %v3339_v56 = vadd.f32 %v5010_v10, %v3164_v40 }
 0x2f7   : > { %v7993_v58 = vpop.f32.mrf.mxu1 }
 0x2f8   : > { %8889 = vst [vmem:[#allocation34_spill] sm:$0xff] %v7993_v58  ;;  %v5068_v54 = vpop.f32.mrf.mxu0  ;;  %v3008_v58 = vadd.f32 %v4913_v61, %v2727_v32  ;;  %v3361_v32 = vadd.f32 %v5016_v0, %v3182_v43  ;;  %v3383_v7 = vadd.f32 %v5022_v16, %v3200_v39  ;;  %v3576_v29 = vadd.f32 %v5066_v62, %v3339_v56  ;;  %v8895_v61 = vld [vmem:[#allocation37_spill] sm:$0xff]  ;;  %v3778_v39 = vld [vmem:[%s8302_s5 + $0x18] sm:$0xff] }
 0x2f9   : > { %v7995_v20 = vpop.f32.mrf.mxu1  ;;  %v5069_v22 = vadd.f32 %v5068_v54, %v5067_v48  ;;  %v8892_v54 = vld [vmem:[#allocation42_spill] sm:$0xff]  ;;  %v3569_v24 = vadd.f32 %v5063_v6, %v8895_v61  ;;  %v3814_v40 = vsel %vm3803_vm1, %v3778_v39, 0 }
 0x2fa   : > { %8890 = vst [vmem:[#allocation31_spill] sm:$0xff] %v7995_v20  ;;  %v5070_v30 = vpop.f32.mrf.mxu0  ;;  %v3209_v0 = vadd.f32 %v4969_v63, %v3008_v58  ;;  %v8891_v58 = vld [vmem:[#allocation51_spill] sm:$0xff]  ;;  %v8901_v39 = vld [vmem:[#allocation38_spill] sm:$0xff] }
 0x2fb   : > { %v5120_v57 = vpop.f32.mrf.mxu1  ;;  %v3583_v35 = vadd.f32 %v5069_v22, %v3350_v45 }
 0x2fc   : > { %v5071_v9 = vpop.f32.mrf.mxu0  ;;  %v3394_v1 = vadd.f32 %v5025_v2, %v3209_v0 }
 0x2fd   : > { %v5121_v21 = vpop.f32.mrf.mxu1  ;;  %v5072_v42 = vadd.f32 %v5071_v9, %v5070_v30  ;;  %v8897_v55 = vld [vmem:[#allocation22_spill] sm:$0xff] }
 0x2fe   : > { %v5073_v52 = vpop.f32.mrf.mxu0  ;;  %v5122_v27 = vadd.f32 %v5121_v21, %v5120_v57 }
 0x2ff   : > { %v5123_v33 = vpop.f32.mrf.mxu1  ;;  %v3590_v25 = vadd.f32 %v5072_v42, %v3361_v32  ;;  %v8893_v30 = vld [vmem:[#allocation34_spill] sm:$0xff]  ;;  %v3811_v42 = vsel %vm3803_vm1, %v3777_v34, 0 }
 0x300   : > { %v5074_v3 = vpop.f32.mrf.mxu0  ;;  %v3729_v21 = vadd.f32 %v5122_v27, %v3576_v29  ;;  %v8050_v62 = vand.u32 4294901760, %v3811_v42 }
 0x301   : > { %v5124_v51 = vpop.f32.mrf.mxu1  ;;  %v5075_v41 = vadd.f32 %v5074_v3, %v5073_v52  ;;  %v8894_v57 = vld [vmem:[#allocation31_spill] sm:$0xff] }
 0x302   : > { %v5076_v37 = vpop.f32.mrf.mxu0  ;;  %v5125_v38 = vadd.f32 %v5124_v51, %v5123_v33  ;;  %v5119_v9 = vadd.f32 %v8894_v57, %v8893_v30  ;;  %v3808_v33 = vsel %vm3803_vm1, %v3776_v18, 0  ;;  %v3769_v32 = vmax.f32 %v3729_v21, 0.0 }
 0x303   : > { %v5126_v12 = vpop.f32.mrf.mxu1  ;;  %v3597_v13 = vadd.f32 %v5075_v41, %v3372_v11  ;;  %v8028_v11 = vand.u32 4294901760, %v3808_v33 }
 0x304   : > { %v5077_v53 = vpop.f32.mrf.mxu0  ;;  %v3736_v47 = vadd.f32 %v5125_v38, %v3583_v35  ;;  %v3722_v10 = vadd.f32 %v5119_v9, %v3569_v24 }
 0x305   : > { %v5127_v20 = vpop.f32.mrf.mxu1  ;;  %v5078_v31 = vadd.f32 %v5077_v53, %v5076_v37  ;;  %v8896_v37 = vld [vmem:[#allocation39_spill] sm:$0xff] }
 0x306   : > { %v5079_v46 = vpop.f32.mrf.mxu0  ;;  %v5128_v60 = vadd.f32 %v5127_v20, %v5126_v12  ;;  %v5060_v20 = vadd.f32 %v8892_v54, %v8891_v58  ;;  %v5116_v19 = vadd.f32 %v8897_v55, %v8896_v37  ;;  %v3770_v43 = vmax.f32 %v3736_v47, 0.0 }
 0x307   : > { %v5129_v8 = vpop.f32.mrf.mxu1  ;;  %v3604_v41 = vadd.f32 %v5078_v31, %v3383_v7  ;;  %v3768_v45 = vmax.f32 %v3722_v10, 0.0  ;;  %v8048_v7 = vsub.f32 %v3808_v33, %v8028_v11  ;;  %v8899_v10 = vld [vmem:[#allocation15_spill] sm:$0xff] }
 0x308   : > { %v5080_v4 = vpop.f32.mrf.mxu0  ;;  %v3743_v59 = vadd.f32 %v5128_v60, %v3590_v25  ;;  %v8039_v31 = vand.u32 4294901760, %v3770_v43 }
 0x309   : > { %v5130_v5 = vpop.f32.mrf.mxu1  ;;  %v5081_v12 = vadd.f32 %v5080_v4, %v5079_v46  ;;  %v8052_v4 = vand.u32 4294901760, %v3769_v32  ;;  %v8077_v27 = vand.u32 4294901760, %v3768_v45 }
 0x30a   : > { %v5131_v26 = vadd.f32 %v5130_v5, %v5129_v8  ;;  %v3771_v36 = vmax.f32 %v3743_v59, 0.0  ;;  %v8898_v8 = vld [vmem:[#allocation6_spill] sm:$0xff]  ;;  %v8068_v56 = vsub.f32 %v3770_v43, %v8039_v31 }
 0x30b   : > { %v5132_v14 = vpop.f32.mrf.mxu1  ;;  %v3611_v3 = vadd.f32 %v5081_v12, %v3394_v1  ;;  %v3562_v44 = vadd.f32 %v5060_v20, %v8898_v8  ;;  %v8085_v59 = vsub.f32 %v3769_v32, %v8052_v4 }
 0x30c   : > { %v3750_v17 = vadd.f32 %v5131_v26, %v3597_v13  ;;  %v8034_v63 = vand.u32 4294901760, %v3771_v36  ;;  %v8105_v47 = vand.u32 4294901760, %v8068_v56 }
 0x30d   : > { %v5133_v23 = vpop.f32.mrf.mxu1  ;;  %v3715_v13 = vadd.f32 %v5116_v19, %v3562_v44  ;;  %v8119_v30 = vand.u32 4294901760, %v8085_v59 }
 0x30e   : > { %v5134_v50 = vadd.f32 %v5133_v23, %v5132_v14  ;;  %v3772_v53 = vmax.f32 %v3750_v17, 0.0  ;;  %v8055_v14 = vsub.f32 %v3771_v36, %v8034_v63  ;;  %v8065_v17 = vand.u32 4294901760, %v3814_v40 }
 0x30f   : > { %v5135_v28 = vpop.f32.mrf.mxu1  ;;  %v3767_v38 = vmax.f32 %v3715_v13, 0.0  ;;  %v3901_v23 = vand.u32 4294901760, %v8048_v7 }
 0x310   : > { %v3757_v48 = vadd.f32 %v5134_v50, %v3604_v41  ;;  %v8023_v49 = vand.u32 4294901760, %v3772_v53  ;;  %v8082_v41 = vsub.f32 %v3811_v42, %v8050_v62  ;;  %v8093_v18 = vand.u32 4294901760, %v8055_v14 }
 0x311   : > { %v5136_v52 = vpop.f32.mrf.mxu1  ;;  %v8095_v6 = vand.u32 4294901760, %v3767_v38  ;;  %v8099_v29 = vsub.f32 %v3814_v40, %v8065_v17  ;;  %v3902_v20 = vsub.f32 %v8048_v7, %v3901_v23  ;;  %v8900_v42 = vand.u32 4294901760, %v8899_v10 }
 0x312   : > { %v3773_v51 = vmax.f32 %v3757_v48, 0.0  ;;  %v5137_v15 = vadd.f32 %v5136_v52, %v5135_v28  ;;  %v8042_v60 = vsub.f32 %v3772_v53, %v8023_v49  ;;  %v8108_v53 = vsub.f32 %v3768_v45, %v8077_v27 }
 0x313   : > { %v3911_v48 = vand.u32 4294901760, %v8082_v41  ;;  %v3970_v54 = vsub.f32 %v8055_v14, %v8093_v18  ;;  %v8122_v57 = vsub.f32 %v3767_v38, %v8095_v6  ;;  %v3921_v9 = vand.u32 4294901760, %v8099_v29 }
 0x314   : > { %v8025_v16 = vand.u32 4294901760, %v3773_v51  ;;  %v3764_v46 = vadd.f32 %v5137_v15, %v3611_v3  ;;  %v8075_v35 = vand.u32 4294901760, %v8042_v60  ;;  %v3977_v52 = vsub.f32 %v8068_v56, %v8105_v47 }
 0x315   : > { %v3912_v33 = vsub.f32 %v8082_v41, %v3911_v48  ;;  %v8134_v36 = vand.u32 4294901760, %v8108_v53  ;;  %v3971_v3 = vand.u32 4294901760, %v3970_v54  ;;  %v3984_v15 = vsub.f32 %v8085_v59, %v8119_v30 }
 0x316   : > { %v8037_v22 = vsub.f32 %v3773_v51, %v8025_v16  ;;  %v3774_v5 = vmax.f32 %v3764_v46, 0.0  ;;  %v3963_v1 = vsub.f32 %v8042_v60, %v8075_v35  ;;  %v3903_v51 = vand.u32 4294901760, %v3902_v20 }
 0x317   : > { %v3922_v34 = vsub.f32 %v8099_v29, %v3921_v9  ;;  %v8144_v61 = vand.u32 4294901760, %v8122_v57  ;;  %v3978_v24 = vand.u32 4294901760, %v3977_v52  ;;  %v3913_v37 = vand.u32 4294901760, %v3912_v33 }
 0x318   : > { %v8044_v26 = vand.u32 4294901760, %v3774_v5  ;;  %v8062_v25 = vand.u32 4294901760, %v8037_v22  ;;  %v3964_v21 = vand.u32 4294901760, %v3963_v1  ;;  %v3991_v55 = vsub.f32 %v8108_v53, %v8134_v36 }
 0x319   : > { %v3985_v19 = vand.u32 4294901760, %v3984_v15  ;;  %v3923_v43 = vand.u32 4294901760, %v3922_v34  ;;  %v3998_v46 = vsub.f32 %v8122_v57, %v8144_v61 }
 0x31a   : > { %v8058_v2 = vsub.f32 %v3774_v5, %v8044_v26  ;;  %5522 = vmatprep.subr.mxu0 %v8044_v26  ;;  %v3956_v50 = vsub.f32 %v8037_v22, %v8062_v25  ;;  %v3992_v8 = vand.u32 4294901760, %v3991_v55 }
 0x31b   : > { %5523 = vmatpush3.msra.mxu0 %v8044_v26  ;;  %v3999_v44 = vand.u32 4294901760, %v3998_v46 }
 0x31c   : > { %5524 = vmatprep.subr.mxu0 %v8025_v16  ;;  %v8072_v0 = vand.u32 4294901760, %v8058_v2  ;;  %v3957_v58 = vand.u32 4294901760, %v3956_v50 }
 0x31d   : > { %5525 = vmatpush3.msra.mxu0 %v8025_v16 }
 0x31e   : > { %5526 = vmatprep.subr.mxu0 %v8023_v49  ;;  %v3949_v12 = vsub.f32 %v8058_v2, %v8072_v0 }
 0x31f   : > { %5527 = vmatpush3.msra.mxu0 %v8023_v49 }
 0x320   : > { %5528 = vmatprep.subr.mxu0 %v8034_v63  ;;  %v3950_v28 = vand.u32 4294901760, %v3949_v12 }
 0x321   : > { %5529 = vmatpush3.msra.mxu0 %v8034_v63 }
 0x322   : > { %5530 = vmatprep.subr.mxu0 %v8039_v31  ;;  %5544 = vmatprep.subr.mxu1 %v3950_v28 }
 0x323   : > { %5531 = vmatpush3.msra.mxu0 %v8039_v31  ;;  %5545 = vmatpush3.msra.mxu1 %v3950_v28 }
 0x324   : > { %5532 = vmatprep.subr.mxu0 %v8052_v4  ;;  %5546 = vmatprep.subr.mxu1 %v3957_v58 }
 0x325   : > { %5533 = vmatpush3.msra.mxu0 %v8052_v4  ;;  %5547 = vmatpush3.msra.mxu1 %v3957_v58 }
 0x326   : > { %5534 = vmatprep.subr.mxu0 %v8077_v27  ;;  %5548 = vmatprep.subr.mxu1 %v3964_v21 }
 0x327   : > { %5535 = vmatpush3.msra.mxu0 %v8077_v27  ;;  %5549 = vmatpush3.msra.mxu1 %v3964_v21 }
 0x328   : > { %5536 = vmatprep.subr.mxu0 %v8095_v6  ;;  %5550 = vmatprep.subr.mxu1 %v3971_v3 }
 0x329   : > { %5537 = vmatpush3.msra.mxu0 %v8095_v6  ;;  %5551 = vmatpush3.msra.mxu1 %v3971_v3 }
 0x32a   : > { %5539 = vmatmul.mubr.f32.vlgmr.msra.gmra.mxu0 %v3903_v51  ;;  %5552 = vmatprep.subr.mxu1 %v3978_v24 }
 0x32b   : > { %5566 = vmatprep.subr.mxu0 %v8058_v2  ;;  %5553 = vmatpush3.msra.mxu1 %v3978_v24 }
 0x32c   : > { %5567 = vmatpush3.msra.mxu0 %v8058_v2  ;;  %5554 = vmatprep.subr.mxu1 %v3985_v19 }
 0x32d   : > { %5568 = vmatprep.subr.mxu0 %v8037_v22  ;;  %5541 = vmatprep.mubr.f32.mxu0 %v3913_v37 }
 0x32e   : > { %5555 = vmatpush3.msra.mxu1 %v3985_v19  ;;  %5569 = vmatpush3.msra.mxu0 %v8037_v22 }
 0x32f   : > { %5542 = vmatmul.mubr.f32.gmra.mxu0 %v3923_v43  ;;  %5556 = vmatprep.subr.mxu1 %v3992_v8 }
 0x330   : > { %5570 = vmatprep.subr.mxu0 %v8042_v60  ;;  %5557 = vmatpush3.msra.mxu1 %v3992_v8 }
 0x331   : > { %5571 = vmatpush3.msra.mxu0 %v8042_v60  ;;  %5558 = vmatprep.subr.mxu1 %v3999_v44 }
 0x332   : > { %5572 = vmatprep.subr.mxu0 %v8055_v14  ;;  %5559 = vmatpush3.msra.mxu1 %v3999_v44 }
 0x333   : > { %5573 = vmatpush3.msra.mxu0 %v8055_v14  ;;  %5561 = vmatmul.mubr.f32.vlgmr.msra.gmra.mxu1 %v8028_v11 }
 0x334   : > { %5574 = vmatprep.subr.mxu0 %v8068_v56  ;;  %5588 = vmatprep.subr.mxu1 %v8044_v26 }
 0x335   : > { %5575 = vmatpush3.msra.mxu0 %v8068_v56  ;;  %5589 = vmatpush3.msra.mxu1 %v8044_v26 }
 0x336   : > { %5576 = vmatprep.subr.mxu0 %v8085_v59  ;;  %5590 = vmatprep.subr.mxu1 %v8025_v16 }
 0x337   : > { %5563 = vmatprep.mubr.f32.mxu1 %v8050_v62  ;;  %5577 = vmatpush3.msra.mxu0 %v8085_v59 }
 0x338   : > { %5591 = vmatpush3.msra.mxu1 %v8025_v16  ;;  %5578 = vmatprep.subr.mxu0 %v8108_v53 }
 0x339   : > { %5564 = vmatmul.mubr.f32.gmra.mxu1 %v8065_v17  ;;  %5592 = vmatprep.subr.mxu1 %v8023_v49 }
 0x33a   : > { %5579 = vmatpush3.msra.mxu0 %v8108_v53  ;;  %5593 = vmatpush3.msra.mxu1 %v8023_v49 }
 0x33b   : > { %5580 = vmatprep.subr.mxu0 %v8122_v57  ;;  %5594 = vmatprep.subr.mxu1 %v8034_v63 }
 0x33c   : > { %5581 = vmatpush3.msra.mxu0 %v8122_v57  ;;  %5582 = vmatprep.mubr.f32.mxu0 %v8899_v10 }
 0x33d   : > { %5595 = vmatpush3.msra.mxu1 %v8034_v63  ;;  %5583 = vmatmul.mubr.f32.vlgmr.msra.gmra.mxu0 %v8048_v7  ;;  %v3791_v7 = vpop.permute.xlu1 %3790 }
 0x33e   : > { %5596 = vmatprep.subr.mxu1 %v8039_v31  ;;  %5610 = vmatprep.subr.mxu0 %v8072_v0 }
 0x33f   : > { %5597 = vmatpush3.msra.mxu1 %v8039_v31  ;;  %5611 = vmatpush3.msra.mxu0 %v8072_v0 }
 0x340   : > { %5598 = vmatprep.subr.mxu1 %v8052_v4  ;;  %5612 = vmatprep.subr.mxu0 %v8062_v25 }
 0x341   : > { %5585 = vmatprep.mubr.f32.mxu0 %v8082_v41  ;;  %5599 = vmatpush3.msra.mxu1 %v8052_v4 }
 0x342   : > { %5613 = vmatpush3.msra.mxu0 %v8062_v25  ;;  %5600 = vmatprep.subr.mxu1 %v8077_v27  ;;  %v3801_v25 = vpop.permute.xlu1 %3800 }
 0x343   : > { %5586 = vmatmul.mubr.f32.gmra.mxu0 %v8099_v29  ;;  %5614 = vmatprep.subr.mxu0 %v8075_v35 }
 0x344   : > { %5601 = vmatpush3.msra.mxu1 %v8077_v27  ;;  %5615 = vmatpush3.msra.mxu0 %v8075_v35 }
 0x345   : > { %5602 = vmatprep.subr.mxu1 %v8095_v6  ;;  %5616 = vmatprep.subr.mxu0 %v8093_v18 }
 0x346   : > { %5603 = vmatpush3.msra.mxu1 %v8095_v6  ;;  %5604 = vmatprep.mubr.f32.mxu1 %v8900_v42 }
 0x347   : > { %5617 = vmatpush3.msra.mxu0 %v8093_v18  ;;  %5605 = vmatmul.mubr.f32.vlgmr.msra.gmra.mxu1 %v3901_v23 }
 0x348   : > { %5618 = vmatprep.subr.mxu0 %v8105_v47  ;;  %5632 = vmatprep.subr.mxu1 %v8044_v26 }
 0x349   : > { %5619 = vmatpush3.msra.mxu0 %v8105_v47  ;;  %5633 = vmatpush3.msra.mxu1 %v8044_v26 }
 0x34a   : > { %5620 = vmatprep.subr.mxu0 %v8119_v30  ;;  %5634 = vmatprep.subr.mxu1 %v8025_v16 }
 0x34b   : > { %5607 = vmatprep.mubr.f32.mxu1 %v3911_v48  ;;  %5621 = vmatpush3.msra.mxu0 %v8119_v30 }
 0x34c   : > { %5635 = vmatpush3.msra.mxu1 %v8025_v16  ;;  %5622 = vmatprep.subr.mxu0 %v8134_v36 }
 0x34d   : > { %5608 = vmatmul.mubr.f32.gmra.mxu1 %v3921_v9  ;;  %5636 = vmatprep.subr.mxu1 %v8023_v49 }
 0x34e   : > { %5623 = vmatpush3.msra.mxu0 %v8134_v36  ;;  %5637 = vmatpush3.msra.mxu1 %v8023_v49 }
 0x34f   : > { %5624 = vmatprep.subr.mxu0 %v8144_v61  ;;  %5638 = vmatprep.subr.mxu1 %v8034_v63 }
 0x350   : > { %5625 = vmatpush3.msra.mxu0 %v8144_v61  ;;  %5626 = vmatprep.mubr.f32.mxu0 %v8901_v39 }
 0x351   : > { %5639 = vmatpush3.msra.mxu1 %v8034_v63  ;;  %5627 = vmatmul.mubr.f32.vlgmr.msra.gmra.mxu0 %v8028_v11 }
 0x352   : > { %5640 = vmatprep.subr.mxu1 %v8039_v31  ;;  %5629 = vmatprep.mubr.f32.mxu0 %v8050_v62 }
 0x353   : > { %5641 = vmatpush3.msra.mxu1 %v8039_v31  ;;  %5648 = vmatprep.mubr.f32.mxu1 %v8901_v39 }
 0x354   : > { %5642 = vmatprep.subr.mxu1 %v8052_v4 }
 0x355   : > { %5643 = vmatpush3.msra.mxu1 %v8052_v4  ;;  %5630 = vmatmul.mubr.f32.gmra.mxu0 %v8065_v17 }
 0x356   : > { %5644 = vmatprep.subr.mxu1 %v8077_v27 }
 0x357   : > { %5645 = vmatpush3.msra.mxu1 %v8077_v27 }
 0x358   : > { %5646 = vmatprep.subr.mxu1 %v8095_v6 }
 0x359   : > { %5647 = vmatpush3.msra.mxu1 %v8095_v6 }
 0x35a   : > { %5649 = vmatmul.mubr.f32.vlgmr.msra.gmra.mxu1 %v8028_v11  ;;  %v3786_v11 = vpop.permute.xlu0 %3785 }
 0x35b   : > { %5651 = vmatprep.mubr.f32.mxu1 %v8050_v62 }
 0x35e   : > { %5652 = vmatmul.mubr.f32.gmra.mxu1 %v8065_v17  ;;  %v3796_v41 = vpop.permute.xlu0 %3795 }
 0x3ea   : > { %v5540_v49 = vpop.f32.mrf.mxu0 }
 0x3eb   : > { %v3906_v62 = vadd.f32 %v5540_v49, %v3791_v7 }
 0x3ec   : > { %v3895_v16 = vpop.f32.mrf.mxu0 }
 0x3ed   : > { %v3896_v38 = vadd.f32 %v3895_v16, %v3786_v11 }
 0x3ef   : > { %v5543_v32 = vpop.f32.mrf.mxu0 }
 0x3f0   : > { %v3926_v35 = vadd.f32 %v5543_v32, %v3801_v25 }
 0x3f1   : > { %v3915_v22 = vpop.f32.mrf.mxu0 }
 0x3f2   : > { %v3916_v59 = vadd.f32 %v3915_v22, %v3796_v41 }
 0x3f3   : > { %v5562_v63 = vpop.f32.mrf.mxu1 }
 0x3f4   : > { %v4043_v17 = vadd.f32 %v5562_v63, %v3906_v62 }
 0x3f5   : > { %v4036_v5 = vpop.f32.mrf.mxu1 }
 0x3f6   : > { %v4037_v27 = vadd.f32 %v4036_v5, %v3896_v38 }
 0x3f9   : > { %v5565_v31 = vpop.f32.mrf.mxu1 }
 0x3fa   : > { %v4055_v12 = vadd.f32 %v5565_v31, %v3926_v35 }
 0x3fb   : > { %v4048_v26 = vpop.f32.mrf.mxu1 }
 0x3fc   : > { %v4049_v28 = vadd.f32 %v4048_v26, %v3916_v59 }
 0x3fd   : > { %v5584_v13 = vpop.f32.mrf.mxu0 }
 0x3fe   : > { %v4150_v23 = vadd.f32 %v5584_v13, %v4043_v17 }
 0x3ff   : > { %v4142_v60 = vpop.f32.mrf.mxu0 }
 0x400   : > { %v4143_v50 = vadd.f32 %v4142_v60, %v4037_v27 }
 0x403   : > { %v5587_v40 = vpop.f32.mrf.mxu0 }
 0x404   : > { %v4164_v1 = vadd.f32 %v5587_v40, %v4055_v12 }
 0x405   : > { %v4156_v4 = vpop.f32.mrf.mxu0 }
 0x406   : > { %v4157_v58 = vadd.f32 %v4156_v4, %v4049_v28 }
 0x407   : > { %v5606_v45 = vpop.f32.mrf.mxu1 }
 0x408   : > { %v4253_v18 = vadd.f32 %v5606_v45, %v4150_v23 }
 0x409   : > { %v4244_v14 = vpop.f32.mrf.mxu1 }
 0x40a   : > { %v4245_v47 = vadd.f32 %v4244_v14, %v4143_v50 }
 0x40d   : > { %v5609_v56 = vpop.f32.mrf.mxu1 }
 0x40e   : > { %v4269_v54 = vadd.f32 %v5609_v56, %v4164_v1 }
 0x40f   : > { %v4260_v6 = vpop.f32.mrf.mxu1 }
 0x410   : > { %v4261_v21 = vadd.f32 %v4260_v6, %v4157_v58 }
 0x411   : > { %v5628_v2 = vpop.f32.mrf.mxu0 }
 0x412   : > { %v4370_v53 = vadd.f32 %v5628_v2, %v4253_v18 }
 0x413   : > { %v4363_v0 = vpop.f32.mrf.mxu0 }
 0x414   : > { %v4364_v20 = vadd.f32 %v4363_v0, %v4245_v47 }
 0x415   : > { %v5631_v29 = vpop.f32.mrf.mxu0 }
 0x416   : > { %v4382_v52 = vadd.f32 %v5631_v29, %v4269_v54 }
 0x417   : > { %v4375_v57 = vpop.f32.mrf.mxu0 }
 0x418   : > { %v4376_v51 = vadd.f32 %v4375_v57, %v4261_v21 }
 0x41a   : > { %v5650_v48 = vpop.f32.mrf.mxu1 }
 0x41b   : > { %v4467_v30 = vadd.f32 %v5650_v48, %v4370_v53 }
 0x41c   : > { %v4460_v9 = vpop.f32.mrf.mxu1 }
 0x41d   : > { %v4483_v33 = vmax.f32 %v4467_v30, 0.0  ;;  %v4461_v36 = vadd.f32 %v4460_v9, %v4364_v20 }
 0x41e   : > { %v5653_v3 = vpop.f32.mrf.mxu1 }
 0x41f   : > { %4487 = vst [vmem:[%s293_s19 + $0x8] sm:$0xff] %v4483_v33  ;;  %v4482_v15 = vmax.f32 %v4461_v36, 0.0  ;;  %v4479_v34 = vadd.f32 %v5653_v3, %v4382_v52 }
 0x420   : > { %v4472_v61 = vpop.f32.mrf.mxu1 }
 0x421   : > { %4486 = vst [vmem:[%s293_s19] sm:$0xff] %v4482_v15  ;;  %v4485_v24 = vmax.f32 %v4479_v34, 0.0  ;;  %v4473_v37 = vadd.f32 %v4472_v61, %v4376_v51 }
 0x423   : > { %4489 = vst [vmem:[%s293_s19 + $0x18] sm:$0xff] %v4485_v24  ;;  %v4484_v55 = vmax.f32 %v4473_v37, 0.0 }
 0x425   : > { %4488 = vst [vmem:[%s293_s19 + $0x10] sm:$0xff] %v4484_v55 }
 0x426   : > { %5727 = shalt.err (!%p5724_p5)
}
 0x427   : > { %s5728_s16 = scalar_lea.hbm %s8248_s30, 512  ;;  %s5732_s19 = scalar_lea.hbm %s8304_s7, 1024 }
 0x428   : > { %p5729_p6 = scmp.ne.s32.totalorder %s8248_s30, %s5728_s16  ;;  %p5733_p10 = scmp.lt.s32.totalorder %s8248_s30, %s8304_s7 }
 0x429   : > { %p5734_p11 = scmp.lt.s32.totalorder %s5732_s19, %s5728_s16 }
 0x42a   : > { %p5730_p7 = pnand %p5729_p6, %p5876_p4 }
 0x42b   : > { %p5735_p12 = por %p5734_p11, %p5733_p10 }
 0x42c   : > { %p5731_p9 = pneg %p5730_p7 }
 0x42e   : > { %p5736_p13 = pnand %p5735_p12, %p5731_p9 }
 0x430   : > { %5739 = shalt.err (!%p5736_p13)
}
 0x431   : > { %s5794_s23 = smov 128   ;;  %s5795_s27 = smov 8  }
 0x432   : > { %5654 = dma.vmem_to_hbm [thread:$0]  (%p5876_p4), %s8243_s20, 512, %s8248_s30, %s8252_s8, %s5794_s23, %s5794_s23, %s5795_s27  }
 0x433 PF: > { %p5660_p0 = scmp.ge.s32.totalorder %s5790_s29, 2  ;;  %s4520_s10 = sand.u32 1, %s5770_s24  }
 0x434   : > { %s4521_s12 = scalar_lea.sflag [#allocation3], %s4520_s10 }
 0x435   : > { %p5657_p1 = pnand %p5660_p0, %p5883_p8 }
 0x437   : > { %p5658_p2 = pneg %p5657_p1 }
 0x439   : > { %5765 = dma.done.wait (%p5658_p2), %s4521_s12, 512  }
 0x43a   : > { %5767 = vsyncadd (%p5658_p2), %s4521_s12, 4294966784  ;;  %s20_s29 = sadd.s32 1, %s5790_s29   ;;  %s8902_s24 = smov %s5774_s25 }
 0x43b   : > { %p17_p3 = scmp.ge.s32.totalorder %s20_s29, 4   ;;  %s8903_s25 = smov %s5778_s26 }
 0x43c   : > { %s8904_s26 = smov %s5889_s14  ;;  %s8905_s27 = smov %s5786_s28 }
 0x43d   : > { %s8906_s28 = smov %s8908_s9  ;;  %19 = sbr.rel (!%p17_p3) target bundleno = 4 (0x4), region = 83 }
 0x442   :  { %4526 = vsyncpa [#allocation3], 1 }
 0x443   :  { %4528 = vsyncpa [#allocation3 + $0x1], 1 }

</bundles_post_ra>
